<compile_context>
chip_gen: v6e
topology: v6e:2x2x1
jax: 0.10.0
libtpu: 0.0.40
codegen_flags: <defaults>
</compile_context>

<pallas_src>
import functools

import jax
import jax.numpy as jnp
from jax.experimental import pallas as pl
from jax.experimental.pallas import tpu as pltpu

BN_EPS = 1e-5


# ----------------------------- Pallas kernels ------------------------------

def _conv_mm_kernel(p_ref, w_ref, s0_ref, b0_ref, s1_ref, b1_ref, *rest,
                    pre, pre_relu, post, post_relu, res):
    """Fused (pre BN affine+ReLU) -> single deep matmul -> (post affine+ReLU)
    -> (+ residual).

    p_ref : (TM, K*K*Cin)    im2col rows (batch*spatial fused)
    w_ref : (K*K*Cin, Cout)  conv weight as one deep-contraction matrix
    s0/b0 : (1, K*K*Cin)     pre-conv BN affine, tiled over the K*K window taps
    s1/b1 : (1, Cout)        post-conv affine (conv0->bn0->relu0 fusion)
    rest  : [r_ref (TM,Cout)] optional residual, then o_ref (TM, Cout)
    """
    if res:
        r_ref, o_ref = rest
    else:
        (o_ref,) = rest
    x = p_ref[...]
    if pre:
        x = x * s0_ref[...] + b0_ref[...]
    if pre_relu:
        x = jnp.maximum(x, 0.0)
    y = jnp.dot(x, w_ref[...], preferred_element_type=jnp.float32)
    if post:
        y = y * s1_ref[...] + b1_ref[...]
    if post_relu:
        y = jnp.maximum(y, 0.0)
    if res:
        y = y + r_ref[...]
    o_ref[...] = y


def _pool_kernel(p_ref, *rest, kk, mode, res):
    """Max/avg pool over kk pre-shifted slabs in lane-dense (N, H*W*C) layout.

    p_ref : (kk, N, H*W*C); optional residual (N, H*W*C); o_ref (N, H*W*C).
    """
    if res:
        r_ref, o_ref = rest
    else:
        (o_ref,) = rest
    acc = p_ref[0]
    for i in range(1, kk):
        v = p_ref[i]
        acc = jnp.maximum(acc, v) if mode == "max" else acc + v
    if mode == "avg":
        acc = acc * (1.0 / kk)     # count_include_pad=True, like nn.AvgPool2d
    if res:
        acc = acc + r_ref[...]
    o_ref[...] = acc


def _head_kernel(x_ref, w_ref, b_ref, o_ref):
    """Global average pool over the spatial axis + Linear, whole batch."""
    x = x_ref[...]                       # (N, HW, C)
    feat = jnp.mean(x, axis=1)           # (N, C)
    o_ref[...] = jnp.dot(feat, w_ref[...],
                         preferred_element_type=jnp.float32) + b_ref[...]


# ------------------------------- wrappers -----------------------------------

def _extract_patches(x, k, pad, stride, pad_channel=None):
    """x: (N,H,W,C) -> im2col rows (N*Ho*Wo, k*k*C), glue only.

    Strided output positions are extracted directly.  `pad_channel` is an
    optional per-channel padding value (used so a fused bn+relu inside the
    kernel maps padded positions to exactly zero)."""
    N, H, W, C = x.shape
    if pad > 0:
        if pad_channel is None:
            xp = jnp.pad(x, ((0, 0), (pad, pad), (pad, pad), (0, 0)))
        else:
            p = pad_channel.reshape(1, 1, 1, C)
            xp = jnp.pad(x - p, ((0, 0), (pad, pad), (pad, pad), (0, 0))) + p
    else:
        xp = x
    Ho = (H + 2 * pad - k) // stride + 1
    Wo = (W + 2 * pad - k) // stride + 1
    cols = []
    for kh in range(k):
        for kw in range(k):
            cols.append(xp[:, kh:kh + stride * Ho:stride,
                           kw:kw + stride * Wo:stride, :])
    pat = jnp.concatenate(cols, axis=-1)          # (N, Ho, Wo, k*k*C)
    return pat.reshape(N * Ho * Wo, k * k * C), Ho, Wo


def conv2d_pallas(x, w_pt, *, stride=1, padding=0,
                  pre_scale=None, pre_bias=None, pre_relu=False,
                  post_scale=None, post_bias=None, post_relu=False,
                  residual=None):
    """Bias-free conv2d with optional fused pre-BN(affine)+ReLU, post affine+ReLU
    and residual add.  x: (N,H,W,Cin); w_pt: PyTorch layout (Cout,Cin,K,K)."""
    N, H, W, Cin = x.shape
    Cout, _, K, _ = w_pt.shape
    x = x.astype(jnp.float32)
    has_pre = pre_scale is not None
    has_post = post_scale is not None

    pad_channel = None
    if has_pre and padding > 0:
        s32 = pre_scale.astype(jnp.float32)
        b32 = pre_bias.astype(jnp.float32)
        # Pad the raw input with p_c = -b_c/s_c so the in-kernel affine maps
        # padded positions to exactly 0 (== zero padding applied after bn+relu).
        s_safe = jnp.where(jnp.abs(s32) < 1e-12, 1e-12, s32)
        pad_channel = -b32 / s_safe

    patches, Ho, Wo = _extract_patches(x, K, padding, stride,
                                       pad_channel=pad_channel)
    M = N * Ho * Wo
    KC = K * K * Cin

    # (Cout, Cin, Kh, Kw) -> (Kh, Kw, Cin, Cout) -> (K*K*Cin, Cout)
    w_mat = jnp.transpose(w_pt, (2, 3, 1, 0)).reshape(KC, Cout)
    w_mat = w_mat.astype(jnp.float32)

    if has_pre:
        s0 = jnp.tile(pre_scale.astype(jnp.float32), K * K).reshape(1, KC)
        b0 = jnp.tile(pre_bias.astype(jnp.float32), K * K).reshape(1, KC)
    else:
        s0 = jnp.ones((1, KC), jnp.float32)
        b0 = jnp.zeros((1, KC), jnp.float32)
    if has_post:
        s1 = post_scale.astype(jnp.float32).reshape(1, Cout)
        b1 = post_bias.astype(jnp.float32).reshape(1, Cout)
    else:
        s1 = jnp.ones((1, Cout), jnp.float32)
        b1 = jnp.zeros((1, Cout), jnp.float32)

    # Row tiling over the fused batch*spatial dim (single block at these sizes).
    TM = 512 if (M > 512 and M % 512 == 0) else M
    M_pad = M
    if M % TM != 0:
        M_pad = ((M + TM - 1) // TM) * TM
        patches = jnp.pad(patches, ((0, M_pad - M), (0, 0)))
    grid = (M_pad // TM,)

    has_res = residual is not None
    args = [patches, w_mat, s0, b0, s1, b1]
    in_specs = [
        pl.BlockSpec((TM, KC), lambda m: (m, 0)),
        pl.BlockSpec((KC, Cout), lambda m: (0, 0)),
        pl.BlockSpec((1, KC), lambda m: (0, 0)),
        pl.BlockSpec((1, KC), lambda m: (0, 0)),
        pl.BlockSpec((1, Cout), lambda m: (0, 0)),
        pl.BlockSpec((1, Cout), lambda m: (0, 0)),
    ]
    if has_res:
        r = residual.astype(jnp.float32).reshape(M, Cout)
        if M_pad != M:
            r = jnp.pad(r, ((0, M_pad - M), (0, 0)))
        args.append(r)
        in_specs.append(pl.BlockSpec((TM, Cout), lambda m: (m, 0)))

    out = pl.pallas_call(
        functools.partial(_conv_mm_kernel, pre=has_pre, pre_relu=pre_relu,
                          post=has_post, post_relu=post_relu, res=has_res),
        out_shape=jax.ShapeDtypeStruct((M_pad, Cout), jnp.float32),
        grid=grid,
        in_specs=in_specs,
        out_specs=pl.BlockSpec((TM, Cout), lambda m: (m, 0)),
        compiler_params=pltpu.CompilerParams(
            dimension_semantics=("parallel",)),
    )(*args)
    return out[:M].reshape(N, Ho, Wo, Cout)


def pool2d_pallas(x, *, k, pad, mode, residual=None):
    """stride-1 max/avg pool (PyTorch AvgPool2d has count_include_pad=True),
    optional fused residual add."""
    N, H, W, C = x.shape
    x = x.astype(jnp.float32)
    pad_value = 0.0 if mode == "avg" else float("-inf")
    if pad > 0:
        xp = jnp.pad(x, ((0, 0), (pad, pad), (pad, pad), (0, 0)),
                     constant_values=pad_value)
    else:
        xp = x
    L = H * W * C
    KK = k * k
    slabs = jnp.stack([xp[:, kh:kh + H, kw:kw + W, :].reshape(N, L)
                       for kh in range(k) for kw in range(k)], axis=0)

    has_res = residual is not None
    args = [slabs]
    in_specs = [pl.BlockSpec((KK, N, L), lambda i: (0, 0, 0))]
    if has_res:
        args.append(residual.astype(jnp.float32).reshape(N, L))
        in_specs.append(pl.BlockSpec((N, L), lambda i: (0, 0)))

    out = pl.pallas_call(
        functools.partial(_pool_kernel, kk=KK, mode=mode, res=has_res),
        out_shape=jax.ShapeDtypeStruct((N, L), jnp.float32),
        grid=(1,),
        in_specs=in_specs,
        out_specs=pl.BlockSpec((N, L), lambda i: (0, 0)),
        compiler_params=pltpu.CompilerParams(
            dimension_semantics=("arbitrary",)),
    )(*args)
    return out.reshape(N, H, W, C)


def head_pallas(x, w, b):
    """Global avg pool over the spatial dims + Linear, whole batch at once."""
    N, H, W, C = x.shape
    HW = H * W
    ncls = w.shape[1]
    xf = x.reshape(N, HW, C).astype(jnp.float32)
    return pl.pallas_call(
        _head_kernel,
        out_shape=jax.ShapeDtypeStruct((N, ncls), jnp.float32),
        grid=(1,),
        in_specs=[
            pl.BlockSpec((N, HW, C), lambda i: (0, 0, 0)),
            pl.BlockSpec((C, ncls), lambda i: (0, 0)),
            pl.BlockSpec((1, ncls), lambda i: (0, 0)),
        ],
        out_specs=pl.BlockSpec((N, ncls), lambda i: (0, 0)),
        compiler_params=pltpu.CompilerParams(
            dimension_semantics=("arbitrary",)),
    )(xf, w.astype(jnp.float32), b.reshape(1, ncls).astype(jnp.float32))


# --------------------------- parameter init ----------------------------------

def init_bn(key, c):
    k1, k2, k3, k4 = jax.random.split(key, 4)
    return {
        "gamma": 1.0 + 0.1 * jax.random.normal(k1, (c,), jnp.float32),
        "beta": 0.1 * jax.random.normal(k2, (c,), jnp.float32),
        "mean": 0.05 * jax.random.normal(k3, (c,), jnp.float32),
        "var": 1.0 + 0.1 * jax.random.uniform(k4, (c,), jnp.float32),
    }


def bn_scale_bias(bn):
    scale = bn["gamma"] / jnp.sqrt(bn["var"] + BN_EPS)
    bias = bn["beta"] - bn["mean"] * scale
    return scale, bias


def init_conv(key, cin, cout, k):
    fan_in = cin * k * k
    return jax.random.normal(key, (cout, cin, k, k), jnp.float32) * (2.0 / fan_in) ** 0.5


# ------------------------ op / block / model builders ------------------------

OP_SPECS = {
    "identity": dict(kind="identity"),
    "bnconv_1": dict(kind="bnconv", k=1, p=0, double=False),
    "bnconv_3": dict(kind="bnconv", k=3, p=1, double=False),
    "double_bnconv_1": dict(kind="bnconv", k=1, p=0, double=True),
    "double_bnconv_3": dict(kind="bnconv", k=3, p=1, double=True),
    "avgpool_3": dict(kind="pool", mode="avg", k=3, p=1),
    "maxpool_3": dict(kind="pool", mode="max", k=3, p=1),
    "maxpool_5": dict(kind="pool", mode="max", k=5, p=2),
    "maxpool_7": dict(kind="pool", mode="max", k=7, p=3),
}
RED_OP_SPECS = {
    "conv_1": dict(kind="conv", k=1, p=0),
    "conv_3": dict(kind="conv", k=3, p=1),
    "bnconv_1": dict(kind="bnconv", k=1, p=0, double=False),
    "bnconv_3": dict(kind="bnconv", k=3, p=1, double=False),
    "double_bnconv_1": dict(kind="bnconv", k=1, p=0, double=True),
    "double_bnconv_3": dict(kind="bnconv", k=3, p=1, double=True),
}


def make_op(name, c, key, reduction):
    """Returns (apply(params, x, residual=None), params, fuses_residual)."""
    spec = (RED_OP_SPECS if reduction else OP_SPECS)[name]
    stride = 2 if reduction else 1
    cout = 2 * c if reduction else c
    kind = spec["kind"]

    if kind == "identity":
        def apply_id(prm, x, residual=None):
            return x
        return apply_id, {}, False

    if kind == "pool":
        k, p, mode = spec["k"], spec["p"], spec["mode"]

        def apply_pool(prm, x, residual=None, k=k, p=p, m=mode):
            return pool2d_pallas(x, k=k, pad=p, mode=m, residual=residual)
        return apply_pool, {}, True

    if kind == "conv":
        k, p = spec["k"], spec["p"]
        prm = {"w": init_conv(key, c, cout, k)}

        def apply_conv(prm, x, residual=None, p=p, s=stride):
            return conv2d_pallas(x, prm["w"], stride=s, padding=p,
                                 residual=residual)
        return apply_conv, prm, True

    # bnconv / double_bnconv
    k, p = spec["k"], spec["p"]
    if not spec["double"]:
        ka, kb = jax.random.split(key)
        prm = {"bn": init_bn(ka, c), "w": init_conv(kb, c, cout, k)}

        def apply_bnconv(prm, x, residual=None, p=p, s=stride):
            sc, bi = bn_scale_bias(prm["bn"])
            return conv2d_pallas(x, prm["w"], stride=s, padding=p,
                                 pre_scale=sc, pre_bias=bi, pre_relu=True,
                                 residual=residual)
        return apply_bnconv, prm, True

    ka, kb, kc, kd = jax.random.split(key, 4)
    prm = {
        "b1": {"bn": init_bn(ka, c), "w": init_conv(kb, c, cout, k)},
        "b2": {"bn": init_bn(kc, cout), "w": init_conv(kd, cout, cout, k)},
    }

    def apply_double(prm, x, residual=None, p=p, s=stride):
        s1, b1 = bn_scale_bias(prm["b1"]["bn"])
        h = conv2d_pallas(x, prm["b1"]["w"], stride=s, padding=p,
                          pre_scale=s1, pre_bias=b1, pre_relu=True)
        s2, b2 = bn_scale_bias(prm["b2"]["bn"])
        return conv2d_pallas(h, prm["b2"]["w"], stride=1, padding=p,
                             pre_scale=s2, pre_bias=b2, pre_relu=True,
                             residual=residual)
    return apply_double, prm, True


def make_rblock(c, key, op_keys, reduction):
    name1, name2, comb = op_keys
    assert comb == "add", "only 'add' comb exists in the reference combs dict"
    ka, kb = jax.random.split(key)
    f1, p1, fuse1 = make_op(name1, c, ka, reduction)
    f2, p2, fuse2 = make_op(name2, c, kb, reduction)

    def apply(x):
        # Fuse the residual add into whichever branch's Pallas kernel supports it.
        if fuse1:
            return f1(p1, x, residual=f2(p2, x))
        if fuse2:
            return f2(p2, x, residual=f1(p1, x))
        return f1(p1, x) + f2(p2, x)

    return apply


def build_rnet(key, config, block_sizes=(2, 1, 1, 1),
               init_channels=8, num_classes=10):
    keys = iter(jax.random.split(key, 64))
    conv0_w = init_conv(next(keys), 3, init_channels, 3)
    bn0 = init_bn(next(keys), init_channels)

    blocks = []
    c = init_channels
    for stage in range(4):
        for _ in range(block_sizes[stage]):
            blocks.append(make_rblock(c, next(keys), config["op_keys"],
                                      reduction=False))
        if stage < 3:
            blocks.append(make_rblock(c, next(keys), config["red_op_keys"],
                                      reduction=True))
            c *= 2

    lin_w = jax.random.normal(next(keys), (c, num_classes), jnp.float32) * (1.0 / c) ** 0.5
    lin_b = 0.01 * jax.random.normal(next(keys), (num_classes,), jnp.float32)

    def forward(x_nchw):
        # PyTorch NCHW input -> NHWC for the kernels
        x = jnp.transpose(x_nchw, (0, 2, 3, 1)).astype(jnp.float32)
        s0, b0 = bn_scale_bias(bn0)
        # conv0 -> bn0 -> relu0 fused into one Pallas conv kernel (post affine+relu)
        x = conv2d_pallas(x, conv0_w, stride=1, padding=1,
                          post_scale=s0, post_bias=b0, post_relu=True)
        for blk in blocks:
            x = blk(x)
        return head_pallas(x, lin_w, lin_b)

    return forward


# ---------------------------------- main --------------------------------------

if __name__ == "__main__":
    # Deterministic architecture choice (the PyTorch module takes these from `config`)
    config = {
        "op_keys": ("bnconv_3", "maxpool_3", "add"),
        "red_op_keys": ("conv_3", "bnconv_1", "add"),
    }
    key = jax.random.PRNGKey(0)
    k_params, k_x = jax.random.split(key)

    forward = build_rnet(k_params, config, block_sizes=(2, 1, 1, 1),
                         init_channels=8, num_classes=10)
    forward_jit = jax.jit(forward)

    # Small CIFAR-like input, NCHW as in the PyTorch reference
    x = jax.random.normal(k_x, (2, 3, 16, 16), jnp.float32)

    logits = forward_jit(x)
    logits = jax.block_until_ready(logits)

    assert logits.shape == (2, 10), logits.shape
    assert bool(jnp.all(jnp.isfinite(logits)))
    print("KERNEL_OK")
</pallas_src>

<mosaic_0001>
module attributes {stable_mosaic.version = 11 : i64} {
  func.func @_conv_mm_kernel(%arg0: i32, %arg1: memref<512x27xf32, #tpu.memory_space<vmem>>, %arg2: memref<27x8xf32, #tpu.memory_space<vmem>>, %arg3: memref<1x27xf32, #tpu.memory_space<vmem>>, %arg4: memref<1x27xf32, #tpu.memory_space<vmem>>, %arg5: memref<1x8xf32, #tpu.memory_space<vmem>>, %arg6: memref<1x8xf32, #tpu.memory_space<vmem>>, %arg7: memref<512x8xf32, #tpu.memory_space<vmem>>) attributes {dimension_semantics = [#tpu.dimension_semantics<parallel>], iteration_bounds = array<i64: 1>, scalar_prefetch = 0 : i64, scratch_operands = 0 : i64, tpu.core_type = #tpu.core_type<tc>, window_params = [{transform_indices = @transform_0, window_bounds = array<i64: 512, 27>}, {pipeline_mode = #tpu.pipeline_mode<synchronous>, transform_indices = @transform_1, window_bounds = array<i64: 27, 8>}, {pipeline_mode = #tpu.pipeline_mode<synchronous>, transform_indices = @transform_2, window_bounds = array<i64: 1, 27>}, {pipeline_mode = #tpu.pipeline_mode<synchronous>, transform_indices = @transform_3, window_bounds = array<i64: 1, 27>}, {pipeline_mode = #tpu.pipeline_mode<synchronous>, transform_indices = @transform_4, window_bounds = array<i64: 1, 8>}, {pipeline_mode = #tpu.pipeline_mode<synchronous>, transform_indices = @transform_5, window_bounds = array<i64: 1, 8>}, {transform_indices = @transform_6, window_bounds = array<i64: 512, 8>}]} {
    %c0 = arith.constant 0 : index
    %c0_0 = arith.constant 0 : index
    %0 = vector.load %arg1[%c0, %c0_0] : memref<512x27xf32, #tpu.memory_space<vmem>>, vector<512x27xf32>
    %c0_1 = arith.constant 0 : index
    %c0_2 = arith.constant 0 : index
    %1 = vector.load %arg2[%c0_1, %c0_2] : memref<27x8xf32, #tpu.memory_space<vmem>>, vector<27x8xf32>
    %cst = arith.constant dense<0.000000e+00> : vector<512x8xf32>
    %2 = tpu.matmul %0, %1, %cst {dimension_numbers = #tpu.dot_dimension_numbers<[1], [0], [0], [1], [0, 0, 1, 1], [], []>} : vector<512x27xf32>, vector<27x8xf32>, vector<512x8xf32> -> vector<512x8xf32>
    %c0_3 = arith.constant 0 : index
    %c0_4 = arith.constant 0 : index
    %3 = vector.load %arg5[%c0_3, %c0_4] : memref<1x8xf32, #tpu.memory_space<vmem>>, vector<1x8xf32>
    %4 = vector.broadcast %3 : vector<1x8xf32> to vector<512x8xf32>
    %5 = arith.mulf %2, %4 : vector<512x8xf32>
    %c0_5 = arith.constant 0 : index
    %c0_6 = arith.constant 0 : index
    %6 = vector.load %arg6[%c0_5, %c0_6] : memref<1x8xf32, #tpu.memory_space<vmem>>, vector<1x8xf32>
    %7 = vector.broadcast %6 : vector<1x8xf32> to vector<512x8xf32>
    %8 = arith.addf %5, %7 : vector<512x8xf32>
    %cst_7 = arith.constant 0.000000e+00 : f32
    %9 = vector.broadcast %cst_7 : f32 to vector<512x8xf32>
    %10 = arith.maximumf %8, %9 : vector<512x8xf32>
    %c0_8 = arith.constant 0 : index
    %c0_9 = arith.constant 0 : index
    %11 = vector.load %arg7[%c0_8, %c0_9] : memref<512x8xf32, #tpu.memory_space<vmem>>, vector<512x8xf32>
    tpu.vector_store %arg7[%c0_8, %c0_9], %10 {strides = array<i32>} : memref<512x8xf32, #tpu.memory_space<vmem>>, vector<512x8xf32>,
    return
  }
  func.func @transform_0(%arg0: i32) -> (i32, i32) {
    %c0_i32 = arith.constant 0 : i32
    %c0_i32_0 = arith.constant 0 : i32
    return %arg0, %c0_i32 : i32, i32
  }
  func.func @transform_1(%arg0: i32) -> (i32, i32) {
    %c0_i32 = arith.constant 0 : i32
    %c0_i32_0 = arith.constant 0 : i32
    %c0_i32_1 = arith.constant 0 : i32
    return %c0_i32, %c0_i32_0 : i32, i32
  }
  func.func @transform_2(%arg0: i32) -> (i32, i32) {
    %c0_i32 = arith.constant 0 : i32
    %c0_i32_0 = arith.constant 0 : i32
    %c0_i32_1 = arith.constant 0 : i32
    return %c0_i32, %c0_i32_0 : i32, i32
  }
  func.func @transform_3(%arg0: i32) -> (i32, i32) {
    %c0_i32 = arith.constant 0 : i32
    %c0_i32_0 = arith.constant 0 : i32
    %c0_i32_1 = arith.constant 0 : i32
    return %c0_i32, %c0_i32_0 : i32, i32
  }
  func.func @transform_4(%arg0: i32) -> (i32, i32) {
    %c0_i32 = arith.constant 0 : i32
    %c0_i32_0 = arith.constant 0 : i32
    %c0_i32_1 = arith.constant 0 : i32
    return %c0_i32, %c0_i32_0 : i32, i32
  }
  func.func @transform_5(%arg0: i32) -> (i32, i32) {
    %c0_i32 = arith.constant 0 : i32
    %c0_i32_0 = arith.constant 0 : i32
    %c0_i32_1 = arith.constant 0 : i32
    return %c0_i32, %c0_i32_0 : i32, i32
  }
  func.func @transform_6(%arg0: i32) -> (i32, i32) {
    %c0_i32 = arith.constant 0 : i32
    %c0_i32_0 = arith.constant 0 : i32
    return %arg0, %c0_i32 : i32, i32
  }
}

module attributes {stable_mosaic.version = 11 : i64} {
  func.func @_pool_kernel(%arg0: i32, %arg1: memref<9x2x2048xf32, #tpu.memory_space<vmem>>, %arg2: memref<2x2048xf32, #tpu.memory_space<vmem>>) attributes {dimension_semantics = [#tpu.dimension_semantics<arbitrary>], iteration_bounds = array<i64: 1>, scalar_prefetch = 0 : i64, scratch_operands = 0 : i64, tpu.core_type = #tpu.core_type<tc>, window_params = [{pipeline_mode = #tpu.pipeline_mode<synchronous>, transform_indices = @transform_0, window_bounds = array<i64: 9, 2, 2048>}, {pipeline_mode = #tpu.pipeline_mode<synchronous>, transform_indices = @transform_1, window_bounds = array<i64: 2, 2048>}]} {
    %c0 = arith.constant 0 : index
    %c0_0 = arith.constant 0 : index
    %c0_1 = arith.constant 0 : index
    %0 = vector.load %arg1[%c0, %c0_0, %c0_1] : memref<9x2x2048xf32, #tpu.memory_space<vmem>>, vector<1x2x2048xf32>
    %1 = vector.shape_cast %0 : vector<1x2x2048xf32> to vector<2x2048xf32>
    %c1 = arith.constant 1 : index
    %c0_2 = arith.constant 0 : index
    %c0_3 = arith.constant 0 : index
    %2 = vector.load %arg1[%c1, %c0_2, %c0_3] : memref<9x2x2048xf32, #tpu.memory_space<vmem>>, vector<1x2x2048xf32>
    %3 = vector.shape_cast %2 : vector<1x2x2048xf32> to vector<2x2048xf32>
    %4 = arith.maximumf %1, %3 : vector<2x2048xf32>
    %c2 = arith.constant 2 : index
    %c0_4 = arith.constant 0 : index
    %c0_5 = arith.constant 0 : index
    %5 = vector.load %arg1[%c2, %c0_4, %c0_5] : memref<9x2x2048xf32, #tpu.memory_space<vmem>>, vector<1x2x2048xf32>
    %6 = vector.shape_cast %5 : vector<1x2x2048xf32> to vector<2x2048xf32>
    %7 = arith.maximumf %4, %6 : vector<2x2048xf32>
    %c3 = arith.constant 3 : index
    %c0_6 = arith.constant 0 : index
    %c0_7 = arith.constant 0 : index
    %8 = vector.load %arg1[%c3, %c0_6, %c0_7] : memref<9x2x2048xf32, #tpu.memory_space<vmem>>, vector<1x2x2048xf32>
    %9 = vector.shape_cast %8 : vector<1x2x2048xf32> to vector<2x2048xf32>
    %10 = arith.maximumf %7, %9 : vector<2x2048xf32>
    %c4 = arith.constant 4 : index
    %c0_8 = arith.constant 0 : index
    %c0_9 = arith.constant 0 : index
    %11 = vector.load %arg1[%c4, %c0_8, %c0_9] : memref<9x2x2048xf32, #tpu.memory_space<vmem>>, vector<1x2x2048xf32>
    %12 = vector.shape_cast %11 : vector<1x2x2048xf32> to vector<2x2048xf32>
    %13 = arith.maximumf %10, %12 : vector<2x2048xf32>
    %c5 = arith.constant 5 : index
    %c0_10 = arith.constant 0 : index
    %c0_11 = arith.constant 0 : index
    %14 = vector.load %arg1[%c5, %c0_10, %c0_11] : memref<9x2x2048xf32, #tpu.memory_space<vmem>>, vector<1x2x2048xf32>
    %15 = vector.shape_cast %14 : vector<1x2x2048xf32> to vector<2x2048xf32>
    %16 = arith.maximumf %13, %15 : vector<2x2048xf32>
    %c6 = arith.constant 6 : index
    %c0_12 = arith.constant 0 : index
    %c0_13 = arith.constant 0 : index
    %17 = vector.load %arg1[%c6, %c0_12, %c0_13] : memref<9x2x2048xf32, #tpu.memory_space<vmem>>, vector<1x2x2048xf32>
    %18 = vector.shape_cast %17 : vector<1x2x2048xf32> to vector<2x2048xf32>
    %19 = arith.maximumf %16, %18 : vector<2x2048xf32>
    %c7 = arith.constant 7 : index
    %c0_14 = arith.constant 0 : index
    %c0_15 = arith.constant 0 : index
    %20 = vector.load %arg1[%c7, %c0_14, %c0_15] : memref<9x2x2048xf32, #tpu.memory_space<vmem>>, vector<1x2x2048xf32>
    %21 = vector.shape_cast %20 : vector<1x2x2048xf32> to vector<2x2048xf32>
    %22 = arith.maximumf %19, %21 : vector<2x2048xf32>
    %c8 = arith.constant 8 : index
    %c0_16 = arith.constant 0 : index
    %c0_17 = arith.constant 0 : index
    %23 = vector.load %arg1[%c8, %c0_16, %c0_17] : memref<9x2x2048xf32, #tpu.memory_space<vmem>>, vector<1x2x2048xf32>
    %24 = vector.shape_cast %23 : vector<1x2x2048xf32> to vector<2x2048xf32>
    %25 = arith.maximumf %22, %24 : vector<2x2048xf32>
    %c0_18 = arith.constant 0 : index
    %c0_19 = arith.constant 0 : index
    %26 = vector.load %arg2[%c0_18, %c0_19] : memref<2x2048xf32, #tpu.memory_space<vmem>>, vector<2x2048xf32>
    tpu.vector_store %arg2[%c0_18, %c0_19], %25 {strides = array<i32>} : memref<2x2048xf32, #tpu.memory_space<vmem>>, vector<2x2048xf32>,
    return
  }
  func.func @transform_0(%arg0: i32) -> (i32, i32, i32) {
    %c0_i32 = arith.constant 0 : i32
    %c0_i32_0 = arith.constant 0 : i32
    %c0_i32_1 = arith.constant 0 : i32
    %c0_i32_2 = arith.constant 0 : i32
    return %c0_i32, %c0_i32_0, %c0_i32_1 : i32, i32, i32
  }
  func.func @transform_1(%arg0: i32) -> (i32, i32) {
    %c0_i32 = arith.constant 0 : i32
    %c0_i32_0 = arith.constant 0 : i32
    %c0_i32_1 = arith.constant 0 : i32
    return %c0_i32, %c0_i32_0 : i32, i32
  }
}

module attributes {stable_mosaic.version = 11 : i64} {
  func.func @_conv_mm_kernel(%arg0: i32, %arg1: memref<512x72xf32, #tpu.memory_space<vmem>>, %arg2: memref<72x8xf32, #tpu.memory_space<vmem>>, %arg3: memref<1x72xf32, #tpu.memory_space<vmem>>, %arg4: memref<1x72xf32, #tpu.memory_space<vmem>>, %arg5: memref<1x8xf32, #tpu.memory_space<vmem>>, %arg6: memref<1x8xf32, #tpu.memory_space<vmem>>, %arg7: memref<512x8xf32, #tpu.memory_space<vmem>>, %arg8: memref<512x8xf32, #tpu.memory_space<vmem>>) attributes {dimension_semantics = [#tpu.dimension_semantics<parallel>], iteration_bounds = array<i64: 1>, scalar_prefetch = 0 : i64, scratch_operands = 0 : i64, tpu.core_type = #tpu.core_type<tc>, window_params = [{transform_indices = @transform_0, window_bounds = array<i64: 512, 72>}, {pipeline_mode = #tpu.pipeline_mode<synchronous>, transform_indices = @transform_1, window_bounds = array<i64: 72, 8>}, {pipeline_mode = #tpu.pipeline_mode<synchronous>, transform_indices = @transform_2, window_bounds = array<i64: 1, 72>}, {pipeline_mode = #tpu.pipeline_mode<synchronous>, transform_indices = @transform_3, window_bounds = array<i64: 1, 72>}, {pipeline_mode = #tpu.pipeline_mode<synchronous>, transform_indices = @transform_4, window_bounds = array<i64: 1, 8>}, {pipeline_mode = #tpu.pipeline_mode<synchronous>, transform_indices = @transform_5, window_bounds = array<i64: 1, 8>}, {transform_indices = @transform_6, window_bounds = array<i64: 512, 8>}, {transform_indices = @transform_7, window_bounds = array<i64: 512, 8>}]} {
    %c0 = arith.constant 0 : index
    %c0_0 = arith.constant 0 : index
    %0 = vector.load %arg1[%c0, %c0_0] : memref<512x72xf32, #tpu.memory_space<vmem>>, vector<512x72xf32>
    %c0_1 = arith.constant 0 : index
    %c0_2 = arith.constant 0 : index
    %1 = vector.load %arg3[%c0_1, %c0_2] : memref<1x72xf32, #tpu.memory_space<vmem>>, vector<1x72xf32>
    %2 = vector.broadcast %1 : vector<1x72xf32> to vector<512x72xf32>
    %3 = arith.mulf %0, %2 : vector<512x72xf32>
    %c0_3 = arith.constant 0 : index
    %c0_4 = arith.constant 0 : index
    %4 = vector.load %arg4[%c0_3, %c0_4] : memref<1x72xf32, #tpu.memory_space<vmem>>, vector<1x72xf32>
    %5 = vector.broadcast %4 : vector<1x72xf32> to vector<512x72xf32>
    %6 = arith.addf %3, %5 : vector<512x72xf32>
    %cst = arith.constant 0.000000e+00 : f32
    %7 = vector.broadcast %cst : f32 to vector<512x72xf32>
    %8 = arith.maximumf %6, %7 : vector<512x72xf32>
    %c0_5 = arith.constant 0 : index
    %c0_6 = arith.constant 0 : index
    %9 = vector.load %arg2[%c0_5, %c0_6] : memref<72x8xf32, #tpu.memory_space<vmem>>, vector<72x8xf32>
    %cst_7 = arith.constant dense<0.000000e+00> : vector<512x8xf32>
    %10 = tpu.matmul %8, %9, %cst_7 {dimension_numbers = #tpu.dot_dimension_numbers<[1], [0], [0], [1], [0, 0, 1, 1], [], []>} : vector<512x72xf32>, vector<72x8xf32>, vector<512x8xf32> -> vector<512x8xf32>
    %c0_8 = arith.constant 0 : index
    %c0_9 = arith.constant 0 : index
    %11 = vector.load %arg7[%c0_8, %c0_9] : memref<512x8xf32, #tpu.memory_space<vmem>>, vector<512x8xf32>
    %12 = arith.addf %10, %11 : vector<512x8xf32>
    %c0_10 = arith.constant 0 : index
    %c0_11 = arith.constant 0 : index
    %13 = vector.load %arg8[%c0_10, %c0_11] : memref<512x8xf32, #tpu.memory_space<vmem>>, vector<512x8xf32>
    tpu.vector_store %arg8[%c0_10, %c0_11], %12 {strides = array<i32>} : memref<512x8xf32, #tpu.memory_space<vmem>>, vector<512x8xf32>,
    return
  }
  func.func @transform_0(%arg0: i32) -> (i32, i32) {
    %c0_i32 = arith.constant 0 : i32
    %c0_i32_0 = arith.constant 0 : i32
    return %arg0, %c0_i32 : i32, i32
  }
  func.func @transform_1(%arg0: i32) -> (i32, i32) {
    %c0_i32 = arith.constant 0 : i32
    %c0_i32_0 = arith.constant 0 : i32
    %c0_i32_1 = arith.constant 0 : i32
    return %c0_i32, %c0_i32_0 : i32, i32
  }
  func.func @transform_2(%arg0: i32) -> (i32, i32) {
    %c0_i32 = arith.constant 0 : i32
    %c0_i32_0 = arith.constant 0 : i32
    %c0_i32_1 = arith.constant 0 : i32
    return %c0_i32, %c0_i32_0 : i32, i32
  }
  func.func @transform_3(%arg0: i32) -> (i32, i32) {
    %c0_i32 = arith.constant 0 : i32
    %c0_i32_0 = arith.constant 0 : i32
    %c0_i32_1 = arith.constant 0 : i32
    return %c0_i32, %c0_i32_0 : i32, i32
  }
  func.func @transform_4(%arg0: i32) -> (i32, i32) {
    %c0_i32 = arith.constant 0 : i32
    %c0_i32_0 = arith.constant 0 : i32
    %c0_i32_1 = arith.constant 0 : i32
    return %c0_i32, %c0_i32_0 : i32, i32
  }
  func.func @transform_5(%arg0: i32) -> (i32, i32) {
    %c0_i32 = arith.constant 0 : i32
    %c0_i32_0 = arith.constant 0 : i32
    %c0_i32_1 = arith.constant 0 : i32
    return %c0_i32, %c0_i32_0 : i32, i32
  }
  func.func @transform_6(%arg0: i32) -> (i32, i32) {
    %c0_i32 = arith.constant 0 : i32
    %c0_i32_0 = arith.constant 0 : i32
    return %arg0, %c0_i32 : i32, i32
  }
  func.func @transform_7(%arg0: i32) -> (i32, i32) {
    %c0_i32 = arith.constant 0 : i32
    %c0_i32_0 = arith.constant 0 : i32
    return %arg0, %c0_i32 : i32, i32
  }
}

module attributes {stable_mosaic.version = 11 : i64} {
  func.func @_conv_mm_kernel(%arg0: i32, %arg1: memref<128x72xf32, #tpu.memory_space<vmem>>, %arg2: memref<72x16xf32, #tpu.memory_space<vmem>>, %arg3: memref<1x72xf32, #tpu.memory_space<vmem>>, %arg4: memref<1x72xf32, #tpu.memory_space<vmem>>, %arg5: memref<1x16xf32, #tpu.memory_space<vmem>>, %arg6: memref<1x16xf32, #tpu.memory_space<vmem>>, %arg7: memref<128x16xf32, #tpu.memory_space<vmem>>, %arg8: memref<128x16xf32, #tpu.memory_space<vmem>>) attributes {dimension_semantics = [#tpu.dimension_semantics<parallel>], iteration_bounds = array<i64: 1>, scalar_prefetch = 0 : i64, scratch_operands = 0 : i64, tpu.core_type = #tpu.core_type<tc>, window_params = [{transform_indices = @transform_0, window_bounds = array<i64: 128, 72>}, {pipeline_mode = #tpu.pipeline_mode<synchronous>, transform_indices = @transform_1, window_bounds = array<i64: 72, 16>}, {pipeline_mode = #tpu.pipeline_mode<synchronous>, transform_indices = @transform_2, window_bounds = array<i64: 1, 72>}, {pipeline_mode = #tpu.pipeline_mode<synchronous>, transform_indices = @transform_3, window_bounds = array<i64: 1, 72>}, {pipeline_mode = #tpu.pipeline_mode<synchronous>, transform_indices = @transform_4, window_bounds = array<i64: 1, 16>}, {pipeline_mode = #tpu.pipeline_mode<synchronous>, transform_indices = @transform_5, window_bounds = array<i64: 1, 16>}, {transform_indices = @transform_6, window_bounds = array<i64: 128, 16>}, {transform_indices = @transform_7, window_bounds = array<i64: 128, 16>}]} {
    %c0 = arith.constant 0 : index
    %c0_0 = arith.constant 0 : index
    %0 = vector.load %arg1[%c0, %c0_0] : memref<128x72xf32, #tpu.memory_space<vmem>>, vector<128x72xf32>
    %c0_1 = arith.constant 0 : index
    %c0_2 = arith.constant 0 : index
    %1 = vector.load %arg2[%c0_1, %c0_2] : memref<72x16xf32, #tpu.memory_space<vmem>>, vector<72x16xf32>
    %cst = arith.constant dense<0.000000e+00> : vector<128x16xf32>
    %2 = tpu.matmul %0, %1, %cst {dimension_numbers = #tpu.dot_dimension_numbers<[1], [0], [0], [1], [0, 0, 1, 1], [], []>} : vector<128x72xf32>, vector<72x16xf32>, vector<128x16xf32> -> vector<128x16xf32>
    %c0_3 = arith.constant 0 : index
    %c0_4 = arith.constant 0 : index
    %3 = vector.load %arg7[%c0_3, %c0_4] : memref<128x16xf32, #tpu.memory_space<vmem>>, vector<128x16xf32>
    %4 = arith.addf %2, %3 : vector<128x16xf32>
    %c0_5 = arith.constant 0 : index
    %c0_6 = arith.constant 0 : index
    %5 = vector.load %arg8[%c0_5, %c0_6] : memref<128x16xf32, #tpu.memory_space<vmem>>, vector<128x16xf32>
    tpu.vector_store %arg8[%c0_5, %c0_6], %4 {strides = array<i32>} : memref<128x16xf32, #tpu.memory_space<vmem>>, vector<128x16xf32>,
    return
  }
  func.func @transform_0(%arg0: i32) -> (i32, i32) {
    %c0_i32 = arith.constant 0 : i32
    %c0_i32_0 = arith.constant 0 : i32
    return %arg0, %c0_i32 : i32, i32
  }
  func.func @transform_1(%arg0: i32) -> (i32, i32) {
    %c0_i32 = arith.constant 0 : i32
    %c0_i32_0 = arith.constant 0 : i32
    %c0_i32_1 = arith.constant 0 : i32
    return %c0_i32, %c0_i32_0 : i32, i32
  }
  func.func @transform_2(%arg0: i32) -> (i32, i32) {
    %c0_i32 = arith.constant 0 : i32
    %c0_i32_0 = arith.constant 0 : i32
    %c0_i32_1 = arith.constant 0 : i32
    return %c0_i32, %c0_i32_0 : i32, i32
  }
  func.func @transform_3(%arg0: i32) -> (i32, i32) {
    %c0_i32 = arith.constant 0 : i32
    %c0_i32_0 = arith.constant 0 : i32
    %c0_i32_1 = arith.constant 0 : i32
    return %c0_i32, %c0_i32_0 : i32, i32
  }
  func.func @transform_4(%arg0: i32) -> (i32, i32) {
    %c0_i32 = arith.constant 0 : i32
    %c0_i32_0 = arith.constant 0 : i32
    %c0_i32_1 = arith.constant 0 : i32
    return %c0_i32, %c0_i32_0 : i32, i32
  }
  func.func @transform_5(%arg0: i32) -> (i32, i32) {
    %c0_i32 = arith.constant 0 : i32
    %c0_i32_0 = arith.constant 0 : i32
    %c0_i32_1 = arith.constant 0 : i32
    return %c0_i32, %c0_i32_0 : i32, i32
  }
  func.func @transform_6(%arg0: i32) -> (i32, i32) {
    %c0_i32 = arith.constant 0 : i32
    %c0_i32_0 = arith.constant 0 : i32
    return %arg0, %c0_i32 : i32, i32
  }
  func.func @transform_7(%arg0: i32) -> (i32, i32) {
    %c0_i32 = arith.constant 0 : i32
    %c0_i32_0 = arith.constant 0 : i32
    return %arg0, %c0_i32 : i32, i32
  }
}

module attributes {stable_mosaic.version = 11 : i64} {
  func.func @_conv_mm_kernel(%arg0: i32, %arg1: memref<128x8xf32, #tpu.memory_space<vmem>>, %arg2: memref<8x16xf32, #tpu.memory_space<vmem>>, %arg3: memref<1x8xf32, #tpu.memory_space<vmem>>, %arg4: memref<1x8xf32, #tpu.memory_space<vmem>>, %arg5: memref<1x16xf32, #tpu.memory_space<vmem>>, %arg6: memref<1x16xf32, #tpu.memory_space<vmem>>, %arg7: memref<128x16xf32, #tpu.memory_space<vmem>>) attributes {dimension_semantics = [#tpu.dimension_semantics<parallel>], iteration_bounds = array<i64: 1>, scalar_prefetch = 0 : i64, scratch_operands = 0 : i64, tpu.core_type = #tpu.core_type<tc>, window_params = [{transform_indices = @transform_0, window_bounds = array<i64: 128, 8>}, {pipeline_mode = #tpu.pipeline_mode<synchronous>, transform_indices = @transform_1, window_bounds = array<i64: 8, 16>}, {pipeline_mode = #tpu.pipeline_mode<synchronous>, transform_indices = @transform_2, window_bounds = array<i64: 1, 8>}, {pipeline_mode = #tpu.pipeline_mode<synchronous>, transform_indices = @transform_3, window_bounds = array<i64: 1, 8>}, {pipeline_mode = #tpu.pipeline_mode<synchronous>, transform_indices = @transform_4, window_bounds = array<i64: 1, 16>}, {pipeline_mode = #tpu.pipeline_mode<synchronous>, transform_indices = @transform_5, window_bounds = array<i64: 1, 16>}, {transform_indices = @transform_6, window_bounds = array<i64: 128, 16>}]} {
    %c0 = arith.constant 0 : index
    %c0_0 = arith.constant 0 : index
    %0 = vector.load %arg1[%c0, %c0_0] : memref<128x8xf32, #tpu.memory_space<vmem>>, vector<128x8xf32>
    %c0_1 = arith.constant 0 : index
    %c0_2 = arith.constant 0 : index
    %1 = vector.load %arg3[%c0_1, %c0_2] : memref<1x8xf32, #tpu.memory_space<vmem>>, vector<1x8xf32>
    %2 = vector.broadcast %1 : vector<1x8xf32> to vector<128x8xf32>
    %3 = arith.mulf %0, %2 : vector<128x8xf32>
    %c0_3 = arith.constant 0 : index
    %c0_4 = arith.constant 0 : index
    %4 = vector.load %arg4[%c0_3, %c0_4] : memref<1x8xf32, #tpu.memory_space<vmem>>, vector<1x8xf32>
    %5 = vector.broadcast %4 : vector<1x8xf32> to vector<128x8xf32>
    %6 = arith.addf %3, %5 : vector<128x8xf32>
    %cst = arith.constant 0.000000e+00 : f32
    %7 = vector.broadcast %cst : f32 to vector<128x8xf32>
    %8 = arith.maximumf %6, %7 : vector<128x8xf32>
    %c0_5 = arith.constant 0 : index
    %c0_6 = arith.constant 0 : index
    %9 = vector.load %arg2[%c0_5, %c0_6] : memref<8x16xf32, #tpu.memory_space<vmem>>, vector<8x16xf32>
    %cst_7 = arith.constant dense<0.000000e+00> : vector<128x16xf32>
    %10 = tpu.matmul %8, %9, %cst_7 {dimension_numbers = #tpu.dot_dimension_numbers<[1], [0], [0], [1], [0, 0, 1, 1], [], []>} : vector<128x8xf32>, vector<8x16xf32>, vector<128x16xf32> -> vector<128x16xf32>
    %c0_8 = arith.constant 0 : index
    %c0_9 = arith.constant 0 : index
    %11 = vector.load %arg7[%c0_8, %c0_9] : memref<128x16xf32, #tpu.memory_space<vmem>>, vector<128x16xf32>
    tpu.vector_store %arg7[%c0_8, %c0_9], %10 {strides = array<i32>} : memref<128x16xf32, #tpu.memory_space<vmem>>, vector<128x16xf32>,
    return
  }
  func.func @transform_0(%arg0: i32) -> (i32, i32) {
    %c0_i32 = arith.constant 0 : i32
    %c0_i32_0 = arith.constant 0 : i32
    return %arg0, %c0_i32 : i32, i32
  }
  func.func @transform_1(%arg0: i32) -> (i32, i32) {
    %c0_i32 = arith.constant 0 : i32
    %c0_i32_0 = arith.constant 0 : i32
    %c0_i32_1 = arith.constant 0 : i32
    return %c0_i32, %c0_i32_0 : i32, i32
  }
  func.func @transform_2(%arg0: i32) -> (i32, i32) {
    %c0_i32 = arith.constant 0 : i32
    %c0_i32_0 = arith.constant 0 : i32
    %c0_i32_1 = arith.constant 0 : i32
    return %c0_i32, %c0_i32_0 : i32, i32
  }
  func.func @transform_3(%arg0: i32) -> (i32, i32) {
    %c0_i32 = arith.constant 0 : i32
    %c0_i32_0 = arith.constant 0 : i32
    %c0_i32_1 = arith.constant 0 : i32
    return %c0_i32, %c0_i32_0 : i32, i32
  }
  func.func @transform_4(%arg0: i32) -> (i32, i32) {
    %c0_i32 = arith.constant 0 : i32
    %c0_i32_0 = arith.constant 0 : i32
    %c0_i32_1 = arith.constant 0 : i32
    return %c0_i32, %c0_i32_0 : i32, i32
  }
  func.func @transform_5(%arg0: i32) -> (i32, i32) {
    %c0_i32 = arith.constant 0 : i32
    %c0_i32_0 = arith.constant 0 : i32
    %c0_i32_1 = arith.constant 0 : i32
    return %c0_i32, %c0_i32_0 : i32, i32
  }
  func.func @transform_6(%arg0: i32) -> (i32, i32) {
    %c0_i32 = arith.constant 0 : i32
    %c0_i32_0 = arith.constant 0 : i32
    return %arg0, %c0_i32 : i32, i32
  }
}

module attributes {stable_mosaic.version = 11 : i64} {
  func.func @_pool_kernel(%arg0: i32, %arg1: memref<9x2x1024xf32, #tpu.memory_space<vmem>>, %arg2: memref<2x1024xf32, #tpu.memory_space<vmem>>) attributes {dimension_semantics = [#tpu.dimension_semantics<arbitrary>], iteration_bounds = array<i64: 1>, scalar_prefetch = 0 : i64, scratch_operands = 0 : i64, tpu.core_type = #tpu.core_type<tc>, window_params = [{pipeline_mode = #tpu.pipeline_mode<synchronous>, transform_indices = @transform_0, window_bounds = array<i64: 9, 2, 1024>}, {pipeline_mode = #tpu.pipeline_mode<synchronous>, transform_indices = @transform_1, window_bounds = array<i64: 2, 1024>}]} {
    %c0 = arith.constant 0 : index
    %c0_0 = arith.constant 0 : index
    %c0_1 = arith.constant 0 : index
    %0 = vector.load %arg1[%c0, %c0_0, %c0_1] : memref<9x2x1024xf32, #tpu.memory_space<vmem>>, vector<1x2x1024xf32>
    %1 = vector.shape_cast %0 : vector<1x2x1024xf32> to vector<2x1024xf32>
    %c1 = arith.constant 1 : index
    %c0_2 = arith.constant 0 : index
    %c0_3 = arith.constant 0 : index
    %2 = vector.load %arg1[%c1, %c0_2, %c0_3] : memref<9x2x1024xf32, #tpu.memory_space<vmem>>, vector<1x2x1024xf32>
    %3 = vector.shape_cast %2 : vector<1x2x1024xf32> to vector<2x1024xf32>
    %4 = arith.maximumf %1, %3 : vector<2x1024xf32>
    %c2 = arith.constant 2 : index
    %c0_4 = arith.constant 0 : index
    %c0_5 = arith.constant 0 : index
    %5 = vector.load %arg1[%c2, %c0_4, %c0_5] : memref<9x2x1024xf32, #tpu.memory_space<vmem>>, vector<1x2x1024xf32>
    %6 = vector.shape_cast %5 : vector<1x2x1024xf32> to vector<2x1024xf32>
    %7 = arith.maximumf %4, %6 : vector<2x1024xf32>
    %c3 = arith.constant 3 : index
    %c0_6 = arith.constant 0 : index
    %c0_7 = arith.constant 0 : index
    %8 = vector.load %arg1[%c3, %c0_6, %c0_7] : memref<9x2x1024xf32, #tpu.memory_space<vmem>>, vector<1x2x1024xf32>
    %9 = vector.shape_cast %8 : vector<1x2x1024xf32> to vector<2x1024xf32>
    %10 = arith.maximumf %7, %9 : vector<2x1024xf32>
    %c4 = arith.constant 4 : index
    %c0_8 = arith.constant 0 : index
    %c0_9 = arith.constant 0 : index
    %11 = vector.load %arg1[%c4, %c0_8, %c0_9] : memref<9x2x1024xf32, #tpu.memory_space<vmem>>, vector<1x2x1024xf32>
    %12 = vector.shape_cast %11 : vector<1x2x1024xf32> to vector<2x1024xf32>
    %13 = arith.maximumf %10, %12 : vector<2x1024xf32>
    %c5 = arith.constant 5 : index
    %c0_10 = arith.constant 0 : index
    %c0_11 = arith.constant 0 : index
    %14 = vector.load %arg1[%c5, %c0_10, %c0_11] : memref<9x2x1024xf32, #tpu.memory_space<vmem>>, vector<1x2x1024xf32>
    %15 = vector.shape_cast %14 : vector<1x2x1024xf32> to vector<2x1024xf32>
    %16 = arith.maximumf %13, %15 : vector<2x1024xf32>
    %c6 = arith.constant 6 : index
    %c0_12 = arith.constant 0 : index
    %c0_13 = arith.constant 0 : index
    %17 = vector.load %arg1[%c6, %c0_12, %c0_13] : memref<9x2x1024xf32, #tpu.memory_space<vmem>>, vector<1x2x1024xf32>
    %18 = vector.shape_cast %17 : vector<1x2x1024xf32> to vector<2x1024xf32>
    %19 = arith.maximumf %16, %18 : vector<2x1024xf32>
    %c7 = arith.constant 7 : index
    %c0_14 = arith.constant 0 : index
    %c0_15 = arith.constant 0 : index
    %20 = vector.load %arg1[%c7, %c0_14, %c0_15] : memref<9x2x1024xf32, #tpu.memory_space<vmem>>, vector<1x2x1024xf32>
    %21 = vector.shape_cast %20 : vector<1x2x1024xf32> to vector<2x1024xf32>
    %22 = arith.maximumf %19, %21 : vector<2x1024xf32>
    %c8 = arith.constant 8 : index
    %c0_16 = arith.constant 0 : index
    %c0_17 = arith.constant 0 : index
    %23 = vector.load %arg1[%c8, %c0_16, %c0_17] : memref<9x2x1024xf32, #tpu.memory_space<vmem>>, vector<1x2x1024xf32>
    %24 = vector.shape_cast %23 : vector<1x2x1024xf32> to vector<2x1024xf32>
    %25 = arith.maximumf %22, %24 : vector<2x1024xf32>
    %c0_18 = arith.constant 0 : index
    %c0_19 = arith.constant 0 : index
    %26 = vector.load %arg2[%c0_18, %c0_19] : memref<2x1024xf32, #tpu.memory_space<vmem>>, vector<2x1024xf32>
    tpu.vector_store %arg2[%c0_18, %c0_19], %25 {strides = array<i32>} : memref<2x1024xf32, #tpu.memory_space<vmem>>, vector<2x1024xf32>,
    return
  }
  func.func @transform_0(%arg0: i32) -> (i32, i32, i32) {
    %c0_i32 = arith.constant 0 : i32
    %c0_i32_0 = arith.constant 0 : i32
    %c0_i32_1 = arith.constant 0 : i32
    %c0_i32_2 = arith.constant 0 : i32
    return %c0_i32, %c0_i32_0, %c0_i32_1 : i32, i32, i32
  }
  func.func @transform_1(%arg0: i32) -> (i32, i32) {
    %c0_i32 = arith.constant 0 : i32
    %c0_i32_0 = arith.constant 0 : i32
    %c0_i32_1 = arith.constant 0 : i32
    return %c0_i32, %c0_i32_0 : i32, i32
  }
}

module attributes {stable_mosaic.version = 11 : i64} {
  func.func @_conv_mm_kernel(%arg0: i32, %arg1: memref<128x144xf32, #tpu.memory_space<vmem>>, %arg2: memref<144x16xf32, #tpu.memory_space<vmem>>, %arg3: memref<1x144xf32, #tpu.memory_space<vmem>>, %arg4: memref<1x144xf32, #tpu.memory_space<vmem>>, %arg5: memref<1x16xf32, #tpu.memory_space<vmem>>, %arg6: memref<1x16xf32, #tpu.memory_space<vmem>>, %arg7: memref<128x16xf32, #tpu.memory_space<vmem>>, %arg8: memref<128x16xf32, #tpu.memory_space<vmem>>) attributes {dimension_semantics = [#tpu.dimension_semantics<parallel>], iteration_bounds = array<i64: 1>, scalar_prefetch = 0 : i64, scratch_operands = 0 : i64, tpu.core_type = #tpu.core_type<tc>, window_params = [{transform_indices = @transform_0, window_bounds = array<i64: 128, 144>}, {pipeline_mode = #tpu.pipeline_mode<synchronous>, transform_indices = @transform_1, window_bounds = array<i64: 144, 16>}, {pipeline_mode = #tpu.pipeline_mode<synchronous>, transform_indices = @transform_2, window_bounds = array<i64: 1, 144>}, {pipeline_mode = #tpu.pipeline_mode<synchronous>, transform_indices = @transform_3, window_bounds = array<i64: 1, 144>}, {pipeline_mode = #tpu.pipeline_mode<synchronous>, transform_indices = @transform_4, window_bounds = array<i64: 1, 16>}, {pipeline_mode = #tpu.pipeline_mode<synchronous>, transform_indices = @transform_5, window_bounds = array<i64: 1, 16>}, {transform_indices = @transform_6, window_bounds = array<i64: 128, 16>}, {transform_indices = @transform_7, window_bounds = array<i64: 128, 16>}]} {
    %c0 = arith.constant 0 : index
    %c0_0 = arith.constant 0 : index
    %0 = vector.load %arg1[%c0, %c0_0] : memref<128x144xf32, #tpu.memory_space<vmem>>, vector<128x144xf32>
    %c0_1 = arith.constant 0 : index
    %c0_2 = arith.constant 0 : index
    %1 = vector.load %arg3[%c0_1, %c0_2] : memref<1x144xf32, #tpu.memory_space<vmem>>, vector<1x144xf32>
    %2 = vector.broadcast %1 : vector<1x144xf32> to vector<128x144xf32>
    %3 = arith.mulf %0, %2 : vector<128x144xf32>
    %c0_3 = arith.constant 0 : index
    %c0_4 = arith.constant 0 : index
    %4 = vector.load %arg4[%c0_3, %c0_4] : memref<1x144xf32, #tpu.memory_space<vmem>>, vector<1x144xf32>
    %5 = vector.broadcast %4 : vector<1x144xf32> to vector<128x144xf32>
    %6 = arith.addf %3, %5 : vector<128x144xf32>
    %cst = arith.constant 0.000000e+00 : f32
    %7 = vector.broadcast %cst : f32 to vector<128x144xf32>
    %8 = arith.maximumf %6, %7 : vector<128x144xf32>
    %c0_5 = arith.constant 0 : index
    %c0_6 = arith.constant 0 : index
    %9 = vector.load %arg2[%c0_5, %c0_6] : memref<144x16xf32, #tpu.memory_space<vmem>>, vector<144x16xf32>
    %cst_7 = arith.constant dense<0.000000e+00> : vector<128x16xf32>
    %10 = tpu.matmul %8, %9, %cst_7 {dimension_numbers = #tpu.dot_dimension_numbers<[1], [0], [0], [1], [0, 0, 1, 1], [], []>} : vector<128x144xf32>, vector<144x16xf32>, vector<128x16xf32> -> vector<128x16xf32>
    %c0_8 = arith.constant 0 : index
    %c0_9 = arith.constant 0 : index
    %11 = vector.load %arg7[%c0_8, %c0_9] : memref<128x16xf32, #tpu.memory_space<vmem>>, vector<128x16xf32>
    %12 = arith.addf %10, %11 : vector<128x16xf32>
    %c0_10 = arith.constant 0 : index
    %c0_11 = arith.constant 0 : index
    %13 = vector.load %arg8[%c0_10, %c0_11] : memref<128x16xf32, #tpu.memory_space<vmem>>, vector<128x16xf32>
    tpu.vector_store %arg8[%c0_10, %c0_11], %12 {strides = array<i32>} : memref<128x16xf32, #tpu.memory_space<vmem>>, vector<128x16xf32>,
    return
  }
  func.func @transform_0(%arg0: i32) -> (i32, i32) {
    %c0_i32 = arith.constant 0 : i32
    %c0_i32_0 = arith.constant 0 : i32
    return %arg0, %c0_i32 : i32, i32
  }
  func.func @transform_1(%arg0: i32) -> (i32, i32) {
    %c0_i32 = arith.constant 0 : i32
    %c0_i32_0 = arith.constant 0 : i32
    %c0_i32_1 = arith.constant 0 : i32
    return %c0_i32, %c0_i32_0 : i32, i32
  }
  func.func @transform_2(%arg0: i32) -> (i32, i32) {
    %c0_i32 = arith.constant 0 : i32
    %c0_i32_0 = arith.constant 0 : i32
    %c0_i32_1 = arith.constant 0 : i32
    return %c0_i32, %c0_i32_0 : i32, i32
  }
  func.func @transform_3(%arg0: i32) -> (i32, i32) {
    %c0_i32 = arith.constant 0 : i32
    %c0_i32_0 = arith.constant 0 : i32
    %c0_i32_1 = arith.constant 0 : i32
    return %c0_i32, %c0_i32_0 : i32, i32
  }
  func.func @transform_4(%arg0: i32) -> (i32, i32) {
    %c0_i32 = arith.constant 0 : i32
    %c0_i32_0 = arith.constant 0 : i32
    %c0_i32_1 = arith.constant 0 : i32
    return %c0_i32, %c0_i32_0 : i32, i32
  }
  func.func @transform_5(%arg0: i32) -> (i32, i32) {
    %c0_i32 = arith.constant 0 : i32
    %c0_i32_0 = arith.constant 0 : i32
    %c0_i32_1 = arith.constant 0 : i32
    return %c0_i32, %c0_i32_0 : i32, i32
  }
  func.func @transform_6(%arg0: i32) -> (i32, i32) {
    %c0_i32 = arith.constant 0 : i32
    %c0_i32_0 = arith.constant 0 : i32
    return %arg0, %c0_i32 : i32, i32
  }
  func.func @transform_7(%arg0: i32) -> (i32, i32) {
    %c0_i32 = arith.constant 0 : i32
    %c0_i32_0 = arith.constant 0 : i32
    return %arg0, %c0_i32 : i32, i32
  }
}

module attributes {stable_mosaic.version = 11 : i64} {
  func.func @_conv_mm_kernel(%arg0: i32, %arg1: memref<32x144xf32, #tpu.memory_space<vmem>>, %arg2: memref<144x32xf32, #tpu.memory_space<vmem>>, %arg3: memref<1x144xf32, #tpu.memory_space<vmem>>, %arg4: memref<1x144xf32, #tpu.memory_space<vmem>>, %arg5: memref<1x32xf32, #tpu.memory_space<vmem>>, %arg6: memref<1x32xf32, #tpu.memory_space<vmem>>, %arg7: memref<32x32xf32, #tpu.memory_space<vmem>>, %arg8: memref<32x32xf32, #tpu.memory_space<vmem>>) attributes {dimension_semantics = [#tpu.dimension_semantics<parallel>], iteration_bounds = array<i64: 1>, scalar_prefetch = 0 : i64, scratch_operands = 0 : i64, tpu.core_type = #tpu.core_type<tc>, window_params = [{transform_indices = @transform_0, window_bounds = array<i64: 32, 144>}, {pipeline_mode = #tpu.pipeline_mode<synchronous>, transform_indices = @transform_1, window_bounds = array<i64: 144, 32>}, {pipeline_mode = #tpu.pipeline_mode<synchronous>, transform_indices = @transform_2, window_bounds = array<i64: 1, 144>}, {pipeline_mode = #tpu.pipeline_mode<synchronous>, transform_indices = @transform_3, window_bounds = array<i64: 1, 144>}, {pipeline_mode = #tpu.pipeline_mode<synchronous>, transform_indices = @transform_4, window_bounds = array<i64: 1, 32>}, {pipeline_mode = #tpu.pipeline_mode<synchronous>, transform_indices = @transform_5, window_bounds = array<i64: 1, 32>}, {transform_indices = @transform_6, window_bounds = array<i64: 32, 32>}, {transform_indices = @transform_7, window_bounds = array<i64: 32, 32>}]} {
    %c0 = arith.constant 0 : index
    %c0_0 = arith.constant 0 : index
    %0 = vector.load %arg1[%c0, %c0_0] : memref<32x144xf32, #tpu.memory_space<vmem>>, vector<32x144xf32>
    %c0_1 = arith.constant 0 : index
    %c0_2 = arith.constant 0 : index
    %1 = vector.load %arg2[%c0_1, %c0_2] : memref<144x32xf32, #tpu.memory_space<vmem>>, vector<144x32xf32>
    %cst = arith.constant dense<0.000000e+00> : vector<32x32xf32>
    %2 = tpu.matmul %0, %1, %cst {dimension_numbers = #tpu.dot_dimension_numbers<[1], [0], [0], [1], [0, 0, 1, 1], [], []>} : vector<32x144xf32>, vector<144x32xf32>, vector<32x32xf32> -> vector<32x32xf32>
    %c0_3 = arith.constant 0 : index
    %c0_4 = arith.constant 0 : index
    %3 = vector.load %arg7[%c0_3, %c0_4] : memref<32x32xf32, #tpu.memory_space<vmem>>, vector<32x32xf32>
    %4 = arith.addf %2, %3 : vector<32x32xf32>
    %c0_5 = arith.constant 0 : index
    %c0_6 = arith.constant 0 : index
    %5 = vector.load %arg8[%c0_5, %c0_6] : memref<32x32xf32, #tpu.memory_space<vmem>>, vector<32x32xf32>
    tpu.vector_store %arg8[%c0_5, %c0_6], %4 {strides = array<i32>} : memref<32x32xf32, #tpu.memory_space<vmem>>, vector<32x32xf32>,
    return
  }
  func.func @transform_0(%arg0: i32) -> (i32, i32) {
    %c0_i32 = arith.constant 0 : i32
    %c0_i32_0 = arith.constant 0 : i32
    return %arg0, %c0_i32 : i32, i32
  }
  func.func @transform_1(%arg0: i32) -> (i32, i32) {
    %c0_i32 = arith.constant 0 : i32
    %c0_i32_0 = arith.constant 0 : i32
    %c0_i32_1 = arith.constant 0 : i32
    return %c0_i32, %c0_i32_0 : i32, i32
  }
  func.func @transform_2(%arg0: i32) -> (i32, i32) {
    %c0_i32 = arith.constant 0 : i32
    %c0_i32_0 = arith.constant 0 : i32
    %c0_i32_1 = arith.constant 0 : i32
    return %c0_i32, %c0_i32_0 : i32, i32
  }
  func.func @transform_3(%arg0: i32) -> (i32, i32) {
    %c0_i32 = arith.constant 0 : i32
    %c0_i32_0 = arith.constant 0 : i32
    %c0_i32_1 = arith.constant 0 : i32
    return %c0_i32, %c0_i32_0 : i32, i32
  }
  func.func @transform_4(%arg0: i32) -> (i32, i32) {
    %c0_i32 = arith.constant 0 : i32
    %c0_i32_0 = arith.constant 0 : i32
    %c0_i32_1 = arith.constant 0 : i32
    return %c0_i32, %c0_i32_0 : i32, i32
  }
  func.func @transform_5(%arg0: i32) -> (i32, i32) {
    %c0_i32 = arith.constant 0 : i32
    %c0_i32_0 = arith.constant 0 : i32
    %c0_i32_1 = arith.constant 0 : i32
    return %c0_i32, %c0_i32_0 : i32, i32
  }
  func.func @transform_6(%arg0: i32) -> (i32, i32) {
    %c0_i32 = arith.constant 0 : i32
    %c0_i32_0 = arith.constant 0 : i32
    return %arg0, %c0_i32 : i32, i32
  }
  func.func @transform_7(%arg0: i32) -> (i32, i32) {
    %c0_i32 = arith.constant 0 : i32
    %c0_i32_0 = arith.constant 0 : i32
    return %arg0, %c0_i32 : i32, i32
  }
}

module attributes {stable_mosaic.version = 11 : i64} {
  func.func @_conv_mm_kernel(%arg0: i32, %arg1: memref<32x16xf32, #tpu.memory_space<vmem>>, %arg2: memref<16x32xf32, #tpu.memory_space<vmem>>, %arg3: memref<1x16xf32, #tpu.memory_space<vmem>>, %arg4: memref<1x16xf32, #tpu.memory_space<vmem>>, %arg5: memref<1x32xf32, #tpu.memory_space<vmem>>, %arg6: memref<1x32xf32, #tpu.memory_space<vmem>>, %arg7: memref<32x32xf32, #tpu.memory_space<vmem>>) attributes {dimension_semantics = [#tpu.dimension_semantics<parallel>], iteration_bounds = array<i64: 1>, scalar_prefetch = 0 : i64, scratch_operands = 0 : i64, tpu.core_type = #tpu.core_type<tc>, window_params = [{transform_indices = @transform_0, window_bounds = array<i64: 32, 16>}, {pipeline_mode = #tpu.pipeline_mode<synchronous>, transform_indices = @transform_1, window_bounds = array<i64: 16, 32>}, {pipeline_mode = #tpu.pipeline_mode<synchronous>, transform_indices = @transform_2, window_bounds = array<i64: 1, 16>}, {pipeline_mode = #tpu.pipeline_mode<synchronous>, transform_indices = @transform_3, window_bounds = array<i64: 1, 16>}, {pipeline_mode = #tpu.pipeline_mode<synchronous>, transform_indices = @transform_4, window_bounds = array<i64: 1, 32>}, {pipeline_mode = #tpu.pipeline_mode<synchronous>, transform_indices = @transform_5, window_bounds = array<i64: 1, 32>}, {transform_indices = @transform_6, window_bounds = array<i64: 32, 32>}]} {
    %c0 = arith.constant 0 : index
    %c0_0 = arith.constant 0 : index
    %0 = vector.load %arg1[%c0, %c0_0] : memref<32x16xf32, #tpu.memory_space<vmem>>, vector<32x16xf32>
    %c0_1 = arith.constant 0 : index
    %c0_2 = arith.constant 0 : index
    %1 = vector.load %arg3[%c0_1, %c0_2] : memref<1x16xf32, #tpu.memory_space<vmem>>, vector<1x16xf32>
    %2 = vector.broadcast %1 : vector<1x16xf32> to vector<32x16xf32>
    %3 = arith.mulf %0, %2 : vector<32x16xf32>
    %c0_3 = arith.constant 0 : index
    %c0_4 = arith.constant 0 : index
    %4 = vector.load %arg4[%c0_3, %c0_4] : memref<1x16xf32, #tpu.memory_space<vmem>>, vector<1x16xf32>
    %5 = vector.broadcast %4 : vector<1x16xf32> to vector<32x16xf32>
    %6 = arith.addf %3, %5 : vector<32x16xf32>
    %cst = arith.constant 0.000000e+00 : f32
    %7 = vector.broadcast %cst : f32 to vector<32x16xf32>
    %8 = arith.maximumf %6, %7 : vector<32x16xf32>
    %c0_5 = arith.constant 0 : index
    %c0_6 = arith.constant 0 : index
    %9 = vector.load %arg2[%c0_5, %c0_6] : memref<16x32xf32, #tpu.memory_space<vmem>>, vector<16x32xf32>
    %cst_7 = arith.constant dense<0.000000e+00> : vector<32x32xf32>
    %10 = tpu.matmul %8, %9, %cst_7 {dimension_numbers = #tpu.dot_dimension_numbers<[1], [0], [0], [1], [0, 0, 1, 1], [], []>} : vector<32x16xf32>, vector<16x32xf32>, vector<32x32xf32> -> vector<32x32xf32>
    %c0_8 = arith.constant 0 : index
    %c0_9 = arith.constant 0 : index
    %11 = vector.load %arg7[%c0_8, %c0_9] : memref<32x32xf32, #tpu.memory_space<vmem>>, vector<32x32xf32>
    tpu.vector_store %arg7[%c0_8, %c0_9], %10 {strides = array<i32>} : memref<32x32xf32, #tpu.memory_space<vmem>>, vector<32x32xf32>,
    return
  }
  func.func @transform_0(%arg0: i32) -> (i32, i32) {
    %c0_i32 = arith.constant 0 : i32
    %c0_i32_0 = arith.constant 0 : i32
    return %arg0, %c0_i32 : i32, i32
  }
  func.func @transform_1(%arg0: i32) -> (i32, i32) {
    %c0_i32 = arith.constant 0 : i32
    %c0_i32_0 = arith.constant 0 : i32
    %c0_i32_1 = arith.constant 0 : i32
    return %c0_i32, %c0_i32_0 : i32, i32
  }
  func.func @transform_2(%arg0: i32) -> (i32, i32) {
    %c0_i32 = arith.constant 0 : i32
    %c0_i32_0 = arith.constant 0 : i32
    %c0_i32_1 = arith.constant 0 : i32
    return %c0_i32, %c0_i32_0 : i32, i32
  }
  func.func @transform_3(%arg0: i32) -> (i32, i32) {
    %c0_i32 = arith.constant 0 : i32
    %c0_i32_0 = arith.constant 0 : i32
    %c0_i32_1 = arith.constant 0 : i32
    return %c0_i32, %c0_i32_0 : i32, i32
  }
  func.func @transform_4(%arg0: i32) -> (i32, i32) {
    %c0_i32 = arith.constant 0 : i32
    %c0_i32_0 = arith.constant 0 : i32
    %c0_i32_1 = arith.constant 0 : i32
    return %c0_i32, %c0_i32_0 : i32, i32
  }
  func.func @transform_5(%arg0: i32) -> (i32, i32) {
    %c0_i32 = arith.constant 0 : i32
    %c0_i32_0 = arith.constant 0 : i32
    %c0_i32_1 = arith.constant 0 : i32
    return %c0_i32, %c0_i32_0 : i32, i32
  }
  func.func @transform_6(%arg0: i32) -> (i32, i32) {
    %c0_i32 = arith.constant 0 : i32
    %c0_i32_0 = arith.constant 0 : i32
    return %arg0, %c0_i32 : i32, i32
  }
}

module attributes {stable_mosaic.version = 11 : i64} {
  func.func @_pool_kernel(%arg0: i32, %arg1: memref<9x2x512xf32, #tpu.memory_space<vmem>>, %arg2: memref<2x512xf32, #tpu.memory_space<vmem>>) attributes {dimension_semantics = [#tpu.dimension_semantics<arbitrary>], iteration_bounds = array<i64: 1>, scalar_prefetch = 0 : i64, scratch_operands = 0 : i64, tpu.core_type = #tpu.core_type<tc>, window_params = [{pipeline_mode = #tpu.pipeline_mode<synchronous>, transform_indices = @transform_0, window_bounds = array<i64: 9, 2, 512>}, {pipeline_mode = #tpu.pipeline_mode<synchronous>, transform_indices = @transform_1, window_bounds = array<i64: 2, 512>}]} {
    %c0 = arith.constant 0 : index
    %c0_0 = arith.constant 0 : index
    %c0_1 = arith.constant 0 : index
    %0 = vector.load %arg1[%c0, %c0_0, %c0_1] : memref<9x2x512xf32, #tpu.memory_space<vmem>>, vector<1x2x512xf32>
    %1 = vector.shape_cast %0 : vector<1x2x512xf32> to vector<2x512xf32>
    %c1 = arith.constant 1 : index
    %c0_2 = arith.constant 0 : index
    %c0_3 = arith.constant 0 : index
    %2 = vector.load %arg1[%c1, %c0_2, %c0_3] : memref<9x2x512xf32, #tpu.memory_space<vmem>>, vector<1x2x512xf32>
    %3 = vector.shape_cast %2 : vector<1x2x512xf32> to vector<2x512xf32>
    %4 = arith.maximumf %1, %3 : vector<2x512xf32>
    %c2 = arith.constant 2 : index
    %c0_4 = arith.constant 0 : index
    %c0_5 = arith.constant 0 : index
    %5 = vector.load %arg1[%c2, %c0_4, %c0_5] : memref<9x2x512xf32, #tpu.memory_space<vmem>>, vector<1x2x512xf32>
    %6 = vector.shape_cast %5 : vector<1x2x512xf32> to vector<2x512xf32>
    %7 = arith.maximumf %4, %6 : vector<2x512xf32>
    %c3 = arith.constant 3 : index
    %c0_6 = arith.constant 0 : index
    %c0_7 = arith.constant 0 : index
    %8 = vector.load %arg1[%c3, %c0_6, %c0_7] : memref<9x2x512xf32, #tpu.memory_space<vmem>>, vector<1x2x512xf32>
    %9 = vector.shape_cast %8 : vector<1x2x512xf32> to vector<2x512xf32>
    %10 = arith.maximumf %7, %9 : vector<2x512xf32>
    %c4 = arith.constant 4 : index
    %c0_8 = arith.constant 0 : index
    %c0_9 = arith.constant 0 : index
    %11 = vector.load %arg1[%c4, %c0_8, %c0_9] : memref<9x2x512xf32, #tpu.memory_space<vmem>>, vector<1x2x512xf32>
    %12 = vector.shape_cast %11 : vector<1x2x512xf32> to vector<2x512xf32>
    %13 = arith.maximumf %10, %12 : vector<2x512xf32>
    %c5 = arith.constant 5 : index
    %c0_10 = arith.constant 0 : index
    %c0_11 = arith.constant 0 : index
    %14 = vector.load %arg1[%c5, %c0_10, %c0_11] : memref<9x2x512xf32, #tpu.memory_space<vmem>>, vector<1x2x512xf32>
    %15 = vector.shape_cast %14 : vector<1x2x512xf32> to vector<2x512xf32>
    %16 = arith.maximumf %13, %15 : vector<2x512xf32>
    %c6 = arith.constant 6 : index
    %c0_12 = arith.constant 0 : index
    %c0_13 = arith.constant 0 : index
    %17 = vector.load %arg1[%c6, %c0_12, %c0_13] : memref<9x2x512xf32, #tpu.memory_space<vmem>>, vector<1x2x512xf32>
    %18 = vector.shape_cast %17 : vector<1x2x512xf32> to vector<2x512xf32>
    %19 = arith.maximumf %16, %18 : vector<2x512xf32>
    %c7 = arith.constant 7 : index
    %c0_14 = arith.constant 0 : index
    %c0_15 = arith.constant 0 : index
    %20 = vector.load %arg1[%c7, %c0_14, %c0_15] : memref<9x2x512xf32, #tpu.memory_space<vmem>>, vector<1x2x512xf32>
    %21 = vector.shape_cast %20 : vector<1x2x512xf32> to vector<2x512xf32>
    %22 = arith.maximumf %19, %21 : vector<2x512xf32>
    %c8 = arith.constant 8 : index
    %c0_16 = arith.constant 0 : index
    %c0_17 = arith.constant 0 : index
    %23 = vector.load %arg1[%c8, %c0_16, %c0_17] : memref<9x2x512xf32, #tpu.memory_space<vmem>>, vector<1x2x512xf32>
    %24 = vector.shape_cast %23 : vector<1x2x512xf32> to vector<2x512xf32>
    %25 = arith.maximumf %22, %24 : vector<2x512xf32>
    %c0_18 = arith.constant 0 : index
    %c0_19 = arith.constant 0 : index
    %26 = vector.load %arg2[%c0_18, %c0_19] : memref<2x512xf32, #tpu.memory_space<vmem>>, vector<2x512xf32>
    tpu.vector_store %arg2[%c0_18, %c0_19], %25 {strides = array<i32>} : memref<2x512xf32, #tpu.memory_space<vmem>>, vector<2x512xf32>,
    return
  }
  func.func @transform_0(%arg0: i32) -> (i32, i32, i32) {
    %c0_i32 = arith.constant 0 : i32
    %c0_i32_0 = arith.constant 0 : i32
    %c0_i32_1 = arith.constant 0 : i32
    %c0_i32_2 = arith.constant 0 : i32
    return %c0_i32, %c0_i32_0, %c0_i32_1 : i32, i32, i32
  }
  func.func @transform_1(%arg0: i32) -> (i32, i32) {
    %c0_i32 = arith.constant 0 : i32
    %c0_i32_0 = arith.constant 0 : i32
    %c0_i32_1 = arith.constant 0 : i32
    return %c0_i32, %c0_i32_0 : i32, i32
  }
}

module attributes {stable_mosaic.version = 11 : i64} {
  func.func @_conv_mm_kernel(%arg0: i32, %arg1: memref<32x288xf32, #tpu.memory_space<vmem>>, %arg2: memref<288x32xf32, #tpu.memory_space<vmem>>, %arg3: memref<1x288xf32, #tpu.memory_space<vmem>>, %arg4: memref<1x288xf32, #tpu.memory_space<vmem>>, %arg5: memref<1x32xf32, #tpu.memory_space<vmem>>, %arg6: memref<1x32xf32, #tpu.memory_space<vmem>>, %arg7: memref<32x32xf32, #tpu.memory_space<vmem>>, %arg8: memref<32x32xf32, #tpu.memory_space<vmem>>) attributes {dimension_semantics = [#tpu.dimension_semantics<parallel>], iteration_bounds = array<i64: 1>, scalar_prefetch = 0 : i64, scratch_operands = 0 : i64, tpu.core_type = #tpu.core_type<tc>, window_params = [{transform_indices = @transform_0, window_bounds = array<i64: 32, 288>}, {pipeline_mode = #tpu.pipeline_mode<synchronous>, transform_indices = @transform_1, window_bounds = array<i64: 288, 32>}, {pipeline_mode = #tpu.pipeline_mode<synchronous>, transform_indices = @transform_2, window_bounds = array<i64: 1, 288>}, {pipeline_mode = #tpu.pipeline_mode<synchronous>, transform_indices = @transform_3, window_bounds = array<i64: 1, 288>}, {pipeline_mode = #tpu.pipeline_mode<synchronous>, transform_indices = @transform_4, window_bounds = array<i64: 1, 32>}, {pipeline_mode = #tpu.pipeline_mode<synchronous>, transform_indices = @transform_5, window_bounds = array<i64: 1, 32>}, {transform_indices = @transform_6, window_bounds = array<i64: 32, 32>}, {transform_indices = @transform_7, window_bounds = array<i64: 32, 32>}]} {
    %c0 = arith.constant 0 : index
    %c0_0 = arith.constant 0 : index
    %0 = vector.load %arg1[%c0, %c0_0] : memref<32x288xf32, #tpu.memory_space<vmem>>, vector<32x288xf32>
    %c0_1 = arith.constant 0 : index
    %c0_2 = arith.constant 0 : index
    %1 = vector.load %arg3[%c0_1, %c0_2] : memref<1x288xf32, #tpu.memory_space<vmem>>, vector<1x288xf32>
    %2 = vector.broadcast %1 : vector<1x288xf32> to vector<32x288xf32>
    %3 = arith.mulf %0, %2 : vector<32x288xf32>
    %c0_3 = arith.constant 0 : index
    %c0_4 = arith.constant 0 : index
    %4 = vector.load %arg4[%c0_3, %c0_4] : memref<1x288xf32, #tpu.memory_space<vmem>>, vector<1x288xf32>
    %5 = vector.broadcast %4 : vector<1x288xf32> to vector<32x288xf32>
    %6 = arith.addf %3, %5 : vector<32x288xf32>
    %cst = arith.constant 0.000000e+00 : f32
    %7 = vector.broadcast %cst : f32 to vector<32x288xf32>
    %8 = arith.maximumf %6, %7 : vector<32x288xf32>
    %c0_5 = arith.constant 0 : index
    %c0_6 = arith.constant 0 : index
    %9 = vector.load %arg2[%c0_5, %c0_6] : memref<288x32xf32, #tpu.memory_space<vmem>>, vector<288x32xf32>
    %cst_7 = arith.constant dense<0.000000e+00> : vector<32x32xf32>
    %10 = tpu.matmul %8, %9, %cst_7 {dimension_numbers = #tpu.dot_dimension_numbers<[1], [0], [0], [1], [0, 0, 1, 1], [], []>} : vector<32x288xf32>, vector<288x32xf32>, vector<32x32xf32> -> vector<32x32xf32>
    %c0_8 = arith.constant 0 : index
    %c0_9 = arith.constant 0 : index
    %11 = vector.load %arg7[%c0_8, %c0_9] : memref<32x32xf32, #tpu.memory_space<vmem>>, vector<32x32xf32>
    %12 = arith.addf %10, %11 : vector<32x32xf32>
    %c0_10 = arith.constant 0 : index
    %c0_11 = arith.constant 0 : index
    %13 = vector.load %arg8[%c0_10, %c0_11] : memref<32x32xf32, #tpu.memory_space<vmem>>, vector<32x32xf32>
    tpu.vector_store %arg8[%c0_10, %c0_11], %12 {strides = array<i32>} : memref<32x32xf32, #tpu.memory_space<vmem>>, vector<32x32xf32>,
    return
  }
  func.func @transform_0(%arg0: i32) -> (i32, i32) {
    %c0_i32 = arith.constant 0 : i32
    %c0_i32_0 = arith.constant 0 : i32
    return %arg0, %c0_i32 : i32, i32
  }
  func.func @transform_1(%arg0: i32) -> (i32, i32) {
    %c0_i32 = arith.constant 0 : i32
    %c0_i32_0 = arith.constant 0 : i32
    %c0_i32_1 = arith.constant 0 : i32
    return %c0_i32, %c0_i32_0 : i32, i32
  }
  func.func @transform_2(%arg0: i32) -> (i32, i32) {
    %c0_i32 = arith.constant 0 : i32
    %c0_i32_0 = arith.constant 0 : i32
    %c0_i32_1 = arith.constant 0 : i32
    return %c0_i32, %c0_i32_0 : i32, i32
  }
  func.func @transform_3(%arg0: i32) -> (i32, i32) {
    %c0_i32 = arith.constant 0 : i32
    %c0_i32_0 = arith.constant 0 : i32
    %c0_i32_1 = arith.constant 0 : i32
    return %c0_i32, %c0_i32_0 : i32, i32
  }
  func.func @transform_4(%arg0: i32) -> (i32, i32) {
    %c0_i32 = arith.constant 0 : i32
    %c0_i32_0 = arith.constant 0 : i32
    %c0_i32_1 = arith.constant 0 : i32
    return %c0_i32, %c0_i32_0 : i32, i32
  }
  func.func @transform_5(%arg0: i32) -> (i32, i32) {
    %c0_i32 = arith.constant 0 : i32
    %c0_i32_0 = arith.constant 0 : i32
    %c0_i32_1 = arith.constant 0 : i32
    return %c0_i32, %c0_i32_0 : i32, i32
  }
  func.func @transform_6(%arg0: i32) -> (i32, i32) {
    %c0_i32 = arith.constant 0 : i32
    %c0_i32_0 = arith.constant 0 : i32
    return %arg0, %c0_i32 : i32, i32
  }
  func.func @transform_7(%arg0: i32) -> (i32, i32) {
    %c0_i32 = arith.constant 0 : i32
    %c0_i32_0 = arith.constant 0 : i32
    return %arg0, %c0_i32 : i32, i32
  }
}

module attributes {stable_mosaic.version = 11 : i64} {
  func.func @_conv_mm_kernel(%arg0: i32, %arg1: memref<8x288xf32, #tpu.memory_space<vmem>>, %arg2: memref<288x64xf32, #tpu.memory_space<vmem>>, %arg3: memref<1x288xf32, #tpu.memory_space<vmem>>, %arg4: memref<1x288xf32, #tpu.memory_space<vmem>>, %arg5: memref<1x64xf32, #tpu.memory_space<vmem>>, %arg6: memref<1x64xf32, #tpu.memory_space<vmem>>, %arg7: memref<8x64xf32, #tpu.memory_space<vmem>>, %arg8: memref<8x64xf32, #tpu.memory_space<vmem>>) attributes {dimension_semantics = [#tpu.dimension_semantics<parallel>], iteration_bounds = array<i64: 1>, scalar_prefetch = 0 : i64, scratch_operands = 0 : i64, tpu.core_type = #tpu.core_type<tc>, window_params = [{transform_indices = @transform_0, window_bounds = array<i64: 8, 288>}, {pipeline_mode = #tpu.pipeline_mode<synchronous>, transform_indices = @transform_1, window_bounds = array<i64: 288, 64>}, {pipeline_mode = #tpu.pipeline_mode<synchronous>, transform_indices = @transform_2, window_bounds = array<i64: 1, 288>}, {pipeline_mode = #tpu.pipeline_mode<synchronous>, transform_indices = @transform_3, window_bounds = array<i64: 1, 288>}, {pipeline_mode = #tpu.pipeline_mode<synchronous>, transform_indices = @transform_4, window_bounds = array<i64: 1, 64>}, {pipeline_mode = #tpu.pipeline_mode<synchronous>, transform_indices = @transform_5, window_bounds = array<i64: 1, 64>}, {transform_indices = @transform_6, window_bounds = array<i64: 8, 64>}, {transform_indices = @transform_7, window_bounds = array<i64: 8, 64>}]} {
    %c0 = arith.constant 0 : index
    %c0_0 = arith.constant 0 : index
    %0 = vector.load %arg1[%c0, %c0_0] : memref<8x288xf32, #tpu.memory_space<vmem>>, vector<8x288xf32>
    %c0_1 = arith.constant 0 : index
    %c0_2 = arith.constant 0 : index
    %1 = vector.load %arg2[%c0_1, %c0_2] : memref<288x64xf32, #tpu.memory_space<vmem>>, vector<288x64xf32>
    %cst = arith.constant dense<0.000000e+00> : vector<8x64xf32>
    %2 = tpu.matmul %0, %1, %cst {dimension_numbers = #tpu.dot_dimension_numbers<[1], [0], [0], [1], [0, 0, 1, 1], [], []>} : vector<8x288xf32>, vector<288x64xf32>, vector<8x64xf32> -> vector<8x64xf32>
    %c0_3 = arith.constant 0 : index
    %c0_4 = arith.constant 0 : index
    %3 = vector.load %arg7[%c0_3, %c0_4] : memref<8x64xf32, #tpu.memory_space<vmem>>, vector<8x64xf32>
    %4 = arith.addf %2, %3 : vector<8x64xf32>
    %c0_5 = arith.constant 0 : index
    %c0_6 = arith.constant 0 : index
    %5 = vector.load %arg8[%c0_5, %c0_6] : memref<8x64xf32, #tpu.memory_space<vmem>>, vector<8x64xf32>
    tpu.vector_store %arg8[%c0_5, %c0_6], %4 {strides = array<i32>} : memref<8x64xf32, #tpu.memory_space<vmem>>, vector<8x64xf32>,
    return
  }
  func.func @transform_0(%arg0: i32) -> (i32, i32) {
    %c0_i32 = arith.constant 0 : i32
    %c0_i32_0 = arith.constant 0 : i32
    return %arg0, %c0_i32 : i32, i32
  }
  func.func @transform_1(%arg0: i32) -> (i32, i32) {
    %c0_i32 = arith.constant 0 : i32
    %c0_i32_0 = arith.constant 0 : i32
    %c0_i32_1 = arith.constant 0 : i32
    return %c0_i32, %c0_i32_0 : i32, i32
  }
  func.func @transform_2(%arg0: i32) -> (i32, i32) {
    %c0_i32 = arith.constant 0 : i32
    %c0_i32_0 = arith.constant 0 : i32
    %c0_i32_1 = arith.constant 0 : i32
    return %c0_i32, %c0_i32_0 : i32, i32
  }
  func.func @transform_3(%arg0: i32) -> (i32, i32) {
    %c0_i32 = arith.constant 0 : i32
    %c0_i32_0 = arith.constant 0 : i32
    %c0_i32_1 = arith.constant 0 : i32
    return %c0_i32, %c0_i32_0 : i32, i32
  }
  func.func @transform_4(%arg0: i32) -> (i32, i32) {
    %c0_i32 = arith.constant 0 : i32
    %c0_i32_0 = arith.constant 0 : i32
    %c0_i32_1 = arith.constant 0 : i32
    return %c0_i32, %c0_i32_0 : i32, i32
  }
  func.func @transform_5(%arg0: i32) -> (i32, i32) {
    %c0_i32 = arith.constant 0 : i32
    %c0_i32_0 = arith.constant 0 : i32
    %c0_i32_1 = arith.constant 0 : i32
    return %c0_i32, %c0_i32_0 : i32, i32
  }
  func.func @transform_6(%arg0: i32) -> (i32, i32) {
    %c0_i32 = arith.constant 0 : i32
    %c0_i32_0 = arith.constant 0 : i32
    return %arg0, %c0_i32 : i32, i32
  }
  func.func @transform_7(%arg0: i32) -> (i32, i32) {
    %c0_i32 = arith.constant 0 : i32
    %c0_i32_0 = arith.constant 0 : i32
    return %arg0, %c0_i32 : i32, i32
  }
}

module attributes {stable_mosaic.version = 11 : i64} {
  func.func @_conv_mm_kernel(%arg0: i32, %arg1: memref<8x32xf32, #tpu.memory_space<vmem>>, %arg2: memref<32x64xf32, #tpu.memory_space<vmem>>, %arg3: memref<1x32xf32, #tpu.memory_space<vmem>>, %arg4: memref<1x32xf32, #tpu.memory_space<vmem>>, %arg5: memref<1x64xf32, #tpu.memory_space<vmem>>, %arg6: memref<1x64xf32, #tpu.memory_space<vmem>>, %arg7: memref<8x64xf32, #tpu.memory_space<vmem>>) attributes {dimension_semantics = [#tpu.dimension_semantics<parallel>], iteration_bounds = array<i64: 1>, scalar_prefetch = 0 : i64, scratch_operands = 0 : i64, tpu.core_type = #tpu.core_type<tc>, window_params = [{transform_indices = @transform_0, window_bounds = array<i64: 8, 32>}, {pipeline_mode = #tpu.pipeline_mode<synchronous>, transform_indices = @transform_1, window_bounds = array<i64: 32, 64>}, {pipeline_mode = #tpu.pipeline_mode<synchronous>, transform_indices = @transform_2, window_bounds = array<i64: 1, 32>}, {pipeline_mode = #tpu.pipeline_mode<synchronous>, transform_indices = @transform_3, window_bounds = array<i64: 1, 32>}, {pipeline_mode = #tpu.pipeline_mode<synchronous>, transform_indices = @transform_4, window_bounds = array<i64: 1, 64>}, {pipeline_mode = #tpu.pipeline_mode<synchronous>, transform_indices = @transform_5, window_bounds = array<i64: 1, 64>}, {transform_indices = @transform_6, window_bounds = array<i64: 8, 64>}]} {
    %c0 = arith.constant 0 : index
    %c0_0 = arith.constant 0 : index
    %0 = vector.load %arg1[%c0, %c0_0] : memref<8x32xf32, #tpu.memory_space<vmem>>, vector<8x32xf32>
    %c0_1 = arith.constant 0 : index
    %c0_2 = arith.constant 0 : index
    %1 = vector.load %arg3[%c0_1, %c0_2] : memref<1x32xf32, #tpu.memory_space<vmem>>, vector<1x32xf32>
    %2 = vector.broadcast %1 : vector<1x32xf32> to vector<8x32xf32>
    %3 = arith.mulf %0, %2 : vector<8x32xf32>
    %c0_3 = arith.constant 0 : index
    %c0_4 = arith.constant 0 : index
    %4 = vector.load %arg4[%c0_3, %c0_4] : memref<1x32xf32, #tpu.memory_space<vmem>>, vector<1x32xf32>
    %5 = vector.broadcast %4 : vector<1x32xf32> to vector<8x32xf32>
    %6 = arith.addf %3, %5 : vector<8x32xf32>
    %cst = arith.constant 0.000000e+00 : f32
    %7 = vector.broadcast %cst : f32 to vector<8x32xf32>
    %8 = arith.maximumf %6, %7 : vector<8x32xf32>
    %c0_5 = arith.constant 0 : index
    %c0_6 = arith.constant 0 : index
    %9 = vector.load %arg2[%c0_5, %c0_6] : memref<32x64xf32, #tpu.memory_space<vmem>>, vector<32x64xf32>
    %cst_7 = arith.constant dense<0.000000e+00> : vector<8x64xf32>
    %10 = tpu.matmul %8, %9, %cst_7 {dimension_numbers = #tpu.dot_dimension_numbers<[1], [0], [0], [1], [0, 0, 1, 1], [], []>} : vector<8x32xf32>, vector<32x64xf32>, vector<8x64xf32> -> vector<8x64xf32>
    %c0_8 = arith.constant 0 : index
    %c0_9 = arith.constant 0 : index
    %11 = vector.load %arg7[%c0_8, %c0_9] : memref<8x64xf32, #tpu.memory_space<vmem>>, vector<8x64xf32>
    tpu.vector_store %arg7[%c0_8, %c0_9], %10 {strides = array<i32>} : memref<8x64xf32, #tpu.memory_space<vmem>>, vector<8x64xf32>,
    return
  }
  func.func @transform_0(%arg0: i32) -> (i32, i32) {
    %c0_i32 = arith.constant 0 : i32
    %c0_i32_0 = arith.constant 0 : i32
    return %arg0, %c0_i32 : i32, i32
  }
  func.func @transform_1(%arg0: i32) -> (i32, i32) {
    %c0_i32 = arith.constant 0 : i32
    %c0_i32_0 = arith.constant 0 : i32
    %c0_i32_1 = arith.constant 0 : i32
    return %c0_i32, %c0_i32_0 : i32, i32
  }
  func.func @transform_2(%arg0: i32) -> (i32, i32) {
    %c0_i32 = arith.constant 0 : i32
    %c0_i32_0 = arith.constant 0 : i32
    %c0_i32_1 = arith.constant 0 : i32
    return %c0_i32, %c0_i32_0 : i32, i32
  }
  func.func @transform_3(%arg0: i32) -> (i32, i32) {
    %c0_i32 = arith.constant 0 : i32
    %c0_i32_0 = arith.constant 0 : i32
    %c0_i32_1 = arith.constant 0 : i32
    return %c0_i32, %c0_i32_0 : i32, i32
  }
  func.func @transform_4(%arg0: i32) -> (i32, i32) {
    %c0_i32 = arith.constant 0 : i32
    %c0_i32_0 = arith.constant 0 : i32
    %c0_i32_1 = arith.constant 0 : i32
    return %c0_i32, %c0_i32_0 : i32, i32
  }
  func.func @transform_5(%arg0: i32) -> (i32, i32) {
    %c0_i32 = arith.constant 0 : i32
    %c0_i32_0 = arith.constant 0 : i32
    %c0_i32_1 = arith.constant 0 : i32
    return %c0_i32, %c0_i32_0 : i32, i32
  }
  func.func @transform_6(%arg0: i32) -> (i32, i32) {
    %c0_i32 = arith.constant 0 : i32
    %c0_i32_0 = arith.constant 0 : i32
    return %arg0, %c0_i32 : i32, i32
  }
}

module attributes {stable_mosaic.version = 11 : i64} {
  func.func @_pool_kernel(%arg0: i32, %arg1: memref<9x2x256xf32, #tpu.memory_space<vmem>>, %arg2: memref<2x256xf32, #tpu.memory_space<vmem>>) attributes {dimension_semantics = [#tpu.dimension_semantics<arbitrary>], iteration_bounds = array<i64: 1>, scalar_prefetch = 0 : i64, scratch_operands = 0 : i64, tpu.core_type = #tpu.core_type<tc>, window_params = [{pipeline_mode = #tpu.pipeline_mode<synchronous>, transform_indices = @transform_0, window_bounds = array<i64: 9, 2, 256>}, {pipeline_mode = #tpu.pipeline_mode<synchronous>, transform_indices = @transform_1, window_bounds = array<i64: 2, 256>}]} {
    %c0 = arith.constant 0 : index
    %c0_0 = arith.constant 0 : index
    %c0_1 = arith.constant 0 : index
    %0 = vector.load %arg1[%c0, %c0_0, %c0_1] : memref<9x2x256xf32, #tpu.memory_space<vmem>>, vector<1x2x256xf32>
    %1 = vector.shape_cast %0 : vector<1x2x256xf32> to vector<2x256xf32>
    %c1 = arith.constant 1 : index
    %c0_2 = arith.constant 0 : index
    %c0_3 = arith.constant 0 : index
    %2 = vector.load %arg1[%c1, %c0_2, %c0_3] : memref<9x2x256xf32, #tpu.memory_space<vmem>>, vector<1x2x256xf32>
    %3 = vector.shape_cast %2 : vector<1x2x256xf32> to vector<2x256xf32>
    %4 = arith.maximumf %1, %3 : vector<2x256xf32>
    %c2 = arith.constant 2 : index
    %c0_4 = arith.constant 0 : index
    %c0_5 = arith.constant 0 : index
    %5 = vector.load %arg1[%c2, %c0_4, %c0_5] : memref<9x2x256xf32, #tpu.memory_space<vmem>>, vector<1x2x256xf32>
    %6 = vector.shape_cast %5 : vector<1x2x256xf32> to vector<2x256xf32>
    %7 = arith.maximumf %4, %6 : vector<2x256xf32>
    %c3 = arith.constant 3 : index
    %c0_6 = arith.constant 0 : index
    %c0_7 = arith.constant 0 : index
    %8 = vector.load %arg1[%c3, %c0_6, %c0_7] : memref<9x2x256xf32, #tpu.memory_space<vmem>>, vector<1x2x256xf32>
    %9 = vector.shape_cast %8 : vector<1x2x256xf32> to vector<2x256xf32>
    %10 = arith.maximumf %7, %9 : vector<2x256xf32>
    %c4 = arith.constant 4 : index
    %c0_8 = arith.constant 0 : index
    %c0_9 = arith.constant 0 : index
    %11 = vector.load %arg1[%c4, %c0_8, %c0_9] : memref<9x2x256xf32, #tpu.memory_space<vmem>>, vector<1x2x256xf32>
    %12 = vector.shape_cast %11 : vector<1x2x256xf32> to vector<2x256xf32>
    %13 = arith.maximumf %10, %12 : vector<2x256xf32>
    %c5 = arith.constant 5 : index
    %c0_10 = arith.constant 0 : index
    %c0_11 = arith.constant 0 : index
    %14 = vector.load %arg1[%c5, %c0_10, %c0_11] : memref<9x2x256xf32, #tpu.memory_space<vmem>>, vector<1x2x256xf32>
    %15 = vector.shape_cast %14 : vector<1x2x256xf32> to vector<2x256xf32>
    %16 = arith.maximumf %13, %15 : vector<2x256xf32>
    %c6 = arith.constant 6 : index
    %c0_12 = arith.constant 0 : index
    %c0_13 = arith.constant 0 : index
    %17 = vector.load %arg1[%c6, %c0_12, %c0_13] : memref<9x2x256xf32, #tpu.memory_space<vmem>>, vector<1x2x256xf32>
    %18 = vector.shape_cast %17 : vector<1x2x256xf32> to vector<2x256xf32>
    %19 = arith.maximumf %16, %18 : vector<2x256xf32>
    %c7 = arith.constant 7 : index
    %c0_14 = arith.constant 0 : index
    %c0_15 = arith.constant 0 : index
    %20 = vector.load %arg1[%c7, %c0_14, %c0_15] : memref<9x2x256xf32, #tpu.memory_space<vmem>>, vector<1x2x256xf32>
    %21 = vector.shape_cast %20 : vector<1x2x256xf32> to vector<2x256xf32>
    %22 = arith.maximumf %19, %21 : vector<2x256xf32>
    %c8 = arith.constant 8 : index
    %c0_16 = arith.constant 0 : index
    %c0_17 = arith.constant 0 : index
    %23 = vector.load %arg1[%c8, %c0_16, %c0_17] : memref<9x2x256xf32, #tpu.memory_space<vmem>>, vector<1x2x256xf32>
    %24 = vector.shape_cast %23 : vector<1x2x256xf32> to vector<2x256xf32>
    %25 = arith.maximumf %22, %24 : vector<2x256xf32>
    %c0_18 = arith.constant 0 : index
    %c0_19 = arith.constant 0 : index
    %26 = vector.load %arg2[%c0_18, %c0_19] : memref<2x256xf32, #tpu.memory_space<vmem>>, vector<2x256xf32>
    tpu.vector_store %arg2[%c0_18, %c0_19], %25 {strides = array<i32>} : memref<2x256xf32, #tpu.memory_space<vmem>>, vector<2x256xf32>,
    return
  }
  func.func @transform_0(%arg0: i32) -> (i32, i32, i32) {
    %c0_i32 = arith.constant 0 : i32
    %c0_i32_0 = arith.constant 0 : i32
    %c0_i32_1 = arith.constant 0 : i32
    %c0_i32_2 = arith.constant 0 : i32
    return %c0_i32, %c0_i32_0, %c0_i32_1 : i32, i32, i32
  }
  func.func @transform_1(%arg0: i32) -> (i32, i32) {
    %c0_i32 = arith.constant 0 : i32
    %c0_i32_0 = arith.constant 0 : i32
    %c0_i32_1 = arith.constant 0 : i32
    return %c0_i32, %c0_i32_0 : i32, i32
  }
}

module attributes {stable_mosaic.version = 11 : i64} {
  func.func @_head_kernel(%arg0: i32, %arg1: memref<2x4x64xf32, #tpu.memory_space<vmem>>, %arg2: memref<64x10xf32, #tpu.memory_space<vmem>>, %arg3: memref<1x10xf32, #tpu.memory_space<vmem>>, %arg4: memref<2x10xf32, #tpu.memory_space<vmem>>) attributes {dimension_semantics = [#tpu.dimension_semantics<arbitrary>], iteration_bounds = array<i64: 1>, scalar_prefetch = 0 : i64, scratch_operands = 0 : i64, tpu.core_type = #tpu.core_type<tc>, window_params = [{pipeline_mode = #tpu.pipeline_mode<synchronous>, transform_indices = @transform_0, window_bounds = array<i64: 2, 4, 64>}, {pipeline_mode = #tpu.pipeline_mode<synchronous>, transform_indices = @transform_1, window_bounds = array<i64: 64, 10>}, {pipeline_mode = #tpu.pipeline_mode<synchronous>, transform_indices = @transform_2, window_bounds = array<i64: 1, 10>}, {pipeline_mode = #tpu.pipeline_mode<synchronous>, transform_indices = @transform_3, window_bounds = array<i64: 2, 10>}]} {
    %c0 = arith.constant 0 : index
    %c0_0 = arith.constant 0 : index
    %c0_1 = arith.constant 0 : index
    %0 = vector.load %arg1[%c0, %c0_0, %c0_1] : memref<2x4x64xf32, #tpu.memory_space<vmem>>, vector<2x4x64xf32>
    %cst = arith.constant dense<0.000000e+00> : vector<2x64xf32>
    %1 = vector.multi_reduction <add>, %0, %cst [1] : vector<2x4x64xf32> to vector<2x64xf32>
    %cst_2 = arith.constant 4.000000e+00 : f32
    %2 = vector.broadcast %cst_2 : f32 to vector<2x64xf32>
    %3 = arith.divf %1, %2 : vector<2x64xf32>
    %c0_3 = arith.constant 0 : index
    %c0_4 = arith.constant 0 : index
    %4 = vector.load %arg2[%c0_3, %c0_4] : memref<64x10xf32, #tpu.memory_space<vmem>>, vector<64x10xf32>
    %cst_5 = arith.constant dense<0.000000e+00> : vector<2x10xf32>
    %5 = tpu.matmul %3, %4, %cst_5 {dimension_numbers = #tpu.dot_dimension_numbers<[1], [0], [0], [1], [0, 0, 1, 1], [], []>} : vector<2x64xf32>, vector<64x10xf32>, vector<2x10xf32> -> vector<2x10xf32>
    %c0_6 = arith.constant 0 : index
    %c0_7 = arith.constant 0 : index
    %6 = vector.load %arg3[%c0_6, %c0_7] : memref<1x10xf32, #tpu.memory_space<vmem>>, vector<1x10xf32>
    %7 = vector.broadcast %6 : vector<1x10xf32> to vector<2x10xf32>
    %8 = arith.addf %5, %7 : vector<2x10xf32>
    %c0_8 = arith.constant 0 : index
    %c0_9 = arith.constant 0 : index
    %9 = vector.load %arg4[%c0_8, %c0_9] : memref<2x10xf32, #tpu.memory_space<vmem>>, vector<2x10xf32>
    tpu.vector_store %arg4[%c0_8, %c0_9], %8 {strides = array<i32>} : memref<2x10xf32, #tpu.memory_space<vmem>>, vector<2x10xf32>,
    return
  }
  func.func @transform_0(%arg0: i32) -> (i32, i32, i32) {
    %c0_i32 = arith.constant 0 : i32
    %c0_i32_0 = arith.constant 0 : i32
    %c0_i32_1 = arith.constant 0 : i32
    %c0_i32_2 = arith.constant 0 : i32
    return %c0_i32, %c0_i32_0, %c0_i32_1 : i32, i32, i32
  }
  func.func @transform_1(%arg0: i32) -> (i32, i32) {
    %c0_i32 = arith.constant 0 : i32
    %c0_i32_0 = arith.constant 0 : i32
    %c0_i32_1 = arith.constant 0 : i32
    return %c0_i32, %c0_i32_0 : i32, i32
  }
  func.func @transform_2(%arg0: i32) -> (i32, i32) {
    %c0_i32 = arith.constant 0 : i32
    %c0_i32_0 = arith.constant 0 : i32
    %c0_i32_1 = arith.constant 0 : i32
    return %c0_i32, %c0_i32_0 : i32, i32
  }
  func.func @transform_3(%arg0: i32) -> (i32, i32) {
    %c0_i32 = arith.constant 0 : i32
    %c0_i32_0 = arith.constant 0 : i32
    %c0_i32_1 = arith.constant 0 : i32
    return %c0_i32, %c0_i32_0 : i32, i32
  }
}

module attributes {stable_mosaic.version = 11 : i64} {
  func.func @_conv_mm_kernel(%arg0: i32, %arg1: memref<8x576xf32, #tpu.memory_space<vmem>>, %arg2: memref<576x64xf32, #tpu.memory_space<vmem>>, %arg3: memref<1x576xf32, #tpu.memory_space<vmem>>, %arg4: memref<1x576xf32, #tpu.memory_space<vmem>>, %arg5: memref<1x64xf32, #tpu.memory_space<vmem>>, %arg6: memref<1x64xf32, #tpu.memory_space<vmem>>, %arg7: memref<8x64xf32, #tpu.memory_space<vmem>>, %arg8: memref<8x64xf32, #tpu.memory_space<vmem>>) attributes {dimension_semantics = [#tpu.dimension_semantics<parallel>], iteration_bounds = array<i64: 1>, scalar_prefetch = 0 : i64, scratch_operands = 0 : i64, tpu.core_type = #tpu.core_type<tc>, window_params = [{transform_indices = @transform_0, window_bounds = array<i64: 8, 576>}, {pipeline_mode = #tpu.pipeline_mode<synchronous>, transform_indices = @transform_1, window_bounds = array<i64: 576, 64>}, {pipeline_mode = #tpu.pipeline_mode<synchronous>, transform_indices = @transform_2, window_bounds = array<i64: 1, 576>}, {pipeline_mode = #tpu.pipeline_mode<synchronous>, transform_indices = @transform_3, window_bounds = array<i64: 1, 576>}, {pipeline_mode = #tpu.pipeline_mode<synchronous>, transform_indices = @transform_4, window_bounds = array<i64: 1, 64>}, {pipeline_mode = #tpu.pipeline_mode<synchronous>, transform_indices = @transform_5, window_bounds = array<i64: 1, 64>}, {transform_indices = @transform_6, window_bounds = array<i64: 8, 64>}, {transform_indices = @transform_7, window_bounds = array<i64: 8, 64>}]} {
    %c0 = arith.constant 0 : index
    %c0_0 = arith.constant 0 : index
    %0 = vector.load %arg1[%c0, %c0_0] : memref<8x576xf32, #tpu.memory_space<vmem>>, vector<8x576xf32>
    %c0_1 = arith.constant 0 : index
    %c0_2 = arith.constant 0 : index
    %1 = vector.load %arg3[%c0_1, %c0_2] : memref<1x576xf32, #tpu.memory_space<vmem>>, vector<1x576xf32>
    %2 = vector.broadcast %1 : vector<1x576xf32> to vector<8x576xf32>
    %3 = arith.mulf %0, %2 : vector<8x576xf32>
    %c0_3 = arith.constant 0 : index
    %c0_4 = arith.constant 0 : index
    %4 = vector.load %arg4[%c0_3, %c0_4] : memref<1x576xf32, #tpu.memory_space<vmem>>, vector<1x576xf32>
    %5 = vector.broadcast %4 : vector<1x576xf32> to vector<8x576xf32>
    %6 = arith.addf %3, %5 : vector<8x576xf32>
    %cst = arith.constant 0.000000e+00 : f32
    %7 = vector.broadcast %cst : f32 to vector<8x576xf32>
    %8 = arith.maximumf %6, %7 : vector<8x576xf32>
    %c0_5 = arith.constant 0 : index
    %c0_6 = arith.constant 0 : index
    %9 = vector.load %arg2[%c0_5, %c0_6] : memref<576x64xf32, #tpu.memory_space<vmem>>, vector<576x64xf32>
    %cst_7 = arith.constant dense<0.000000e+00> : vector<8x64xf32>
    %10 = tpu.matmul %8, %9, %cst_7 {dimension_numbers = #tpu.dot_dimension_numbers<[1], [0], [0], [1], [0, 0, 1, 1], [], []>} : vector<8x576xf32>, vector<576x64xf32>, vector<8x64xf32> -> vector<8x64xf32>
    %c0_8 = arith.constant 0 : index
    %c0_9 = arith.constant 0 : index
    %11 = vector.load %arg7[%c0_8, %c0_9] : memref<8x64xf32, #tpu.memory_space<vmem>>, vector<8x64xf32>
    %12 = arith.addf %10, %11 : vector<8x64xf32>
    %c0_10 = arith.constant 0 : index
    %c0_11 = arith.constant 0 : index
    %13 = vector.load %arg8[%c0_10, %c0_11] : memref<8x64xf32, #tpu.memory_space<vmem>>, vector<8x64xf32>
    tpu.vector_store %arg8[%c0_10, %c0_11], %12 {strides = array<i32>} : memref<8x64xf32, #tpu.memory_space<vmem>>, vector<8x64xf32>,
    return
  }
  func.func @transform_0(%arg0: i32) -> (i32, i32) {
    %c0_i32 = arith.constant 0 : i32
    %c0_i32_0 = arith.constant 0 : i32
    return %arg0, %c0_i32 : i32, i32
  }
  func.func @transform_1(%arg0: i32) -> (i32, i32) {
    %c0_i32 = arith.constant 0 : i32
    %c0_i32_0 = arith.constant 0 : i32
    %c0_i32_1 = arith.constant 0 : i32
    return %c0_i32, %c0_i32_0 : i32, i32
  }
  func.func @transform_2(%arg0: i32) -> (i32, i32) {
    %c0_i32 = arith.constant 0 : i32
    %c0_i32_0 = arith.constant 0 : i32
    %c0_i32_1 = arith.constant 0 : i32
    return %c0_i32, %c0_i32_0 : i32, i32
  }
  func.func @transform_3(%arg0: i32) -> (i32, i32) {
    %c0_i32 = arith.constant 0 : i32
    %c0_i32_0 = arith.constant 0 : i32
    %c0_i32_1 = arith.constant 0 : i32
    return %c0_i32, %c0_i32_0 : i32, i32
  }
  func.func @transform_4(%arg0: i32) -> (i32, i32) {
    %c0_i32 = arith.constant 0 : i32
    %c0_i32_0 = arith.constant 0 : i32
    %c0_i32_1 = arith.constant 0 : i32
    return %c0_i32, %c0_i32_0 : i32, i32
  }
  func.func @transform_5(%arg0: i32) -> (i32, i32) {
    %c0_i32 = arith.constant 0 : i32
    %c0_i32_0 = arith.constant 0 : i32
    %c0_i32_1 = arith.constant 0 : i32
    return %c0_i32, %c0_i32_0 : i32, i32
  }
  func.func @transform_6(%arg0: i32) -> (i32, i32) {
    %c0_i32 = arith.constant 0 : i32
    %c0_i32_0 = arith.constant 0 : i32
    return %arg0, %c0_i32 : i32, i32
  }
  func.func @transform_7(%arg0: i32) -> (i32, i32) {
    %c0_i32 = arith.constant 0 : i32
    %c0_i32_0 = arith.constant 0 : i32
    return %arg0, %c0_i32 : i32, i32
  }
}

</mosaic_0001>

<bundles_post_ra>
// kernel: forward.18
= control target key start
LH: loop header
LB: loop body
LE: loop exit
PB: predicated region body
PF: predicated region fallthrough
CT: control target
= control target key end

     0   :  { %vm284_vm0 = vcmask 1042432   ;;  %vm91_vm1 = vcmask 220160   ;;  %vm879_vm2 = vcmask 64512   ;;  %s1892_s1 = inlined_call_operand.vmem [shape: f32[27,8], index: 1, kind: input, shape index: {}]   ;;  %s1893_s2 = inlined_call_operand.vmem [shape: f32[1,27], index: 2, kind: input, shape index: {}]   ;;  %s1894_s3 = inlined_call_operand.vmem [shape: f32[1,27], index: 3, kind: input, shape index: {}]   ;;  %s1895_s0 = inlined_call_operand.vmem [shape: f32[512,27], index: 0, kind: input, shape index: {}]   ;;  %s1896_s4 = inlined_call_operand.vmem [shape: f32[1,8], index: 4, kind: input, shape index: {}]   ;;  %s1897_s5 = inlined_call_operand.vmem [shape: f32[1,8], index: 5, kind: input, shape index: {}]   ;;  %s1898_s6 = inlined_call_operand.vmem [shape: f32[512,8], index: 6, kind: output, shape index: {}]  }
   0x1   :  { %v90_v0 = vld [vmem:[%s1892_s1 + $0x18] sm:$0x7]  ;;  %v89_v1 = vld [vmem:[%s1892_s1 + $0x10] sm:$0xff]  ;;  %v88_v2 = vld [vmem:[%s1892_s1 + $0x8] sm:$0xff] }
   0x2   :  { %1083 = vmatprep.subr.msk.mxu0 %vm284_vm0, %v90_v0  ;;  %1187 = vmatprep.subr.msk.mxu1 %vm284_vm0, %v90_v0  ;;  %v87_v3 = vld [vmem:[%s1892_s1] sm:$0xff]  ;;  %v24_v6 = vld [vmem:[%s1895_s0 + $0x8] sm:$0xff]  ;;  %v25_v8 = vld [vmem:[%s1895_s0 + $0x10] sm:$0xff] }
   0x3   :  { %1084 = vmatpush3.msk.msra.mxu0 %vm284_vm0, %v90_v0  ;;  %1191 = vmatpush3.msk.msra.mxu1 %vm284_vm0, %v90_v0  ;;  %v23_v4 = vld [vmem:[%s1895_s0] sm:$0xff]  ;;  %v56_v7 = vld [vmem:[%s1895_s0 + $0x108] sm:$0xff]  ;;  %v57_v9 = vld [vmem:[%s1895_s0 + $0x110] sm:$0xff] }
   0x4   :  { %1085 = vmatprep.subr.mxu0 %v89_v1  ;;  %1188 = vmatprep.subr.mxu1 %v89_v1  ;;  %v55_v5 = vld [vmem:[%s1895_s0 + $0x100] sm:$0xff]  ;;  %v26_v10 = vld [vmem:[%s1895_s0 + $0x18] sm:$0xff]  ;;  %v28_v14 = vld [vmem:[%s1895_s0 + $0x28] sm:$0xff] }
   0x5   :  { %1086 = vmatpush3.msra.mxu0 %v89_v1  ;;  %1192 = vmatpush3.msra.mxu1 %v89_v1  ;;  %v58_v11 = vld [vmem:[%s1895_s0 + $0x118] sm:$0xff]  ;;  %v27_v12 = vld [vmem:[%s1895_s0 + $0x20] sm:$0xff]  ;;  %v60_v15 = vld [vmem:[%s1895_s0 + $0x128] sm:$0xff] }
   0x6   :  { %1087 = vmatprep.subr.mxu0 %v88_v2  ;;  %1189 = vmatprep.subr.mxu1 %v88_v2  ;;  %v59_v13 = vld [vmem:[%s1895_s0 + $0x120] sm:$0xff]  ;;  %v29_v16 = vld [vmem:[%s1895_s0 + $0x30] sm:$0xff]  ;;  %v30_v18 = vld [vmem:[%s1895_s0 + $0x38] sm:$0xff] }
   0x7   :  { %1088 = vmatpush3.msra.mxu0 %v88_v2  ;;  %1193 = vmatpush3.msra.mxu1 %v88_v2  ;;  %v61_v17 = vld [vmem:[%s1895_s0 + $0x130] sm:$0xff]  ;;  %v62_v19 = vld [vmem:[%s1895_s0 + $0x138] sm:$0xff]  ;;  %v31_v20 = vld [vmem:[%s1895_s0 + $0x40] sm:$0xff] }
   0x8   :  { %1089 = vmatprep.subr.mxu0 %v87_v3  ;;  %1190 = vmatprep.subr.mxu1 %v87_v3  ;;  %v63_v21 = vld [vmem:[%s1895_s0 + $0x140] sm:$0xff]  ;;  %v32_v22 = vld [vmem:[%s1895_s0 + $0x48] sm:$0xff]  ;;  %v33_v24 = vld [vmem:[%s1895_s0 + $0x50] sm:$0xff] }
   0x9   :  { %1090 = vmatpush3.msra.mxu0 %v87_v3  ;;  %1194 = vmatpush3.msra.mxu1 %v87_v3  ;;  %v64_v23 = vld [vmem:[%s1895_s0 + $0x148] sm:$0xff]  ;;  %v65_v25 = vld [vmem:[%s1895_s0 + $0x150] sm:$0xff]  ;;  %v34_v26 = vld [vmem:[%s1895_s0 + $0x58] sm:$0xff] }
   0xa   :  { %1091 = vmatprep.mubr.msk.f32.mxu0 %vm91_vm1, %v23_v4  ;;  %1139 = vmatprep.mubr.msk.f32.mxu1 %vm91_vm1, %v55_v5  ;;  %v66_v27 = vld [vmem:[%s1895_s0 + $0x158] sm:$0xff]  ;;  %v35_v28 = vld [vmem:[%s1895_s0 + $0x60] sm:$0xff]  ;;  %v36_v30 = vld [vmem:[%s1895_s0 + $0x68] sm:$0xff] }
   0xb   :  { %1092 = vmatmul.mubr.msk.f32.vlgmr.msra.gmra.mxu0 %vm91_vm1, %v24_v6  ;;  %1140 = vmatmul.mubr.msk.f32.vlgmr.msra.gmra.mxu1 %vm91_vm1, %v56_v7  ;;  %v67_v29 = vld [vmem:[%s1895_s0 + $0x160] sm:$0xff]  ;;  %v68_v31 = vld [vmem:[%s1895_s0 + $0x168] sm:$0xff]  ;;  %v37_v32 = vld [vmem:[%s1895_s0 + $0x70] sm:$0xff] }
   0xc   :  { %1094 = vmatprep.mubr.msk.f32.mxu0 %vm91_vm1, %v25_v8  ;;  %1142 = vmatprep.mubr.msk.f32.mxu1 %vm91_vm1, %v57_v9  ;;  %v69_v33 = vld [vmem:[%s1895_s0 + $0x170] sm:$0xff]  ;;  %v38_v34 = vld [vmem:[%s1895_s0 + $0x78] sm:$0xff]  ;;  %v39_v36 = vld [vmem:[%s1895_s0 + $0x80] sm:$0xff] }
   0xd   :  { %v70_v35 = vld [vmem:[%s1895_s0 + $0x178] sm:$0xff]  ;;  %v71_v37 = vld [vmem:[%s1895_s0 + $0x180] sm:$0xff]  ;;  %v40_v38 = vld [vmem:[%s1895_s0 + $0x88] sm:$0xff] }
   0xe   :  { %v72_v39 = vld [vmem:[%s1895_s0 + $0x188] sm:$0xff]  ;;  %v41_v40 = vld [vmem:[%s1895_s0 + $0x90] sm:$0xff]  ;;  %v42_v42 = vld [vmem:[%s1895_s0 + $0x98] sm:$0xff] }
   0xf   :  { %1095 = vmatmul.mubr.msk.f32.gmra.mxu0 %vm91_vm1, %v26_v10  ;;  %1143 = vmatmul.mubr.msk.f32.gmra.mxu1 %vm91_vm1, %v58_v11  ;;  %v73_v41 = vld [vmem:[%s1895_s0 + $0x190] sm:$0xff]  ;;  %v74_v43 = vld [vmem:[%s1895_s0 + $0x198] sm:$0xff]  ;;  %v43_v44 = vld [vmem:[%s1895_s0 + $0xa0] sm:$0xff] }
  0x10   :  { %1097 = vmatprep.mubr.msk.f32.mxu0 %vm91_vm1, %v27_v12  ;;  %1145 = vmatprep.mubr.msk.f32.mxu1 %vm91_vm1, %v59_v13  ;;  %v75_v45 = vld [vmem:[%s1895_s0 + $0x1a0] sm:$0xff]  ;;  %v44_v46 = vld [vmem:[%s1895_s0 + $0xa8] sm:$0xff]  ;;  %v45_v48 = vld [vmem:[%s1895_s0 + $0xb0] sm:$0xff] }
  0x11   :  { %v76_v47 = vld [vmem:[%s1895_s0 + $0x1a8] sm:$0xff]  ;;  %v77_v49 = vld [vmem:[%s1895_s0 + $0x1b0] sm:$0xff]  ;;  %v46_v50 = vld [vmem:[%s1895_s0 + $0xb8] sm:$0xff] }
  0x12   :  { %v78_v51 = vld [vmem:[%s1895_s0 + $0x1b8] sm:$0xff]  ;;  %v47_v52 = vld [vmem:[%s1895_s0 + $0xc0] sm:$0xff]  ;;  %v48_v54 = vld [vmem:[%s1895_s0 + $0xc8] sm:$0xff] }
  0x13   :  { %1098 = vmatmul.mubr.msk.f32.gmra.mxu0 %vm91_vm1, %v28_v14  ;;  %1146 = vmatmul.mubr.msk.f32.gmra.mxu1 %vm91_vm1, %v60_v15  ;;  %v79_v53 = vld [vmem:[%s1895_s0 + $0x1c0] sm:$0xff]  ;;  %v80_v55 = vld [vmem:[%s1895_s0 + $0x1c8] sm:$0xff]  ;;  %v49_v56 = vld [vmem:[%s1895_s0 + $0xd0] sm:$0xff] }
  0x14   :  { %1100 = vmatprep.mubr.msk.f32.mxu0 %vm91_vm1, %v29_v16  ;;  %1148 = vmatprep.mubr.msk.f32.mxu1 %vm91_vm1, %v61_v17  ;;  %v81_v57 = vld [vmem:[%s1895_s0 + $0x1d0] sm:$0xff]  ;;  %v50_v58 = vld [vmem:[%s1895_s0 + $0xd8] sm:$0xff]  ;;  %v51_v60 = vld [vmem:[%s1895_s0 + $0xe0] sm:$0xff] }
  0x15   :  { %v82_v59 = vld [vmem:[%s1895_s0 + $0x1d8] sm:$0xff]  ;;  %v83_v61 = vld [vmem:[%s1895_s0 + $0x1e0] sm:$0xff]  ;;  %v52_v62 = vld [vmem:[%s1895_s0 + $0xe8] sm:$0xff] }
  0x16   :  { %v84_v63 = vld [vmem:[%s1895_s0 + $0x1e8] sm:$0xff]  ;;  %v53_v0 = vld [vmem:[%s1895_s0 + $0xf0] sm:$0xff]  ;;  %v54_v2 = vld [vmem:[%s1895_s0 + $0xf8] sm:$0xff] }
  0x17   :  { %1101 = vmatmul.mubr.msk.f32.gmra.mxu0 %vm91_vm1, %v30_v18  ;;  %1149 = vmatmul.mubr.msk.f32.gmra.mxu1 %vm91_vm1, %v62_v19  ;;  %v85_v1 = vld [vmem:[%s1895_s0 + $0x1f0] sm:$0xff]  ;;  %v86_v3 = vld [vmem:[%s1895_s0 + $0x1f8] sm:$0xff]  ;;  %v1501_v4 = vld [vmem:[%s1896_s4] ss:$0 sm:$0xff] }
  0x18   :  { %1103 = vmatprep.mubr.msk.f32.mxu0 %vm91_vm1, %v31_v20  ;;  %1151 = vmatprep.mubr.msk.f32.mxu1 %vm91_vm1, %v63_v21  ;;  %v1506_v6 = vld [vmem:[%s1897_s5] ss:$0 sm:$0xff] }
  0x1b   :  { %1104 = vmatmul.mubr.msk.f32.gmra.mxu0 %vm91_vm1, %v32_v22  ;;  %1152 = vmatmul.mubr.msk.f32.gmra.mxu1 %vm91_vm1, %v64_v23 }
  0x1c   :  { %1106 = vmatprep.mubr.msk.f32.mxu0 %vm91_vm1, %v33_v24  ;;  %1154 = vmatprep.mubr.msk.f32.mxu1 %vm91_vm1, %v65_v25 }
  0x1f   :  { %1107 = vmatmul.mubr.msk.f32.gmra.mxu0 %vm91_vm1, %v34_v26  ;;  %1155 = vmatmul.mubr.msk.f32.gmra.mxu1 %vm91_vm1, %v66_v27 }
  0x20   :  { %1109 = vmatprep.mubr.msk.f32.mxu0 %vm91_vm1, %v35_v28  ;;  %1157 = vmatprep.mubr.msk.f32.mxu1 %vm91_vm1, %v67_v29 }
  0x23   :  { %1110 = vmatmul.mubr.msk.f32.gmra.mxu0 %vm91_vm1, %v36_v30  ;;  %1158 = vmatmul.mubr.msk.f32.gmra.mxu1 %vm91_vm1, %v68_v31 }
  0x24   :  { %1112 = vmatprep.mubr.msk.f32.mxu0 %vm91_vm1, %v37_v32  ;;  %1160 = vmatprep.mubr.msk.f32.mxu1 %vm91_vm1, %v69_v33 }
  0x27   :  { %1113 = vmatmul.mubr.msk.f32.gmra.mxu0 %vm91_vm1, %v38_v34  ;;  %1161 = vmatmul.mubr.msk.f32.gmra.mxu1 %vm91_vm1, %v70_v35 }
  0x28   :  { %1115 = vmatprep.mubr.msk.f32.mxu0 %vm91_vm1, %v39_v36  ;;  %1163 = vmatprep.mubr.msk.f32.mxu1 %vm91_vm1, %v71_v37 }
  0x2b   :  { %1116 = vmatmul.mubr.msk.f32.gmra.mxu0 %vm91_vm1, %v40_v38  ;;  %1164 = vmatmul.mubr.msk.f32.gmra.mxu1 %vm91_vm1, %v72_v39 }
  0x2c   :  { %1118 = vmatprep.mubr.msk.f32.mxu0 %vm91_vm1, %v41_v40  ;;  %1166 = vmatprep.mubr.msk.f32.mxu1 %vm91_vm1, %v73_v41 }
  0x2f   :  { %1119 = vmatmul.mubr.msk.f32.gmra.mxu0 %vm91_vm1, %v42_v42  ;;  %1167 = vmatmul.mubr.msk.f32.gmra.mxu1 %vm91_vm1, %v74_v43 }
  0x30   :  { %1121 = vmatprep.mubr.msk.f32.mxu0 %vm91_vm1, %v43_v44  ;;  %1169 = vmatprep.mubr.msk.f32.mxu1 %vm91_vm1, %v75_v45 }
  0x33   :  { %1122 = vmatmul.mubr.msk.f32.gmra.mxu0 %vm91_vm1, %v44_v46  ;;  %1170 = vmatmul.mubr.msk.f32.gmra.mxu1 %vm91_vm1, %v76_v47 }
  0x34   :  { %1124 = vmatprep.mubr.msk.f32.mxu0 %vm91_vm1, %v45_v48  ;;  %1172 = vmatprep.mubr.msk.f32.mxu1 %vm91_vm1, %v77_v49 }
  0x37   :  { %1125 = vmatmul.mubr.msk.f32.gmra.mxu0 %vm91_vm1, %v46_v50  ;;  %1173 = vmatmul.mubr.msk.f32.gmra.mxu1 %vm91_vm1, %v78_v51 }
  0x38   :  { %1127 = vmatprep.mubr.msk.f32.mxu0 %vm91_vm1, %v47_v52  ;;  %1175 = vmatprep.mubr.msk.f32.mxu1 %vm91_vm1, %v79_v53 }
  0x3b   :  { %1128 = vmatmul.mubr.msk.f32.gmra.mxu0 %vm91_vm1, %v48_v54  ;;  %1176 = vmatmul.mubr.msk.f32.gmra.mxu1 %vm91_vm1, %v80_v55 }
  0x3c   :  { %1130 = vmatprep.mubr.msk.f32.mxu0 %vm91_vm1, %v49_v56  ;;  %1178 = vmatprep.mubr.msk.f32.mxu1 %vm91_vm1, %v81_v57 }
  0x3f   :  { %1131 = vmatmul.mubr.msk.f32.gmra.mxu0 %vm91_vm1, %v50_v58  ;;  %1179 = vmatmul.mubr.msk.f32.gmra.mxu1 %vm91_vm1, %v82_v59 }
  0x40   :  { %1133 = vmatprep.mubr.msk.f32.mxu0 %vm91_vm1, %v51_v60  ;;  %1181 = vmatprep.mubr.msk.f32.mxu1 %vm91_vm1, %v83_v61 }
  0x43   :  { %1134 = vmatmul.mubr.msk.f32.gmra.mxu0 %vm91_vm1, %v52_v62  ;;  %1182 = vmatmul.mubr.msk.f32.gmra.mxu1 %vm91_vm1, %v84_v63 }
  0x44   :  { %1136 = vmatprep.mubr.msk.f32.mxu0 %vm91_vm1, %v53_v0  ;;  %1184 = vmatprep.mubr.msk.f32.mxu1 %vm91_vm1, %v85_v1 }
  0x47   :  { %1137 = vmatmul.mubr.msk.f32.gmra.mxu0 %vm91_vm1, %v54_v2  ;;  %1185 = vmatmul.mubr.msk.f32.gmra.mxu1 %vm91_vm1, %v86_v3 }
  0xcb   :  { %v1093_v5 = vpop.f32.mrf.mxu0  ;;  %v1141_v7 = vpop.f32.mrf.mxu1 }
  0xcc   :  { %v681_v8 = vmul.f32 %v1093_v5, %v1501_v4  ;;  %v713_v9 = vmul.f32 %v1141_v7, %v1501_v4 }
  0xcd   :  { %v354_v10 = vpop.f32.mrf.mxu0  ;;  %v514_v11 = vpop.f32.mrf.mxu1 }
  0xce   :  { %v752_v12 = vadd.f32 %v1506_v6, %v681_v8  ;;  %v784_v13 = vadd.f32 %v1506_v6, %v713_v9  ;;  %v680_v14 = vmul.f32 %v1501_v4, %v354_v10  ;;  %v712_v15 = vmul.f32 %v1501_v4, %v514_v11 }
  0xcf   :  { %v1096_v16 = vpop.f32.mrf.mxu0  ;;  %v1144_v17 = vpop.f32.mrf.mxu1 }
  0xd0   :  { %v816_v18 = vmax.f32 %v752_v12, 0.0  ;;  %v848_v19 = vmax.f32 %v784_v13, 0.0  ;;  %v751_v20 = vadd.f32 %v1506_v6, %v680_v14  ;;  %v783_v21 = vadd.f32 %v1506_v6, %v712_v15 }
  0xd1   :  { %v683_v22 = vmul.f32 %v1096_v16, %v1501_v4  ;;  %v715_v23 = vmul.f32 %v1144_v17, %v1501_v4  ;;  %v364_v24 = vpop.f32.mrf.mxu0  ;;  %v524_v25 = vpop.f32.mrf.mxu1 }
  0xd2   :  { %881 = vst.msk [vmem:[%s1898_s6 + $0x8] sm:$0xff] %vm879_vm2, %v816_v18  ;;  %913 = vst.msk [vmem:[%s1898_s6 + $0x108] sm:$0xff] %vm879_vm2, %v848_v19  ;;  %v815_v26 = vmax.f32 %v751_v20, 0.0  ;;  %v847_v27 = vmax.f32 %v783_v21, 0.0  ;;  %v682_v28 = vmul.f32 %v1501_v4, %v364_v24  ;;  %v714_v29 = vmul.f32 %v1501_v4, %v524_v25 }
  0xd3   :  { %v754_v30 = vadd.f32 %v1506_v6, %v683_v22  ;;  %v786_v31 = vadd.f32 %v1506_v6, %v715_v23  ;;  %v1099_v32 = vpop.f32.mrf.mxu0  ;;  %v1147_v33 = vpop.f32.mrf.mxu1 }
  0xd4   :  { %880 = vst.msk [vmem:[%s1898_s6] sm:$0xff] %vm879_vm2, %v815_v26  ;;  %912 = vst.msk [vmem:[%s1898_s6 + $0x100] sm:$0xff] %vm879_vm2, %v847_v27  ;;  %v753_v34 = vadd.f32 %v1506_v6, %v682_v28  ;;  %v785_v35 = vadd.f32 %v1506_v6, %v714_v29  ;;  %v685_v36 = vmul.f32 %v1099_v32, %v1501_v4 }
  0xd5   :  { %v717_v37 = vmul.f32 %v1147_v33, %v1501_v4  ;;  %v818_v38 = vmax.f32 %v754_v30, 0.0  ;;  %v850_v39 = vmax.f32 %v786_v31, 0.0  ;;  %v374_v40 = vpop.f32.mrf.mxu0  ;;  %v534_v41 = vpop.f32.mrf.mxu1 }
  0xd6   :  { %v817_v42 = vmax.f32 %v753_v34, 0.0  ;;  %v849_v43 = vmax.f32 %v785_v35, 0.0  ;;  %v756_v44 = vadd.f32 %v1506_v6, %v685_v36  ;;  %v684_v46 = vmul.f32 %v1501_v4, %v374_v40 }
  0xd7   :  { %v788_v45 = vadd.f32 %v1506_v6, %v717_v37  ;;  %883 = vst.msk [vmem:[%s1898_s6 + $0x18] sm:$0xff] %vm879_vm2, %v818_v38  ;;  %915 = vst.msk [vmem:[%s1898_s6 + $0x118] sm:$0xff] %vm879_vm2, %v850_v39  ;;  %v716_v47 = vmul.f32 %v1501_v4, %v534_v41  ;;  %v1102_v48 = vpop.f32.mrf.mxu0  ;;  %v1150_v49 = vpop.f32.mrf.mxu1 }
  0xd8   :  { %882 = vst.msk [vmem:[%s1898_s6 + $0x10] sm:$0xff] %vm879_vm2, %v817_v42  ;;  %914 = vst.msk [vmem:[%s1898_s6 + $0x110] sm:$0xff] %vm879_vm2, %v849_v43  ;;  %v820_v50 = vmax.f32 %v756_v44, 0.0  ;;  %v687_v52 = vmul.f32 %v1102_v48, %v1501_v4  ;;  %v719_v53 = vmul.f32 %v1150_v49, %v1501_v4  ;;  %v755_v54 = vadd.f32 %v1506_v6, %v684_v46 }
  0xd9   :  { %v852_v51 = vmax.f32 %v788_v45, 0.0  ;;  %v787_v55 = vadd.f32 %v1506_v6, %v716_v47  ;;  %v384_v56 = vpop.f32.mrf.mxu0  ;;  %v544_v57 = vpop.f32.mrf.mxu1 }
  0xda   :  { %885 = vst.msk [vmem:[%s1898_s6 + $0x28] sm:$0xff] %vm879_vm2, %v820_v50  ;;  %v758_v58 = vadd.f32 %v1506_v6, %v687_v52  ;;  %v790_v59 = vadd.f32 %v1506_v6, %v719_v53  ;;  %v686_v60 = vmul.f32 %v1501_v4, %v384_v56  ;;  %v718_v61 = vmul.f32 %v1501_v4, %v544_v57 }
  0xdb   :  { %917 = vst.msk [vmem:[%s1898_s6 + $0x128] sm:$0xff] %vm879_vm2, %v852_v51  ;;  %v819_v62 = vmax.f32 %v755_v54, 0.0  ;;  %v851_v63 = vmax.f32 %v787_v55, 0.0  ;;  %v1105_v0 = vpop.f32.mrf.mxu0  ;;  %v1153_v1 = vpop.f32.mrf.mxu1 }
  0xdc   :  { %v822_v2 = vmax.f32 %v758_v58, 0.0  ;;  %v854_v3 = vmax.f32 %v790_v59, 0.0  ;;  %v757_v5 = vadd.f32 %v1506_v6, %v686_v60  ;;  %v789_v7 = vadd.f32 %v1506_v6, %v718_v61 }
  0xdd   :  { %884 = vst.msk [vmem:[%s1898_s6 + $0x20] sm:$0xff] %vm879_vm2, %v819_v62  ;;  %916 = vst.msk [vmem:[%s1898_s6 + $0x120] sm:$0xff] %vm879_vm2, %v851_v63  ;;  %v689_v8 = vmul.f32 %v1105_v0, %v1501_v4  ;;  %v721_v9 = vmul.f32 %v1153_v1, %v1501_v4  ;;  %v394_v10 = vpop.f32.mrf.mxu0  ;;  %v554_v11 = vpop.f32.mrf.mxu1 }
  0xde   :  { %887 = vst.msk [vmem:[%s1898_s6 + $0x38] sm:$0xff] %vm879_vm2, %v822_v2  ;;  %919 = vst.msk [vmem:[%s1898_s6 + $0x138] sm:$0xff] %vm879_vm2, %v854_v3  ;;  %v821_v12 = vmax.f32 %v757_v5, 0.0  ;;  %v853_v13 = vmax.f32 %v789_v7, 0.0  ;;  %v688_v14 = vmul.f32 %v1501_v4, %v394_v10  ;;  %v720_v15 = vmul.f32 %v1501_v4, %v554_v11 }
  0xdf   :  { %v760_v16 = vadd.f32 %v1506_v6, %v689_v8  ;;  %v792_v17 = vadd.f32 %v1506_v6, %v721_v9  ;;  %v1108_v18 = vpop.f32.mrf.mxu0  ;;  %v1156_v19 = vpop.f32.mrf.mxu1 }
  0xe0   :  { %886 = vst.msk [vmem:[%s1898_s6 + $0x30] sm:$0xff] %vm879_vm2, %v821_v12  ;;  %918 = vst.msk [vmem:[%s1898_s6 + $0x130] sm:$0xff] %vm879_vm2, %v853_v13  ;;  %v759_v20 = vadd.f32 %v1506_v6, %v688_v14  ;;  %v791_v21 = vadd.f32 %v1506_v6, %v720_v15  ;;  %v691_v22 = vmul.f32 %v1108_v18, %v1501_v4 }
  0xe1   :  { %v723_v23 = vmul.f32 %v1156_v19, %v1501_v4  ;;  %v824_v24 = vmax.f32 %v760_v16, 0.0  ;;  %v856_v25 = vmax.f32 %v792_v17, 0.0  ;;  %v404_v26 = vpop.f32.mrf.mxu0  ;;  %v564_v27 = vpop.f32.mrf.mxu1 }
  0xe2   :  { %v823_v28 = vmax.f32 %v759_v20, 0.0  ;;  %v855_v29 = vmax.f32 %v791_v21, 0.0  ;;  %v762_v30 = vadd.f32 %v1506_v6, %v691_v22  ;;  %v690_v32 = vmul.f32 %v1501_v4, %v404_v26 }
  0xe3   :  { %v794_v31 = vadd.f32 %v1506_v6, %v723_v23  ;;  %889 = vst.msk [vmem:[%s1898_s6 + $0x48] sm:$0xff] %vm879_vm2, %v824_v24  ;;  %921 = vst.msk [vmem:[%s1898_s6 + $0x148] sm:$0xff] %vm879_vm2, %v856_v25  ;;  %v722_v33 = vmul.f32 %v1501_v4, %v564_v27  ;;  %v1111_v34 = vpop.f32.mrf.mxu0  ;;  %v1159_v35 = vpop.f32.mrf.mxu1 }
  0xe4   :  { %888 = vst.msk [vmem:[%s1898_s6 + $0x40] sm:$0xff] %vm879_vm2, %v823_v28  ;;  %920 = vst.msk [vmem:[%s1898_s6 + $0x140] sm:$0xff] %vm879_vm2, %v855_v29  ;;  %v826_v36 = vmax.f32 %v762_v30, 0.0  ;;  %v693_v38 = vmul.f32 %v1111_v34, %v1501_v4  ;;  %v725_v39 = vmul.f32 %v1159_v35, %v1501_v4  ;;  %v761_v40 = vadd.f32 %v1506_v6, %v690_v32 }
  0xe5   :  { %v858_v37 = vmax.f32 %v794_v31, 0.0  ;;  %v793_v41 = vadd.f32 %v1506_v6, %v722_v33  ;;  %v414_v42 = vpop.f32.mrf.mxu0  ;;  %v574_v43 = vpop.f32.mrf.mxu1 }
  0xe6   :  { %891 = vst.msk [vmem:[%s1898_s6 + $0x58] sm:$0xff] %vm879_vm2, %v826_v36  ;;  %v764_v44 = vadd.f32 %v1506_v6, %v693_v38  ;;  %v796_v45 = vadd.f32 %v1506_v6, %v725_v39  ;;  %v692_v46 = vmul.f32 %v1501_v4, %v414_v42  ;;  %v724_v47 = vmul.f32 %v1501_v4, %v574_v43 }
  0xe7   :  { %923 = vst.msk [vmem:[%s1898_s6 + $0x158] sm:$0xff] %vm879_vm2, %v858_v37  ;;  %v825_v48 = vmax.f32 %v761_v40, 0.0  ;;  %v857_v49 = vmax.f32 %v793_v41, 0.0  ;;  %v1114_v50 = vpop.f32.mrf.mxu0  ;;  %v1162_v51 = vpop.f32.mrf.mxu1 }
  0xe8   :  { %v828_v52 = vmax.f32 %v764_v44, 0.0  ;;  %v860_v53 = vmax.f32 %v796_v45, 0.0  ;;  %v763_v54 = vadd.f32 %v1506_v6, %v692_v46  ;;  %v795_v55 = vadd.f32 %v1506_v6, %v724_v47 }
  0xe9   :  { %890 = vst.msk [vmem:[%s1898_s6 + $0x50] sm:$0xff] %vm879_vm2, %v825_v48  ;;  %922 = vst.msk [vmem:[%s1898_s6 + $0x150] sm:$0xff] %vm879_vm2, %v857_v49  ;;  %v695_v56 = vmul.f32 %v1114_v50, %v1501_v4  ;;  %v727_v57 = vmul.f32 %v1162_v51, %v1501_v4  ;;  %v424_v58 = vpop.f32.mrf.mxu0  ;;  %v584_v59 = vpop.f32.mrf.mxu1 }
  0xea   :  { %893 = vst.msk [vmem:[%s1898_s6 + $0x68] sm:$0xff] %vm879_vm2, %v828_v52  ;;  %925 = vst.msk [vmem:[%s1898_s6 + $0x168] sm:$0xff] %vm879_vm2, %v860_v53  ;;  %v827_v60 = vmax.f32 %v763_v54, 0.0  ;;  %v859_v61 = vmax.f32 %v795_v55, 0.0  ;;  %v694_v62 = vmul.f32 %v1501_v4, %v424_v58  ;;  %v726_v63 = vmul.f32 %v1501_v4, %v584_v59 }
  0xeb   :  { %v766_v0 = vadd.f32 %v1506_v6, %v695_v56  ;;  %v798_v1 = vadd.f32 %v1506_v6, %v727_v57  ;;  %v1117_v2 = vpop.f32.mrf.mxu0  ;;  %v1165_v3 = vpop.f32.mrf.mxu1 }
  0xec   :  { %892 = vst.msk [vmem:[%s1898_s6 + $0x60] sm:$0xff] %vm879_vm2, %v827_v60  ;;  %924 = vst.msk [vmem:[%s1898_s6 + $0x160] sm:$0xff] %vm879_vm2, %v859_v61  ;;  %v765_v5 = vadd.f32 %v1506_v6, %v694_v62  ;;  %v797_v7 = vadd.f32 %v1506_v6, %v726_v63  ;;  %v697_v8 = vmul.f32 %v1117_v2, %v1501_v4 }
  0xed   :  { %v729_v9 = vmul.f32 %v1165_v3, %v1501_v4  ;;  %v830_v10 = vmax.f32 %v766_v0, 0.0  ;;  %v862_v11 = vmax.f32 %v798_v1, 0.0  ;;  %v434_v12 = vpop.f32.mrf.mxu0  ;;  %v594_v13 = vpop.f32.mrf.mxu1 }
  0xee   :  { %v829_v14 = vmax.f32 %v765_v5, 0.0  ;;  %v861_v15 = vmax.f32 %v797_v7, 0.0  ;;  %v768_v16 = vadd.f32 %v1506_v6, %v697_v8  ;;  %v696_v18 = vmul.f32 %v1501_v4, %v434_v12 }
  0xef   :  { %v800_v17 = vadd.f32 %v1506_v6, %v729_v9  ;;  %895 = vst.msk [vmem:[%s1898_s6 + $0x78] sm:$0xff] %vm879_vm2, %v830_v10  ;;  %927 = vst.msk [vmem:[%s1898_s6 + $0x178] sm:$0xff] %vm879_vm2, %v862_v11  ;;  %v728_v19 = vmul.f32 %v1501_v4, %v594_v13  ;;  %v1120_v20 = vpop.f32.mrf.mxu0  ;;  %v1168_v21 = vpop.f32.mrf.mxu1 }
  0xf0   :  { %894 = vst.msk [vmem:[%s1898_s6 + $0x70] sm:$0xff] %vm879_vm2, %v829_v14  ;;  %926 = vst.msk [vmem:[%s1898_s6 + $0x170] sm:$0xff] %vm879_vm2, %v861_v15  ;;  %v832_v22 = vmax.f32 %v768_v16, 0.0  ;;  %v699_v24 = vmul.f32 %v1120_v20, %v1501_v4  ;;  %v731_v25 = vmul.f32 %v1168_v21, %v1501_v4  ;;  %v767_v26 = vadd.f32 %v1506_v6, %v696_v18 }
  0xf1   :  { %v864_v23 = vmax.f32 %v800_v17, 0.0  ;;  %v799_v27 = vadd.f32 %v1506_v6, %v728_v19  ;;  %v444_v28 = vpop.f32.mrf.mxu0  ;;  %v604_v29 = vpop.f32.mrf.mxu1 }
  0xf2   :  { %897 = vst.msk [vmem:[%s1898_s6 + $0x88] sm:$0xff] %vm879_vm2, %v832_v22  ;;  %v770_v30 = vadd.f32 %v1506_v6, %v699_v24  ;;  %v802_v31 = vadd.f32 %v1506_v6, %v731_v25  ;;  %v698_v32 = vmul.f32 %v1501_v4, %v444_v28  ;;  %v730_v33 = vmul.f32 %v1501_v4, %v604_v29 }
  0xf3   :  { %929 = vst.msk [vmem:[%s1898_s6 + $0x188] sm:$0xff] %vm879_vm2, %v864_v23  ;;  %v831_v34 = vmax.f32 %v767_v26, 0.0  ;;  %v863_v35 = vmax.f32 %v799_v27, 0.0  ;;  %v1123_v36 = vpop.f32.mrf.mxu0  ;;  %v1171_v37 = vpop.f32.mrf.mxu1 }
  0xf4   :  { %v834_v38 = vmax.f32 %v770_v30, 0.0  ;;  %v866_v39 = vmax.f32 %v802_v31, 0.0  ;;  %v769_v40 = vadd.f32 %v1506_v6, %v698_v32  ;;  %v801_v41 = vadd.f32 %v1506_v6, %v730_v33 }
  0xf5   :  { %896 = vst.msk [vmem:[%s1898_s6 + $0x80] sm:$0xff] %vm879_vm2, %v831_v34  ;;  %928 = vst.msk [vmem:[%s1898_s6 + $0x180] sm:$0xff] %vm879_vm2, %v863_v35  ;;  %v701_v42 = vmul.f32 %v1123_v36, %v1501_v4  ;;  %v733_v43 = vmul.f32 %v1171_v37, %v1501_v4  ;;  %v454_v44 = vpop.f32.mrf.mxu0  ;;  %v614_v45 = vpop.f32.mrf.mxu1 }
  0xf6   :  { %899 = vst.msk [vmem:[%s1898_s6 + $0x98] sm:$0xff] %vm879_vm2, %v834_v38  ;;  %931 = vst.msk [vmem:[%s1898_s6 + $0x198] sm:$0xff] %vm879_vm2, %v866_v39  ;;  %v833_v46 = vmax.f32 %v769_v40, 0.0  ;;  %v865_v47 = vmax.f32 %v801_v41, 0.0  ;;  %v700_v48 = vmul.f32 %v1501_v4, %v454_v44  ;;  %v732_v49 = vmul.f32 %v1501_v4, %v614_v45 }
  0xf7   :  { %v772_v50 = vadd.f32 %v1506_v6, %v701_v42  ;;  %v804_v51 = vadd.f32 %v1506_v6, %v733_v43  ;;  %v1126_v52 = vpop.f32.mrf.mxu0  ;;  %v1174_v53 = vpop.f32.mrf.mxu1 }
  0xf8   :  { %898 = vst.msk [vmem:[%s1898_s6 + $0x90] sm:$0xff] %vm879_vm2, %v833_v46  ;;  %930 = vst.msk [vmem:[%s1898_s6 + $0x190] sm:$0xff] %vm879_vm2, %v865_v47  ;;  %v771_v54 = vadd.f32 %v1506_v6, %v700_v48  ;;  %v803_v55 = vadd.f32 %v1506_v6, %v732_v49  ;;  %v703_v56 = vmul.f32 %v1126_v52, %v1501_v4 }
  0xf9   :  { %v735_v57 = vmul.f32 %v1174_v53, %v1501_v4  ;;  %v836_v58 = vmax.f32 %v772_v50, 0.0  ;;  %v868_v59 = vmax.f32 %v804_v51, 0.0  ;;  %v464_v60 = vpop.f32.mrf.mxu0  ;;  %v624_v61 = vpop.f32.mrf.mxu1 }
  0xfa   :  { %v835_v62 = vmax.f32 %v771_v54, 0.0  ;;  %v867_v63 = vmax.f32 %v803_v55, 0.0  ;;  %v774_v0 = vadd.f32 %v1506_v6, %v703_v56  ;;  %v702_v2 = vmul.f32 %v1501_v4, %v464_v60 }
  0xfb   :  { %v806_v1 = vadd.f32 %v1506_v6, %v735_v57  ;;  %901 = vst.msk [vmem:[%s1898_s6 + $0xa8] sm:$0xff] %vm879_vm2, %v836_v58  ;;  %933 = vst.msk [vmem:[%s1898_s6 + $0x1a8] sm:$0xff] %vm879_vm2, %v868_v59  ;;  %v734_v3 = vmul.f32 %v1501_v4, %v624_v61  ;;  %v1129_v5 = vpop.f32.mrf.mxu0  ;;  %v1177_v7 = vpop.f32.mrf.mxu1 }
  0xfc   :  { %900 = vst.msk [vmem:[%s1898_s6 + $0xa0] sm:$0xff] %vm879_vm2, %v835_v62  ;;  %932 = vst.msk [vmem:[%s1898_s6 + $0x1a0] sm:$0xff] %vm879_vm2, %v867_v63  ;;  %v838_v8 = vmax.f32 %v774_v0, 0.0  ;;  %v705_v10 = vmul.f32 %v1129_v5, %v1501_v4  ;;  %v737_v11 = vmul.f32 %v1177_v7, %v1501_v4  ;;  %v773_v12 = vadd.f32 %v1506_v6, %v702_v2 }
  0xfd   :  { %v870_v9 = vmax.f32 %v806_v1, 0.0  ;;  %v805_v13 = vadd.f32 %v1506_v6, %v734_v3  ;;  %v474_v14 = vpop.f32.mrf.mxu0  ;;  %v634_v15 = vpop.f32.mrf.mxu1 }
  0xfe   :  { %903 = vst.msk [vmem:[%s1898_s6 + $0xb8] sm:$0xff] %vm879_vm2, %v838_v8  ;;  %v776_v16 = vadd.f32 %v1506_v6, %v705_v10  ;;  %v808_v17 = vadd.f32 %v1506_v6, %v737_v11  ;;  %v704_v18 = vmul.f32 %v1501_v4, %v474_v14  ;;  %v736_v19 = vmul.f32 %v1501_v4, %v634_v15 }
  0xff   :  { %935 = vst.msk [vmem:[%s1898_s6 + $0x1b8] sm:$0xff] %vm879_vm2, %v870_v9  ;;  %v837_v20 = vmax.f32 %v773_v12, 0.0  ;;  %v869_v21 = vmax.f32 %v805_v13, 0.0  ;;  %v1132_v22 = vpop.f32.mrf.mxu0  ;;  %v1180_v23 = vpop.f32.mrf.mxu1 }
 0x100   :  { %v840_v24 = vmax.f32 %v776_v16, 0.0  ;;  %v872_v25 = vmax.f32 %v808_v17, 0.0  ;;  %v775_v26 = vadd.f32 %v1506_v6, %v704_v18  ;;  %v807_v27 = vadd.f32 %v1506_v6, %v736_v19 }
 0x101   :  { %902 = vst.msk [vmem:[%s1898_s6 + $0xb0] sm:$0xff] %vm879_vm2, %v837_v20  ;;  %934 = vst.msk [vmem:[%s1898_s6 + $0x1b0] sm:$0xff] %vm879_vm2, %v869_v21  ;;  %v707_v28 = vmul.f32 %v1132_v22, %v1501_v4  ;;  %v739_v29 = vmul.f32 %v1180_v23, %v1501_v4  ;;  %v484_v30 = vpop.f32.mrf.mxu0  ;;  %v644_v31 = vpop.f32.mrf.mxu1 }
 0x102   :  { %905 = vst.msk [vmem:[%s1898_s6 + $0xc8] sm:$0xff] %vm879_vm2, %v840_v24  ;;  %937 = vst.msk [vmem:[%s1898_s6 + $0x1c8] sm:$0xff] %vm879_vm2, %v872_v25  ;;  %v839_v32 = vmax.f32 %v775_v26, 0.0  ;;  %v871_v33 = vmax.f32 %v807_v27, 0.0  ;;  %v706_v34 = vmul.f32 %v1501_v4, %v484_v30  ;;  %v738_v35 = vmul.f32 %v1501_v4, %v644_v31 }
 0x103   :  { %v778_v36 = vadd.f32 %v1506_v6, %v707_v28  ;;  %v810_v37 = vadd.f32 %v1506_v6, %v739_v29  ;;  %v1135_v38 = vpop.f32.mrf.mxu0  ;;  %v1183_v39 = vpop.f32.mrf.mxu1 }
 0x104   :  { %904 = vst.msk [vmem:[%s1898_s6 + $0xc0] sm:$0xff] %vm879_vm2, %v839_v32  ;;  %936 = vst.msk [vmem:[%s1898_s6 + $0x1c0] sm:$0xff] %vm879_vm2, %v871_v33  ;;  %v777_v40 = vadd.f32 %v1506_v6, %v706_v34  ;;  %v809_v41 = vadd.f32 %v1506_v6, %v738_v35  ;;  %v709_v42 = vmul.f32 %v1135_v38, %v1501_v4 }
 0x105   :  { %v741_v43 = vmul.f32 %v1183_v39, %v1501_v4  ;;  %v842_v44 = vmax.f32 %v778_v36, 0.0  ;;  %v874_v45 = vmax.f32 %v810_v37, 0.0  ;;  %v494_v46 = vpop.f32.mrf.mxu0  ;;  %v654_v47 = vpop.f32.mrf.mxu1 }
 0x106   :  { %v841_v48 = vmax.f32 %v777_v40, 0.0  ;;  %v873_v49 = vmax.f32 %v809_v41, 0.0  ;;  %v780_v50 = vadd.f32 %v1506_v6, %v709_v42  ;;  %v708_v52 = vmul.f32 %v1501_v4, %v494_v46 }
 0x107   :  { %v812_v51 = vadd.f32 %v1506_v6, %v741_v43  ;;  %907 = vst.msk [vmem:[%s1898_s6 + $0xd8] sm:$0xff] %vm879_vm2, %v842_v44  ;;  %939 = vst.msk [vmem:[%s1898_s6 + $0x1d8] sm:$0xff] %vm879_vm2, %v874_v45  ;;  %v740_v53 = vmul.f32 %v1501_v4, %v654_v47  ;;  %v1138_v54 = vpop.f32.mrf.mxu0  ;;  %v1186_v55 = vpop.f32.mrf.mxu1 }
 0x108   :  { %906 = vst.msk [vmem:[%s1898_s6 + $0xd0] sm:$0xff] %vm879_vm2, %v841_v48  ;;  %938 = vst.msk [vmem:[%s1898_s6 + $0x1d0] sm:$0xff] %vm879_vm2, %v873_v49  ;;  %v844_v56 = vmax.f32 %v780_v50, 0.0  ;;  %v711_v58 = vmul.f32 %v1138_v54, %v1501_v4  ;;  %v743_v59 = vmul.f32 %v1186_v55, %v1501_v4  ;;  %v779_v60 = vadd.f32 %v1506_v6, %v708_v52 }
 0x109   :  { %v876_v57 = vmax.f32 %v812_v51, 0.0  ;;  %v811_v61 = vadd.f32 %v1506_v6, %v740_v53  ;;  %v504_v62 = vpop.f32.mrf.mxu0  ;;  %v664_v63 = vpop.f32.mrf.mxu1 }
 0x10a   :  { %909 = vst.msk [vmem:[%s1898_s6 + $0xe8] sm:$0xff] %vm879_vm2, %v844_v56  ;;  %v782_v0 = vadd.f32 %v1506_v6, %v711_v58  ;;  %v814_v1 = vadd.f32 %v1506_v6, %v743_v59  ;;  %v710_v2 = vmul.f32 %v1501_v4, %v504_v62  ;;  %v742_v3 = vmul.f32 %v1501_v4, %v664_v63 }
 0x10b   :  { %941 = vst.msk [vmem:[%s1898_s6 + $0x1e8] sm:$0xff] %vm879_vm2, %v876_v57  ;;  %v843_v5 = vmax.f32 %v779_v60, 0.0  ;;  %v875_v7 = vmax.f32 %v811_v61, 0.0 }
 0x10c   :  { %v846_v8 = vmax.f32 %v782_v0, 0.0  ;;  %v878_v9 = vmax.f32 %v814_v1, 0.0  ;;  %v781_v10 = vadd.f32 %v1506_v6, %v710_v2  ;;  %v813_v11 = vadd.f32 %v1506_v6, %v742_v3 }
 0x10d   :  { %908 = vst.msk [vmem:[%s1898_s6 + $0xe0] sm:$0xff] %vm879_vm2, %v843_v5  ;;  %940 = vst.msk [vmem:[%s1898_s6 + $0x1e0] sm:$0xff] %vm879_vm2, %v875_v7 }
 0x10e   :  { %911 = vst.msk [vmem:[%s1898_s6 + $0xf8] sm:$0xff] %vm879_vm2, %v846_v8  ;;  %943 = vst.msk [vmem:[%s1898_s6 + $0x1f8] sm:$0xff] %vm879_vm2, %v878_v9  ;;  %v845_v4 = vmax.f32 %v781_v10, 0.0  ;;  %v877_v6 = vmax.f32 %v813_v11, 0.0 }
 0x110   :  { %910 = vst.msk [vmem:[%s1898_s6 + $0xf0] sm:$0xff] %vm879_vm2, %v845_v4  ;;  %942 = vst.msk [vmem:[%s1898_s6 + $0x1f0] sm:$0xff] %vm879_vm2, %v877_v6 }

// kernel: tile.42
= control target key start
LH: loop header
LB: loop body
LE: loop exit
PB: predicated region body
PF: predicated region fallthrough
CT: control target
= control target key end

     0   :  { %s28_s0 = inlined_call_operand.vmem [shape: f32[8], index: 0, kind: input, shape index: {}]   ;;  %s29_s1 = inlined_call_operand.vmem [shape: f32[9,8], index: 1, kind: output, shape index: {}]  }
   0x1   :  { %v4_v0 = vld [vmem:[%s28_s0] ss:$0 sm:$0xff] }
   0x2   :  { %5 = vst [vmem:[%s29_s1] sm:$0xff] %v4_v0  ;;  %8 = vst [vmem:[%s29_s1 + $0x8] sm:$0xff] %v4_v0 }

// kernel: tile.43
= control target key start
LH: loop header
LB: loop body
LE: loop exit
PB: predicated region body
PF: predicated region fallthrough
CT: control target
= control target key end

     0   :  { %s77_s10 = smov 64   ;;  %s78_s11 = smov 48   ;;  %vm3_vm0 = vcmask 64512   ;;  %vm9_vm1 = vcmask 589312   ;;  %vm15_vm2 = vcmask 523712   ;;  %vm21_vm3 = vcmask 458112   ;;  %s125_s0 = inlined_call_operand.vmem [shape: f32[9,8], index: 0, kind: input, shape index: {}]   ;;  %s126_s1 = inlined_call_operand.vmem [shape: f32[1,72], index: 1, kind: output, shape index: {}]  }
   0x1   :  { %v61_v0 = vld [vmem:[%s125_s0 + $0x8] sm:$0x1]   ;;  %v63_v1 = vld [vmem:[%s125_s0 + $0x6] sm:$0x1]   ;;  %v62_v2 = vld [vmem:[%s125_s0 + $0x7] sm:$0x1]  }
   0x2   :  { %7 = vrot.lane.b32.xlu0 %v61_v0, %s77_s10  ;;  %19 = vrot.lane.b32.xlu1 %v63_v1, %s78_s11  ;;  %v64_v3 = vld [vmem:[%s125_s0 + $0x5] sm:$0x1]   ;;  %v2_v4 = vld [vmem:[%s125_s0] sm:$0x1]   ;;  %s79_s18 = smov 56   ;;  %s80_s19 = smov 40  }
   0x3   :  { %4 = vst.msk [vmem:[#allocation0] sm:$0x1] %vm3_vm0, %v2_v4   ;;  %v65_v5 = vld [vmem:[%s125_s0 + $0x4] sm:$0x1]   ;;  %v66_v6 = vld [vmem:[%s125_s0 + $0x3] sm:$0x1]  }
   0x4   :  { %s81_s24 = smov 32   ;;  %s82_s25 = smov 24   ;;  %v67_v7 = vld [vmem:[%s125_s0 + $0x2] sm:$0x1]   ;;  %v68_v8 = vld [vmem:[%s125_s0 + $0x1] sm:$0x1]  }
   0x5   :  { %s83_s0 = smov 16   ;;  %s84_s30 = smov 8   ;;  %vm27_vm4 = vcmask 392512   ;;  %vm33_vm5 = vcmask 326912   ;;  %vm39_vm6 = vcmask 261312   ;;  %vm45_vm7 = vcmask 195712  }
   0x6   :  { %13 = vrot.lane.b32.xlu0 %v62_v2, %s79_s18  ;;  %25 = vrot.lane.b32.xlu1 %v64_v3, %s80_s19  ;;  %vm51_vm8 = vcmask 130112  }
   0xa   :  { %31 = vrot.lane.b32.xlu0 %v65_v5, %s81_s24  ;;  %37 = vrot.lane.b32.xlu1 %v66_v6, %s82_s25 }
   0xe   :  { %43 = vrot.lane.b32.xlu0 %v67_v7, %s83_s0  ;;  %49 = vrot.lane.b32.xlu1 %v68_v8, %s84_s30 }
  0x74   :  { %v8_v9 = vpop.permute.xlu0 %7   ;;  %v20_v10 = vpop.permute.xlu1 %19  }
  0x75   :  { %10 = vst.msk [vmem:[#allocation0] sm:$0x1] %vm9_vm1, %v8_v9  }
  0x78   :  { %v14_v11 = vpop.permute.xlu0 %13   ;;  %v26_v12 = vpop.permute.xlu1 %25  }
  0x79   :  { %16 = vst.msk [vmem:[#allocation0] sm:$0x1] %vm15_vm2, %v14_v11  }
  0x7a   :  { %22 = vst.msk [vmem:[#allocation0] sm:$0x1] %vm21_vm3, %v20_v10  }
  0x7b   :  { %28 = vst.msk [vmem:[#allocation0] sm:$0x1] %vm27_vm4, %v26_v12  }
  0x7c   :  { %v32_v13 = vpop.permute.xlu0 %31   ;;  %v38_v14 = vpop.permute.xlu1 %37  }
  0x7d   :  { %34 = vst.msk [vmem:[#allocation0] sm:$0x1] %vm33_vm5, %v32_v13  }
  0x7e   :  { %40 = vst.msk [vmem:[#allocation0] sm:$0x1] %vm39_vm6, %v38_v14  }
  0x80   :  { %v44_v15 = vpop.permute.xlu0 %43   ;;  %v50_v16 = vpop.permute.xlu1 %49  }
  0x81   :  { %46 = vst.msk [vmem:[#allocation0] sm:$0x1] %vm45_vm7, %v44_v15  }
  0x82   :  { %52 = vst.msk [vmem:[#allocation0] sm:$0x1] %vm51_vm8, %v50_v16  }
  0x89   :  { %v57_v17 = vld [vmem:[#allocation0] sm:$0x1] }
  0x8a   :  { %60 = vst [vmem:[%s126_s1] sm:$0x1] %v57_v17 }

// kernel: forward.19
= control target key start
LH: loop header
LB: loop body
LE: loop exit
PB: predicated region body
PF: predicated region fallthrough
CT: control target
= control target key end

     0   :  { %s254_s0 = inlined_call_operand.vmem [shape: f32[9,2,2048], index: 0, kind: input, shape index: {}]   ;;  %s255_s1 = inlined_call_operand.vmem [shape: f32[2,2048], index: 1, kind: output, shape index: {}]  }
   0x1   :  { %v8_v0 = vld [vmem:[%s254_s0] sm:$0xff]  ;;  %v9_v6 = vld [vmem:[%s254_s0 + $0x8] sm:$0xff]  ;;  %v10_v15 = vld [vmem:[%s254_s0 + $0x10] sm:$0xff] }
   0x2   :  { %v92_v1 = vld [vmem:[%s254_s0 + $0x20] sm:$0xff]  ;;  %v93_v7 = vld [vmem:[%s254_s0 + $0x28] sm:$0xff]  ;;  %v94_v16 = vld [vmem:[%s254_s0 + $0x30] sm:$0xff] }
   0x3   :  { %v96_v2 = vld [vmem:[%s254_s0 + $0x40] sm:$0xff]  ;;  %v17_v3 = vmax.f32 %v8_v0, %v92_v1  ;;  %v97_v8 = vld [vmem:[%s254_s0 + $0x48] sm:$0xff]  ;;  %v18_v10 = vmax.f32 %v9_v6, %v93_v7  ;;  %v98_v17 = vld [vmem:[%s254_s0 + $0x50] sm:$0xff]  ;;  %v19_v20 = vmax.f32 %v10_v15, %v94_v16 }
   0x4   :  { %v100_v4 = vld [vmem:[%s254_s0 + $0x60] sm:$0xff]  ;;  %v101_v13 = vld [vmem:[%s254_s0 + $0x68] sm:$0xff]  ;;  %v102_v24 = vld [vmem:[%s254_s0 + $0x70] sm:$0xff] }
   0x5   :  { %v26_v5 = vmax.f32 %v17_v3, %v96_v2  ;;  %v104_v9 = vld [vmem:[%s254_s0 + $0x80] sm:$0xff]  ;;  %v27_v14 = vmax.f32 %v18_v10, %v97_v8  ;;  %v105_v19 = vld [vmem:[%s254_s0 + $0x88] sm:$0xff]  ;;  %v28_v26 = vmax.f32 %v19_v20, %v98_v17  ;;  %v11_v27 = vld [vmem:[%s254_s0 + $0x18] sm:$0xff] }
   0x6   :  { %v108_v12 = vld [vmem:[%s254_s0 + $0xa0] sm:$0xff]  ;;  %v109_v23 = vld [vmem:[%s254_s0 + $0xa8] sm:$0xff]  ;;  %v95_v28 = vld [vmem:[%s254_s0 + $0x38] sm:$0xff] }
   0x7   :  { %v35_v11 = vmax.f32 %v26_v5, %v100_v4  ;;  %v112_v21 = vld [vmem:[%s254_s0 + $0xc0] sm:$0xff]  ;;  %v36_v22 = vmax.f32 %v27_v14, %v101_v13  ;;  %v99_v29 = vld [vmem:[%s254_s0 + $0x58] sm:$0xff]  ;;  %v106_v32 = vld [vmem:[%s254_s0 + $0x90] sm:$0xff]  ;;  %v20_v33 = vmax.f32 %v11_v27, %v95_v28  ;;  %v37_v36 = vmax.f32 %v28_v26, %v102_v24 }
   0x8   :  { %v116_v30 = vld [vmem:[%s254_s0 + $0xe0] sm:$0xff]  ;;  %v113_v35 = vld [vmem:[%s254_s0 + $0xc8] sm:$0xff]  ;;  %v103_v37 = vld [vmem:[%s254_s0 + $0x78] sm:$0xff] }
   0x9   :  { %v44_v18 = vmax.f32 %v35_v11, %v104_v9  ;;  %v45_v31 = vmax.f32 %v36_v22, %v105_v19  ;;  %v120_v38 = vld [vmem:[%s254_s0 + $0x100] sm:$0xff]  ;;  %v110_v40 = vld [vmem:[%s254_s0 + $0xb0] sm:$0xff]  ;;  %v29_v41 = vmax.f32 %v20_v33, %v99_v29  ;;  %v117_v43 = vld [vmem:[%s254_s0 + $0xe8] sm:$0xff]  ;;  %v46_v44 = vmax.f32 %v37_v36, %v106_v32 }
   0xa   :  { %v107_v45 = vld [vmem:[%s254_s0 + $0x98] sm:$0xff]  ;;  %v114_v47 = vld [vmem:[%s254_s0 + $0xd0] sm:$0xff]  ;;  %v121_v50 = vld [vmem:[%s254_s0 + $0x108] sm:$0xff] }
   0xb   :  { %v53_v25 = vmax.f32 %v44_v18, %v108_v12  ;;  %v54_v39 = vmax.f32 %v45_v31, %v109_v23  ;;  %v38_v48 = vmax.f32 %v29_v41, %v103_v37  ;;  %v55_v51 = vmax.f32 %v46_v44, %v110_v40  ;;  %v111_v52 = vld [vmem:[%s254_s0 + $0xb8] sm:$0xff]  ;;  %v118_v54 = vld [vmem:[%s254_s0 + $0xf0] sm:$0xff] }
   0xc   :  { %v115_v57 = vld [vmem:[%s254_s0 + $0xd8] sm:$0xff]  ;;  %v122_v59 = vld [vmem:[%s254_s0 + $0x110] sm:$0xff] }
   0xd   :  { %v62_v34 = vmax.f32 %v53_v25, %v112_v21  ;;  %v63_v46 = vmax.f32 %v54_v39, %v113_v35  ;;  %v47_v55 = vmax.f32 %v38_v48, %v107_v45  ;;  %v64_v56 = vmax.f32 %v55_v51, %v114_v47  ;;  %v119_v62 = vld [vmem:[%s254_s0 + $0xf8] sm:$0xff] }
   0xe   :  { %v123_v1 = vld [vmem:[%s254_s0 + $0x118] sm:$0xff] }
   0xf   :  { %v71_v42 = vmax.f32 %v62_v34, %v116_v30  ;;  %v72_v53 = vmax.f32 %v63_v46, %v117_v43  ;;  %v56_v60 = vmax.f32 %v47_v55, %v111_v52  ;;  %v73_v61 = vmax.f32 %v64_v56, %v118_v54 }
  0x11   :  { %v80_v49 = vmax.f32 %v71_v42, %v120_v38  ;;  %v81_v58 = vmax.f32 %v72_v53, %v121_v50  ;;  %v65_v63 = vmax.f32 %v56_v60, %v115_v57  ;;  %v82_v0 = vmax.f32 %v73_v61, %v122_v59 }
  0x13   :  { %84 = vst [vmem:[%s255_s1] sm:$0xff] %v80_v49  ;;  %85 = vst [vmem:[%s255_s1 + $0x8] sm:$0xff] %v81_v58  ;;  %v74_v2 = vmax.f32 %v65_v63, %v119_v62 }
  0x14   :  { %86 = vst [vmem:[%s255_s1 + $0x10] sm:$0xff] %v82_v0 }
  0x15   :  { %v83_v3 = vmax.f32 %v74_v2, %v123_v1 }
  0x17   :  { %87 = vst [vmem:[%s255_s1 + $0x18] sm:$0xff] %v83_v3 }

// kernel: forward.20
= control target key start
LH: loop header
LB: loop body
LE: loop exit
PB: predicated region body
PF: predicated region fallthrough
CT: control target
= control target key end

     0   :  { %vm369_vm0 = vcmask 588800   ;;  %vm947_vm1 = vcmask 64512   ;;  %s2196_s1 = inlined_call_operand.vmem [shape: f32[72,8], index: 1, kind: input, shape index: {}]   ;;  %s2197_s4 = inlined_call_operand.vmem [shape: f32[1,8], index: 4, kind: input, shape index: {}]   ;;  %s2198_s5 = inlined_call_operand.vmem [shape: f32[1,8], index: 5, kind: input, shape index: {}]   ;;  %s2199_s0 = inlined_call_operand.vmem [shape: f32[512,72], index: 0, kind: input, shape index: {}]   ;;  %s2200_s2 = inlined_call_operand.vmem [shape: f32[1,72], index: 2, kind: input, shape index: {}]   ;;  %s2201_s3 = inlined_call_operand.vmem [shape: f32[1,72], index: 3, kind: input, shape index: {}]   ;;  %s2202_s6 = inlined_call_operand.vmem [shape: f32[512,8], index: 6, kind: input, shape index: {}]   ;;  %s2203_s7 = inlined_call_operand.vmem [shape: f32[512,8], index: 7, kind: output, shape index: {}]  }
   0x1   :  { %v304_v0 = vld [vmem:[%s2196_s1 + $0x40] sm:$0xff]  ;;  %v303_v1 = vld [vmem:[%s2196_s1 + $0x38] sm:$0xff]  ;;  %v302_v2 = vld [vmem:[%s2196_s1 + $0x30] sm:$0xff] }
   0x2   :  { %1155 = vmatprep.subr.mxu0 %v304_v0  ;;  %1269 = vmatprep.subr.mxu1 %v304_v0  ;;  %v301_v3 = vld [vmem:[%s2196_s1 + $0x28] sm:$0xff]  ;;  %v26_v4 = vld [vmem:[%s2199_s0] sm:$0xff]  ;;  %v28_v9 = vld [vmem:[%s2199_s0 + $0x10] sm:$0xff] }
   0x3   :  { %1156 = vmatpush3.msra.mxu0 %v304_v0  ;;  %1278 = vmatpush3.msra.mxu1 %v304_v0  ;;  %v1345_v5 = vld [vmem:[%s2200_s2] ss:$0 sm:$0xff]  ;;  %v27_v7 = vld [vmem:[%s2199_s0 + $0x8] sm:$0xff]  ;;  %v60_v13 = vld [vmem:[%s2199_s0 + $0x110] sm:$0xff] }
   0x4   :  { %1157 = vmatprep.subr.mxu0 %v303_v1  ;;  %1270 = vmatprep.subr.mxu1 %v303_v1  ;;  %v58_v6 = vld [vmem:[%s2199_s0 + $0x100] sm:$0xff]  ;;  %v59_v8 = vld [vmem:[%s2199_s0 + $0x108] sm:$0xff]  ;;  %v97_v11 = vmul.f32 %v1345_v5, %v26_v4  ;;  %v98_v15 = vmul.f32 %v1345_v5, %v27_v7  ;;  %v299_v17 = vld [vmem:[%s2196_s1 + $0x18] sm:$0xff]  ;;  %v99_v18 = vmul.f32 %v1345_v5, %v28_v9 }
   0x5   :  { %1158 = vmatpush3.msra.mxu0 %v303_v1  ;;  %1279 = vmatpush3.msra.mxu1 %v303_v1  ;;  %v300_v10 = vld [vmem:[%s2196_s1 + $0x20] sm:$0xff]  ;;  %v129_v12 = vmul.f32 %v1345_v5, %v58_v6  ;;  %v130_v16 = vmul.f32 %v1345_v5, %v59_v8  ;;  %v29_v19 = vld [vmem:[%s2199_s0 + $0x18] sm:$0xff]  ;;  %v131_v20 = vmul.f32 %v1345_v5, %v60_v13  ;;  %v298_v23 = vld [vmem:[%s2196_s1 + $0x10] sm:$0xff] }
   0x6   :  { %1159 = vmatprep.subr.mxu0 %v302_v2  ;;  %1271 = vmatprep.subr.mxu1 %v302_v2  ;;  %v1370_v14 = vld [vmem:[%s2201_s3] ss:$0 sm:$0xff]  ;;  %v61_v21 = vld [vmem:[%s2199_s0 + $0x118] sm:$0xff]  ;;  %v100_v29 = vmul.f32 %v1345_v5, %v29_v19  ;;  %v297_v30 = vld [vmem:[%s2196_s1 + $0x8] sm:$0xff] }
   0x7   :  { %1160 = vmatpush3.msra.mxu0 %v302_v2  ;;  %1280 = vmatpush3.msra.mxu1 %v302_v2  ;;  %v30_v22 = vld [vmem:[%s2199_s0 + $0x20] sm:$0xff]  ;;  %v168_v24 = vadd.f32 %v1370_v14, %v97_v11  ;;  %v200_v25 = vadd.f32 %v1370_v14, %v129_v12  ;;  %v169_v27 = vadd.f32 %v1370_v14, %v98_v15  ;;  %v31_v34 = vld [vmem:[%s2199_s0 + $0x28] sm:$0xff]  ;;  %v32_v41 = vld [vmem:[%s2199_s0 + $0x30] sm:$0xff] }
   0x8   :  { %1161 = vmatprep.subr.mxu0 %v301_v3  ;;  %1272 = vmatprep.subr.mxu1 %v301_v3  ;;  %v62_v26 = vld [vmem:[%s2199_s0 + $0x120] sm:$0xff]  ;;  %v201_v28 = vadd.f32 %v1370_v14, %v130_v16  ;;  %v170_v31 = vadd.f32 %v1370_v14, %v99_v18  ;;  %v132_v32 = vmul.f32 %v1345_v5, %v61_v21  ;;  %v63_v37 = vld [vmem:[%s2199_s0 + $0x128] sm:$0xff]  ;;  %v64_v42 = vld [vmem:[%s2199_s0 + $0x130] sm:$0xff] }
   0x9   :  { %1162 = vmatpush3.msra.mxu0 %v301_v3  ;;  %1281 = vmatpush3.msra.mxu1 %v301_v3  ;;  %v101_v33 = vmul.f32 %v1345_v5, %v30_v22  ;;  %v202_v35 = vadd.f32 %v1370_v14, %v131_v20  ;;  %v133_v36 = vmul.f32 %v1345_v5, %v62_v26  ;;  %v296_v38 = vld [vmem:[%s2196_s1] sm:$0xff]  ;;  %v232_v39 = vmax.f32 %v168_v24, 0.0  ;;  %v33_v51 = vld [vmem:[%s2199_s0 + $0x38] sm:$0xff]  ;;  %v35_v3 = vld [vmem:[%s2199_s0 + $0x48] sm:$0xff] }
   0xa   :  { %1163 = vmatprep.subr.mxu0 %v300_v10  ;;  %1273 = vmatprep.subr.mxu1 %v300_v10  ;;  %v264_v40 = vmax.f32 %v200_v25, 0.0  ;;  %v233_v43 = vmax.f32 %v169_v27, 0.0  ;;  %v265_v44 = vmax.f32 %v201_v28, 0.0  ;;  %v171_v45 = vadd.f32 %v1370_v14, %v100_v29  ;;  %v65_v52 = vld [vmem:[%s2199_s0 + $0x138] sm:$0xff]  ;;  %v34_v57 = vld [vmem:[%s2199_s0 + $0x40] sm:$0xff]  ;;  %v67_v9 = vld [vmem:[%s2199_s0 + $0x148] sm:$0xff] }
   0xb   :  { %1164 = vmatpush3.msra.mxu0 %v300_v10  ;;  %1282 = vmatpush3.msra.mxu1 %v300_v10  ;;  %v102_v46 = vmul.f32 %v1345_v5, %v31_v34  ;;  %v234_v47 = vmax.f32 %v170_v31, 0.0  ;;  %v203_v48 = vadd.f32 %v1370_v14, %v132_v32  ;;  %v172_v49 = vadd.f32 %v1370_v14, %v101_v33  ;;  %v66_v58 = vld [vmem:[%s2199_s0 + $0x140] sm:$0xff]  ;;  %v36_v10 = vld [vmem:[%s2199_s0 + $0x50] sm:$0xff]  ;;  %v37_v21 = vld [vmem:[%s2199_s0 + $0x58] sm:$0xff] }
   0xc   :  { %1165 = vmatprep.subr.mxu0 %v299_v17  ;;  %1274 = vmatprep.subr.mxu1 %v299_v17  ;;  %v134_v50 = vmul.f32 %v1345_v5, %v63_v37  ;;  %v266_v53 = vmax.f32 %v202_v35, 0.0  ;;  %v204_v54 = vadd.f32 %v1370_v14, %v133_v36  ;;  %v103_v55 = vmul.f32 %v1345_v5, %v32_v41  ;;  %v68_v11 = vld [vmem:[%s2199_s0 + $0x150] sm:$0xff]  ;;  %v69_v26 = vld [vmem:[%s2199_s0 + $0x158] sm:$0xff]  ;;  %v38_v27 = vld [vmem:[%s2199_s0 + $0x60] sm:$0xff] }
   0xd   :  { %1166 = vmatpush3.msra.mxu0 %v299_v17  ;;  %1283 = vmatpush3.msra.mxu1 %v299_v17  ;;  %v135_v56 = vmul.f32 %v1345_v5, %v64_v42  ;;  %v235_v59 = vmax.f32 %v171_v45, 0.0  ;;  %v173_v60 = vadd.f32 %v1370_v14, %v102_v46  ;;  %v104_v61 = vmul.f32 %v1345_v5, %v33_v51  ;;  %v70_v28 = vld [vmem:[%s2199_s0 + $0x160] sm:$0xff]  ;;  %v39_v37 = vld [vmem:[%s2199_s0 + $0x68] sm:$0xff] }
   0xe   :  { %1167 = vmatprep.subr.mxu0 %v298_v23  ;;  %1275 = vmatprep.subr.mxu1 %v298_v23  ;;  %v136_v62 = vmul.f32 %v1345_v5, %v65_v52  ;;  %v267_v63 = vmax.f32 %v203_v48, 0.0  ;;  %v236_v0 = vmax.f32 %v172_v49, 0.0  ;;  %v205_v1 = vadd.f32 %v1370_v14, %v134_v50 }
   0xf   :  { %1168 = vmatpush3.msra.mxu0 %v298_v23  ;;  %1284 = vmatpush3.msra.mxu1 %v298_v23  ;;  %v105_v2 = vmul.f32 %v1345_v5, %v34_v57  ;;  %v268_v4 = vmax.f32 %v204_v54, 0.0  ;;  %v174_v6 = vadd.f32 %v1370_v14, %v103_v55  ;;  %v206_v7 = vadd.f32 %v1370_v14, %v135_v56 }
  0x10   :  { %1169 = vmatprep.subr.mxu0 %v297_v30  ;;  %1276 = vmatprep.subr.mxu1 %v297_v30  ;;  %v137_v8 = vmul.f32 %v1345_v5, %v66_v58  ;;  %v237_v12 = vmax.f32 %v173_v60, 0.0  ;;  %v175_v13 = vadd.f32 %v1370_v14, %v104_v61  ;;  %v207_v15 = vadd.f32 %v1370_v14, %v136_v62  ;;  %v73_v58 = vld [vmem:[%s2199_s0 + $0x178] sm:$0xff]  ;;  %v74_v60 = vld [vmem:[%s2199_s0 + $0x180] sm:$0xff] }
  0x11   :  { %1170 = vmatpush3.msra.mxu0 %v297_v30  ;;  %1285 = vmatpush3.msra.mxu1 %v297_v30  ;;  %v106_v16 = vmul.f32 %v1345_v5, %v35_v3  ;;  %v269_v17 = vmax.f32 %v205_v1, 0.0  ;;  %v176_v18 = vadd.f32 %v1370_v14, %v105_v2  ;;  %v138_v19 = vmul.f32 %v1345_v5, %v67_v9 }
  0x12   :  { %1171 = vmatprep.subr.mxu0 %v296_v38  ;;  %1277 = vmatprep.subr.mxu1 %v296_v38  ;;  %v107_v20 = vmul.f32 %v1345_v5, %v36_v10  ;;  %v238_v22 = vmax.f32 %v174_v6, 0.0  ;;  %v270_v23 = vmax.f32 %v206_v7, 0.0  ;;  %v208_v24 = vadd.f32 %v1370_v14, %v137_v8  ;;  %v43_v6 = vld [vmem:[%s2199_s0 + $0x88] sm:$0xff] }
  0x13   :  { %1172 = vmatpush3.msra.mxu0 %v296_v38  ;;  %1286 = vmatpush3.msra.mxu1 %v296_v38  ;;  %v139_v25 = vmul.f32 %v1345_v5, %v68_v11  ;;  %v239_v29 = vmax.f32 %v175_v13, 0.0  ;;  %v271_v30 = vmax.f32 %v207_v15, 0.0  ;;  %v177_v31 = vadd.f32 %v1370_v14, %v106_v16  ;;  %v71_v38 = vld [vmem:[%s2199_s0 + $0x168] sm:$0xff]  ;;  %v76_v13 = vld [vmem:[%s2199_s0 + $0x190] sm:$0xff] }
  0x14   :  { %1173 = vmatprep.mubr.msk.f32.mxu0 %vm369_vm0, %v232_v39  ;;  %1221 = vmatprep.mubr.msk.f32.mxu1 %vm369_vm0, %v264_v40  ;;  %v108_v32 = vmul.f32 %v1345_v5, %v37_v21  ;;  %v240_v33 = vmax.f32 %v176_v18, 0.0  ;;  %v209_v34 = vadd.f32 %v1370_v14, %v138_v19  ;;  %v178_v35 = vadd.f32 %v1370_v14, %v107_v20  ;;  %v75_v11 = vld [vmem:[%s2199_s0 + $0x188] sm:$0xff] }
  0x15   :  { %1174 = vmatmul.mubr.msk.f32.vlgmr.msra.gmra.mxu0 %vm369_vm0, %v233_v43  ;;  %1222 = vmatmul.mubr.msk.f32.vlgmr.msra.gmra.mxu1 %vm369_vm0, %v265_v44  ;;  %v140_v36 = vmul.f32 %v1345_v5, %v69_v26  ;;  %v272_v39 = vmax.f32 %v208_v24, 0.0  ;;  %v210_v40 = vadd.f32 %v1370_v14, %v139_v25  ;;  %v109_v41 = vmul.f32 %v1345_v5, %v38_v27  ;;  %v40_v43 = vld [vmem:[%s2199_s0 + $0x70] sm:$0xff]  ;;  %v77_v24 = vld [vmem:[%s2199_s0 + $0x198] sm:$0xff] }
  0x16   :  { %1176 = vmatprep.mubr.msk.f32.mxu0 %vm369_vm0, %v234_v47  ;;  %1224 = vmatprep.mubr.msk.f32.mxu1 %vm369_vm0, %v266_v53  ;;  %v141_v42 = vmul.f32 %v1345_v5, %v70_v28  ;;  %v72_v44 = vld [vmem:[%s2199_s0 + $0x170] sm:$0xff]  ;;  %v241_v45 = vmax.f32 %v177_v31, 0.0  ;;  %v179_v46 = vadd.f32 %v1370_v14, %v108_v32  ;;  %v110_v47 = vmul.f32 %v1345_v5, %v39_v37  ;;  %v41_v53 = vld [vmem:[%s2199_s0 + $0x78] sm:$0xff] }
  0x17   :  { %v142_v48 = vmul.f32 %v1345_v5, %v71_v38  ;;  %v273_v49 = vmax.f32 %v209_v34, 0.0  ;;  %v242_v50 = vmax.f32 %v178_v35, 0.0  ;;  %v211_v51 = vadd.f32 %v1370_v14, %v140_v36 }
  0x18   :  { %v111_v52 = vmul.f32 %v1345_v5, %v40_v43  ;;  %v274_v54 = vmax.f32 %v210_v40, 0.0  ;;  %v180_v55 = vadd.f32 %v1370_v14, %v109_v41  ;;  %v212_v56 = vadd.f32 %v1370_v14, %v141_v42 }
  0x19   :  { %1177 = vmatmul.mubr.msk.f32.gmra.mxu0 %vm369_vm0, %v235_v59  ;;  %1225 = vmatmul.mubr.msk.f32.gmra.mxu1 %vm369_vm0, %v267_v63  ;;  %v143_v57 = vmul.f32 %v1345_v5, %v72_v44  ;;  %v42_v59 = vld [vmem:[%s2199_s0 + $0x80] sm:$0xff]  ;;  %v243_v61 = vmax.f32 %v179_v46, 0.0  ;;  %v181_v62 = vadd.f32 %v1370_v14, %v110_v47  ;;  %v213_v63 = vadd.f32 %v1370_v14, %v142_v48  ;;  %v79_v44 = vld [vmem:[%s2199_s0 + $0x1a8] sm:$0xff]  ;;  %v80_v46 = vld [vmem:[%s2199_s0 + $0x1b0] sm:$0xff] }
  0x1a   :  { %1179 = vmatprep.mubr.msk.f32.mxu0 %vm369_vm0, %v236_v0  ;;  %1227 = vmatprep.mubr.msk.f32.mxu1 %vm369_vm0, %v268_v4  ;;  %v112_v0 = vmul.f32 %v1345_v5, %v41_v53  ;;  %v275_v1 = vmax.f32 %v211_v51, 0.0  ;;  %v182_v2 = vadd.f32 %v1370_v14, %v111_v52  ;;  %v144_v3 = vmul.f32 %v1345_v5, %v73_v58 }
  0x1b   :  { %v113_v4 = vmul.f32 %v1345_v5, %v42_v59  ;;  %v244_v7 = vmax.f32 %v180_v55, 0.0  ;;  %v276_v8 = vmax.f32 %v212_v56, 0.0  ;;  %v214_v9 = vadd.f32 %v1370_v14, %v143_v57  ;;  %v49_v55 = vld [vmem:[%s2199_s0 + $0xb8] sm:$0xff] }
  0x1c   :  { %v145_v10 = vmul.f32 %v1345_v5, %v74_v60  ;;  %v245_v15 = vmax.f32 %v181_v62, 0.0  ;;  %v277_v16 = vmax.f32 %v213_v63, 0.0  ;;  %v114_v18 = vmul.f32 %v1345_v5, %v43_v6  ;;  %v81_v60 = vld [vmem:[%s2199_s0 + $0x1b8] sm:$0xff]  ;;  %v82_v62 = vld [vmem:[%s2199_s0 + $0x1c0] sm:$0xff] }
  0x1d   :  { %1180 = vmatmul.mubr.msk.f32.gmra.mxu0 %vm369_vm0, %v237_v12  ;;  %1228 = vmatmul.mubr.msk.f32.gmra.mxu1 %vm369_vm0, %v269_v17  ;;  %v44_v12 = vld [vmem:[%s2199_s0 + $0x90] sm:$0xff]  ;;  %v183_v17 = vadd.f32 %v1370_v14, %v112_v0  ;;  %v246_v19 = vmax.f32 %v182_v2, 0.0  ;;  %v215_v20 = vadd.f32 %v1370_v14, %v144_v3  ;;  %v184_v21 = vadd.f32 %v1370_v14, %v113_v4 }
  0x1e   :  { %1182 = vmatprep.mubr.msk.f32.mxu0 %vm369_vm0, %v238_v22  ;;  %1230 = vmatprep.mubr.msk.f32.mxu1 %vm369_vm0, %v270_v23  ;;  %v146_v22 = vmul.f32 %v1345_v5, %v75_v11  ;;  %v45_v23 = vld [vmem:[%s2199_s0 + $0x98] sm:$0xff]  ;;  %v278_v25 = vmax.f32 %v214_v9, 0.0  ;;  %v216_v26 = vadd.f32 %v1370_v14, %v145_v10  ;;  %v115_v27 = vmul.f32 %v1345_v5, %v44_v12  ;;  %v83_v9 = vld [vmem:[%s2199_s0 + $0x1c8] sm:$0xff] }
  0x1f   :  { %v147_v28 = vmul.f32 %v1345_v5, %v76_v13  ;;  %v247_v31 = vmax.f32 %v183_v17, 0.0  ;;  %v185_v32 = vadd.f32 %v1370_v14, %v114_v18  ;;  %v148_v34 = vmul.f32 %v1345_v5, %v77_v24 }
  0x20   :  { %v279_v35 = vmax.f32 %v215_v20, 0.0  ;;  %v248_v36 = vmax.f32 %v184_v21, 0.0  ;;  %v217_v37 = vadd.f32 %v1370_v14, %v146_v22  ;;  %v280_v40 = vmax.f32 %v216_v26, 0.0 }
  0x21   :  { %1183 = vmatmul.mubr.msk.f32.gmra.mxu0 %vm369_vm0, %v239_v29  ;;  %1231 = vmatmul.mubr.msk.f32.gmra.mxu1 %vm369_vm0, %v271_v30  ;;  %v46_v29 = vld [vmem:[%s2199_s0 + $0xa0] sm:$0xff]  ;;  %v186_v41 = vadd.f32 %v1370_v14, %v115_v27  ;;  %v218_v42 = vadd.f32 %v1370_v14, %v147_v28  ;;  %v249_v47 = vmax.f32 %v185_v32, 0.0  ;;  %v150_v53 = vmul.f32 %v1345_v5, %v79_v44 }
  0x22   :  { %1185 = vmatprep.mubr.msk.f32.mxu0 %vm369_vm0, %v240_v33  ;;  %1233 = vmatprep.mubr.msk.f32.mxu1 %vm369_vm0, %v272_v39  ;;  %v78_v30 = vld [vmem:[%s2199_s0 + $0x1a0] sm:$0xff]  ;;  %v116_v33 = vmul.f32 %v1345_v5, %v45_v23  ;;  %v117_v38 = vmul.f32 %v1345_v5, %v46_v29  ;;  %v47_v39 = vld [vmem:[%s2199_s0 + $0xa8] sm:$0xff]  ;;  %v281_v51 = vmax.f32 %v217_v37, 0.0  ;;  %v151_v59 = vmul.f32 %v1345_v5, %v80_v46 }
  0x23   :  { %v149_v43 = vmul.f32 %v1345_v5, %v78_v30  ;;  %v250_v56 = vmax.f32 %v186_v41, 0.0  ;;  %v282_v57 = vmax.f32 %v218_v42, 0.0  ;;  %v120_v2 = vmul.f32 %v1345_v5, %v49_v55  ;;  %v85_v30 = vld [vmem:[%s2199_s0 + $0x1d8] sm:$0xff]  ;;  %v86_v32 = vld [vmem:[%s2199_s0 + $0x1e0] sm:$0xff]  ;;  %v55_v41 = vld [vmem:[%s2199_s0 + $0xe8] sm:$0xff] }
  0x24   :  { %v187_v48 = vadd.f32 %v1370_v14, %v116_v33  ;;  %v188_v52 = vadd.f32 %v1370_v14, %v117_v38  ;;  %v221_v4 = vadd.f32 %v1370_v14, %v150_v53  ;;  %v222_v11 = vadd.f32 %v1370_v14, %v151_v59  ;;  %v87_v46 = vld [vmem:[%s2199_s0 + $0x1e8] sm:$0xff] }
  0x25   :  { %1186 = vmatmul.mubr.msk.f32.gmra.mxu0 %vm369_vm0, %v241_v45  ;;  %1234 = vmatmul.mubr.msk.f32.gmra.mxu1 %vm369_vm0, %v273_v49  ;;  %v48_v45 = vld [vmem:[%s2199_s0 + $0xb0] sm:$0xff]  ;;  %v219_v49 = vadd.f32 %v1370_v14, %v148_v34  ;;  %v220_v58 = vadd.f32 %v1370_v14, %v149_v43  ;;  %v153_v13 = vmul.f32 %v1345_v5, %v82_v62  ;;  %v89_v62 = vld [vmem:[%s2199_s0 + $0x1f8] sm:$0xff] }
  0x26   :  { %1188 = vmatprep.mubr.msk.f32.mxu0 %vm369_vm0, %v242_v50  ;;  %1236 = vmatprep.mubr.msk.f32.mxu1 %vm369_vm0, %v274_v54  ;;  %v118_v50 = vmul.f32 %v1345_v5, %v47_v39  ;;  %v119_v54 = vmul.f32 %v1345_v5, %v48_v45  ;;  %v251_v63 = vmax.f32 %v187_v48, 0.0  ;;  %v252_v3 = vmax.f32 %v188_v52, 0.0  ;;  %v88_v48 = vld [vmem:[%s2199_s0 + $0x1f0] sm:$0xff] }
  0x27   :  { %v283_v0 = vmax.f32 %v219_v49, 0.0  ;;  %v284_v10 = vmax.f32 %v220_v58, 0.0  ;;  %v191_v18 = vadd.f32 %v1370_v14, %v120_v2  ;;  %v154_v20 = vmul.f32 %v1345_v5, %v83_v9 }
  0x28   :  { %v190_v6 = vadd.f32 %v1370_v14, %v119_v54  ;;  %v285_v21 = vmax.f32 %v221_v4, 0.0  ;;  %v286_v26 = vmax.f32 %v222_v11, 0.0  ;;  %v224_v28 = vadd.f32 %v1370_v14, %v153_v13 }
  0x29   :  { %1189 = vmatmul.mubr.msk.f32.gmra.mxu0 %vm369_vm0, %v243_v61  ;;  %1237 = vmatmul.mubr.msk.f32.gmra.mxu1 %vm369_vm0, %v275_v1  ;;  %v50_v61 = vld [vmem:[%s2199_s0 + $0xc0] sm:$0xff]  ;;  %v189_v1 = vadd.f32 %v1370_v14, %v118_v50  ;;  %v255_v33 = vmax.f32 %v191_v18, 0.0  ;;  %v156_v39 = vmul.f32 %v1345_v5, %v85_v30  ;;  %v157_v45 = vmul.f32 %v1345_v5, %v86_v32  ;;  %v338_v18 = vld [vmem:[%s2202_s6 + $0x108] sm:$0xff] }
  0x2a   :  { %1191 = vmatprep.mubr.msk.f32.mxu0 %vm369_vm0, %v244_v7  ;;  %1239 = vmatprep.mubr.msk.f32.mxu1 %vm369_vm0, %v276_v8  ;;  %v152_v7 = vmul.f32 %v1345_v5, %v81_v60  ;;  %v51_v8 = vld [vmem:[%s2199_s0 + $0xc8] sm:$0xff]  ;;  %v121_v12 = vmul.f32 %v1345_v5, %v50_v61  ;;  %v254_v22 = vmax.f32 %v190_v6, 0.0  ;;  %v288_v43 = vmax.f32 %v224_v28, 0.0  ;;  %v57_v61 = vld [vmem:[%s2199_s0 + $0xf8] sm:$0xff] }
  0x2b   :  { %v253_v17 = vmax.f32 %v189_v1, 0.0  ;;  %v126_v52 = vmul.f32 %v1345_v5, %v55_v41  ;;  %v227_v54 = vadd.f32 %v1370_v14, %v156_v39  ;;  %v228_v58 = vadd.f32 %v1370_v14, %v157_v45  ;;  %v340_v28 = vld [vmem:[%s2202_s6 + $0x118] sm:$0xff]  ;;  %v310_v39 = vld [vmem:[%s2202_s6 + $0x28] sm:$0xff]  ;;  %v309_v45 = vld [vmem:[%s2202_s6 + $0x20] sm:$0xff] }
  0x2c   :  { %v223_v23 = vadd.f32 %v1370_v14, %v152_v7  ;;  %v192_v27 = vadd.f32 %v1370_v14, %v121_v12  ;;  %v159_v60 = vmul.f32 %v1345_v5, %v88_v48  ;;  %v160_v4 = vmul.f32 %v1345_v5, %v89_v62 }
  0x2d   :  { %1192 = vmatmul.mubr.msk.f32.gmra.mxu0 %vm369_vm0, %v245_v15  ;;  %1240 = vmatmul.mubr.msk.f32.gmra.mxu1 %vm369_vm0, %v277_v16  ;;  %v52_v15 = vld [vmem:[%s2199_s0 + $0xd0] sm:$0xff]  ;;  %v291_v1 = vmax.f32 %v227_v54, 0.0  ;;  %v292_v7 = vmax.f32 %v228_v58, 0.0 }
  0x2e   :  { %1194 = vmatprep.mubr.msk.f32.mxu0 %vm369_vm0, %v246_v19  ;;  %1242 = vmatprep.mubr.msk.f32.mxu1 %vm369_vm0, %v278_v25  ;;  %v84_v16 = vld [vmem:[%s2199_s0 + $0x1d0] sm:$0xff]  ;;  %v122_v19 = vmul.f32 %v1345_v5, %v51_v8  ;;  %v123_v24 = vmul.f32 %v1345_v5, %v52_v15  ;;  %v53_v25 = vld [vmem:[%s2199_s0 + $0xd8] sm:$0xff]  ;;  %v287_v37 = vmax.f32 %v223_v23, 0.0  ;;  %v256_v42 = vmax.f32 %v192_v27, 0.0 }
  0x2f   :  { %v155_v29 = vmul.f32 %v1345_v5, %v84_v16  ;;  %v230_v9 = vadd.f32 %v1370_v14, %v159_v60  ;;  %v308_v27 = vld [vmem:[%s2202_s6 + $0x18] sm:$0xff]  ;;  %v343_v58 = vld [vmem:[%s2202_s6 + $0x130] sm:$0xff] }
  0x30   :  { %v193_v34 = vadd.f32 %v1370_v14, %v122_v19  ;;  %v194_v38 = vadd.f32 %v1370_v14, %v123_v24 }
  0x31   :  { %1195 = vmatmul.mubr.msk.f32.gmra.mxu0 %vm369_vm0, %v247_v31  ;;  %1243 = vmatmul.mubr.msk.f32.gmra.mxu1 %vm369_vm0, %v279_v35  ;;  %v54_v31 = vld [vmem:[%s2199_s0 + $0xe0] sm:$0xff]  ;;  %v225_v35 = vadd.f32 %v1370_v14, %v154_v20  ;;  %v226_v44 = vadd.f32 %v1370_v14, %v155_v29  ;;  %v294_v15 = vmax.f32 %v230_v9, 0.0 }
  0x32   :  { %1197 = vmatprep.mubr.msk.f32.mxu0 %vm369_vm0, %v248_v36  ;;  %1245 = vmatprep.mubr.msk.f32.mxu1 %vm369_vm0, %v280_v40  ;;  %v124_v36 = vmul.f32 %v1345_v5, %v53_v25  ;;  %v125_v40 = vmul.f32 %v1345_v5, %v54_v31  ;;  %v257_v49 = vmax.f32 %v193_v34, 0.0  ;;  %v258_v53 = vmax.f32 %v194_v38, 0.0  ;;  %v339_v34 = vld [vmem:[%s2202_s6 + $0x110] sm:$0xff] }
  0x33   :  { %v289_v50 = vmax.f32 %v225_v35, 0.0 }
  0x34   :  { %v196_v55 = vadd.f32 %v1370_v14, %v125_v40  ;;  %v342_v40 = vld [vmem:[%s2202_s6 + $0x128] sm:$0xff] }
  0x35   :  { %1198 = vmatmul.mubr.msk.f32.gmra.mxu0 %vm369_vm0, %v249_v47  ;;  %1246 = vmatmul.mubr.msk.f32.gmra.mxu1 %vm369_vm0, %v281_v51  ;;  %v56_v47 = vld [vmem:[%s2199_s0 + $0xf0] sm:$0xff]  ;;  %v195_v51 = vadd.f32 %v1370_v14, %v124_v36 }
  0x36   :  { %1200 = vmatprep.mubr.msk.f32.mxu0 %vm369_vm0, %v250_v56  ;;  %1248 = vmatprep.mubr.msk.f32.mxu1 %vm369_vm0, %v282_v57  ;;  %v158_v56 = vmul.f32 %v1345_v5, %v87_v46  ;;  %v290_v57 = vmax.f32 %v226_v44, 0.0  ;;  %v127_v59 = vmul.f32 %v1345_v5, %v56_v47  ;;  %v260_v6 = vmax.f32 %v196_v55, 0.0  ;;  %v341_v46 = vld [vmem:[%s2202_s6 + $0x120] sm:$0xff] }
  0x38   :  { %v229_v2 = vadd.f32 %v1370_v14, %v158_v56  ;;  %v198_v8 = vadd.f32 %v1370_v14, %v127_v59 }
  0x39   :  { %1201 = vmatmul.mubr.msk.f32.gmra.mxu0 %vm369_vm0, %v251_v63  ;;  %1249 = vmatmul.mubr.msk.f32.gmra.mxu1 %vm369_vm0, %v283_v0  ;;  %v259_v63 = vmax.f32 %v195_v51, 0.0  ;;  %v197_v0 = vadd.f32 %v1370_v14, %v126_v52  ;;  %v312_v51 = vld [vmem:[%s2202_s6 + $0x38] sm:$0xff] }
  0x3a   :  { %1203 = vmatprep.mubr.msk.f32.mxu0 %vm369_vm0, %v252_v3  ;;  %1251 = vmatprep.mubr.msk.f32.mxu1 %vm369_vm0, %v284_v10  ;;  %v128_v3 = vmul.f32 %v1345_v5, %v57_v61  ;;  %v293_v11 = vmax.f32 %v229_v2, 0.0  ;;  %v231_v5 = vadd.f32 %v1370_v14, %v160_v4  ;;  %v262_v13 = vmax.f32 %v198_v8, 0.0  ;;  %v344_v52 = vld [vmem:[%s2202_s6 + $0x138] sm:$0xff] }
  0x3b   :  { %v261_v10 = vmax.f32 %v197_v0, 0.0  ;;  %v346_v0 = vld [vmem:[%s2202_s6 + $0x148] sm:$0xff] }
  0x3c   :  { %v199_v12 = vadd.f32 %v1370_v14, %v128_v3  ;;  %v306_v14 = vld [vmem:[%s2202_s6 + $0x8] sm:$0xff] }
  0x3d   :  { %1204 = vmatmul.mubr.msk.f32.gmra.mxu0 %vm369_vm0, %v253_v17  ;;  %1252 = vmatmul.mubr.msk.f32.gmra.mxu1 %vm369_vm0, %v285_v21  ;;  %v295_v17 = vmax.f32 %v231_v5, 0.0  ;;  %v305_v21 = vld [vmem:[%s2202_s6] sm:$0xff]  ;;  %v348_v5 = vld [vmem:[%s2202_s6 + $0x158] sm:$0xff] }
  0x3e   :  { %1206 = vmatprep.mubr.msk.f32.mxu0 %vm369_vm0, %v254_v22  ;;  %1254 = vmatprep.mubr.msk.f32.mxu1 %vm369_vm0, %v286_v26  ;;  %v263_v16 = vmax.f32 %v199_v12, 0.0  ;;  %v337_v22 = vld [vmem:[%s2202_s6 + $0x100] sm:$0xff]  ;;  %v316_v12 = vld [vmem:[%s2202_s6 + $0x58] sm:$0xff] }
  0x41   :  { %1207 = vmatmul.mubr.msk.f32.gmra.mxu0 %vm369_vm0, %v255_v33  ;;  %1255 = vmatmul.mubr.msk.f32.gmra.mxu1 %vm369_vm0, %v287_v37  ;;  %v307_v33 = vld [vmem:[%s2202_s6 + $0x10] sm:$0xff] }
  0x42   :  { %1209 = vmatprep.mubr.msk.f32.mxu0 %vm369_vm0, %v256_v42  ;;  %1257 = vmatprep.mubr.msk.f32.mxu1 %vm369_vm0, %v288_v43 }
  0x45   :  { %1210 = vmatmul.mubr.msk.f32.gmra.mxu0 %vm369_vm0, %v257_v49  ;;  %1258 = vmatmul.mubr.msk.f32.gmra.mxu1 %vm369_vm0, %v289_v50 }
  0x46   :  { %1212 = vmatprep.mubr.msk.f32.mxu0 %vm369_vm0, %v258_v53  ;;  %1260 = vmatprep.mubr.msk.f32.mxu1 %vm369_vm0, %v290_v57  ;;  %v311_v57 = vld [vmem:[%s2202_s6 + $0x30] sm:$0xff] }
  0x49   :  { %1213 = vmatmul.mubr.msk.f32.gmra.mxu0 %vm369_vm0, %v259_v63  ;;  %1261 = vmatmul.mubr.msk.f32.gmra.mxu1 %vm369_vm0, %v291_v1  ;;  %v314_v63 = vld [vmem:[%s2202_s6 + $0x48] sm:$0xff] }
  0x4a   :  { %1215 = vmatprep.mubr.msk.f32.mxu0 %vm369_vm0, %v260_v6  ;;  %1263 = vmatprep.mubr.msk.f32.mxu1 %vm369_vm0, %v292_v7  ;;  %v313_v6 = vld [vmem:[%s2202_s6 + $0x40] sm:$0xff] }
  0x4b   :  { %v345_v7 = vld [vmem:[%s2202_s6 + $0x140] sm:$0xff] }
  0x4d   :  { %1216 = vmatmul.mubr.msk.f32.gmra.mxu0 %vm369_vm0, %v261_v10  ;;  %1264 = vmatmul.mubr.msk.f32.gmra.mxu1 %vm369_vm0, %v293_v11 }
  0x4e   :  { %1218 = vmatprep.mubr.msk.f32.mxu0 %vm369_vm0, %v262_v13  ;;  %1266 = vmatprep.mubr.msk.f32.mxu1 %vm369_vm0, %v294_v15 }
  0x51   :  { %1219 = vmatmul.mubr.msk.f32.gmra.mxu0 %vm369_vm0, %v263_v16  ;;  %1267 = vmatmul.mubr.msk.f32.gmra.mxu1 %vm369_vm0, %v295_v17 }
  0xd5   :  { %v1175_v19 = vpop.f32.mrf.mxu0  ;;  %v1223_v20 = vpop.f32.mrf.mxu1 }
  0xd6   :  { %v634_v23 = vadd.f32 %v1175_v19, %v306_v14  ;;  %v794_v24 = vadd.f32 %v1223_v20, %v338_v18  ;;  %v315_v14 = vld [vmem:[%s2202_s6 + $0x50] sm:$0xff] }
  0xd7   :  { %v628_v25 = vpop.f32.mrf.mxu0  ;;  %v788_v26 = vpop.f32.mrf.mxu1  ;;  %v347_v18 = vld [vmem:[%s2202_s6 + $0x150] sm:$0xff] }
  0xd8   :  { %949 = vst.msk [vmem:[%s2203_s7 + $0x8] sm:$0xff] %vm947_vm1, %v634_v23  ;;  %981 = vst.msk [vmem:[%s2203_s7 + $0x108] sm:$0xff] %vm947_vm1, %v794_v24  ;;  %v629_v29 = vadd.f32 %v628_v25, %v305_v21  ;;  %v789_v30 = vadd.f32 %v788_v26, %v337_v22  ;;  %v318_v23 = vld [vmem:[%s2202_s6 + $0x68] sm:$0xff] }
  0xd9   :  { %v1178_v31 = vpop.f32.mrf.mxu0  ;;  %v1226_v32 = vpop.f32.mrf.mxu1  ;;  %v350_v24 = vld [vmem:[%s2202_s6 + $0x168] sm:$0xff] }
  0xda   :  { %948 = vst.msk [vmem:[%s2203_s7] sm:$0xff] %vm947_vm1, %v629_v29  ;;  %980 = vst.msk [vmem:[%s2203_s7 + $0x100] sm:$0xff] %vm947_vm1, %v789_v30  ;;  %v644_v35 = vadd.f32 %v1178_v31, %v308_v27  ;;  %v804_v36 = vadd.f32 %v1226_v32, %v340_v28  ;;  %v317_v29 = vld [vmem:[%s2202_s6 + $0x60] sm:$0xff] }
  0xdb   :  { %v638_v37 = vpop.f32.mrf.mxu0  ;;  %v798_v38 = vpop.f32.mrf.mxu1  ;;  %v349_v30 = vld [vmem:[%s2202_s6 + $0x160] sm:$0xff] }
  0xdc   :  { %951 = vst.msk [vmem:[%s2203_s7 + $0x18] sm:$0xff] %vm947_vm1, %v644_v35  ;;  %983 = vst.msk [vmem:[%s2203_s7 + $0x118] sm:$0xff] %vm947_vm1, %v804_v36  ;;  %v639_v41 = vadd.f32 %v638_v37, %v307_v33  ;;  %v799_v42 = vadd.f32 %v798_v38, %v339_v34  ;;  %v320_v35 = vld [vmem:[%s2202_s6 + $0x78] sm:$0xff] }
  0xdd   :  { %v1181_v43 = vpop.f32.mrf.mxu0  ;;  %v1229_v44 = vpop.f32.mrf.mxu1  ;;  %v352_v36 = vld [vmem:[%s2202_s6 + $0x178] sm:$0xff] }
  0xde   :  { %950 = vst.msk [vmem:[%s2203_s7 + $0x10] sm:$0xff] %vm947_vm1, %v639_v41  ;;  %982 = vst.msk [vmem:[%s2203_s7 + $0x110] sm:$0xff] %vm947_vm1, %v799_v42  ;;  %v654_v47 = vadd.f32 %v1181_v43, %v310_v39  ;;  %v814_v48 = vadd.f32 %v1229_v44, %v342_v40  ;;  %v319_v41 = vld [vmem:[%s2202_s6 + $0x70] sm:$0xff] }
  0xdf   :  { %v648_v49 = vpop.f32.mrf.mxu0  ;;  %v808_v50 = vpop.f32.mrf.mxu1  ;;  %v351_v42 = vld [vmem:[%s2202_s6 + $0x170] sm:$0xff] }
  0xe0   :  { %953 = vst.msk [vmem:[%s2203_s7 + $0x28] sm:$0xff] %vm947_vm1, %v654_v47  ;;  %985 = vst.msk [vmem:[%s2203_s7 + $0x128] sm:$0xff] %vm947_vm1, %v814_v48  ;;  %v649_v53 = vadd.f32 %v648_v49, %v309_v45  ;;  %v809_v54 = vadd.f32 %v808_v50, %v341_v46  ;;  %v322_v47 = vld [vmem:[%s2202_s6 + $0x88] sm:$0xff] }
  0xe1   :  { %v1184_v55 = vpop.f32.mrf.mxu0  ;;  %v1232_v56 = vpop.f32.mrf.mxu1  ;;  %v354_v48 = vld [vmem:[%s2202_s6 + $0x188] sm:$0xff] }
  0xe2   :  { %952 = vst.msk [vmem:[%s2203_s7 + $0x20] sm:$0xff] %vm947_vm1, %v649_v53  ;;  %984 = vst.msk [vmem:[%s2203_s7 + $0x120] sm:$0xff] %vm947_vm1, %v809_v54  ;;  %v664_v59 = vadd.f32 %v1184_v55, %v312_v51  ;;  %v824_v60 = vadd.f32 %v1232_v56, %v344_v52  ;;  %v321_v53 = vld [vmem:[%s2202_s6 + $0x80] sm:$0xff] }
  0xe3   :  { %v658_v61 = vpop.f32.mrf.mxu0  ;;  %v818_v62 = vpop.f32.mrf.mxu1  ;;  %v353_v54 = vld [vmem:[%s2202_s6 + $0x180] sm:$0xff] }
  0xe4   :  { %955 = vst.msk [vmem:[%s2203_s7 + $0x38] sm:$0xff] %vm947_vm1, %v664_v59  ;;  %987 = vst.msk [vmem:[%s2203_s7 + $0x138] sm:$0xff] %vm947_vm1, %v824_v60  ;;  %v659_v1 = vadd.f32 %v658_v61, %v311_v57  ;;  %v819_v2 = vadd.f32 %v818_v62, %v343_v58  ;;  %v324_v59 = vld [vmem:[%s2202_s6 + $0x98] sm:$0xff] }
  0xe5   :  { %v1187_v3 = vpop.f32.mrf.mxu0  ;;  %v1235_v4 = vpop.f32.mrf.mxu1  ;;  %v356_v60 = vld [vmem:[%s2202_s6 + $0x198] sm:$0xff] }
  0xe6   :  { %954 = vst.msk [vmem:[%s2203_s7 + $0x30] sm:$0xff] %vm947_vm1, %v659_v1  ;;  %986 = vst.msk [vmem:[%s2203_s7 + $0x130] sm:$0xff] %vm947_vm1, %v819_v2  ;;  %v674_v8 = vadd.f32 %v1187_v3, %v314_v63  ;;  %v834_v9 = vadd.f32 %v1235_v4, %v346_v0  ;;  %v323_v1 = vld [vmem:[%s2202_s6 + $0x90] sm:$0xff] }
  0xe7   :  { %v668_v10 = vpop.f32.mrf.mxu0  ;;  %v828_v11 = vpop.f32.mrf.mxu1  ;;  %v355_v2 = vld [vmem:[%s2202_s6 + $0x190] sm:$0xff] }
  0xe8   :  { %957 = vst.msk [vmem:[%s2203_s7 + $0x48] sm:$0xff] %vm947_vm1, %v674_v8  ;;  %989 = vst.msk [vmem:[%s2203_s7 + $0x148] sm:$0xff] %vm947_vm1, %v834_v9  ;;  %v669_v13 = vadd.f32 %v668_v10, %v313_v6  ;;  %v829_v15 = vadd.f32 %v828_v11, %v345_v7  ;;  %v326_v8 = vld [vmem:[%s2202_s6 + $0xa8] sm:$0xff] }
  0xe9   :  { %v1190_v16 = vpop.f32.mrf.mxu0  ;;  %v1238_v17 = vpop.f32.mrf.mxu1  ;;  %v358_v9 = vld [vmem:[%s2202_s6 + $0x1a8] sm:$0xff] }
  0xea   :  { %956 = vst.msk [vmem:[%s2203_s7 + $0x40] sm:$0xff] %vm947_vm1, %v669_v13  ;;  %988 = vst.msk [vmem:[%s2203_s7 + $0x140] sm:$0xff] %vm947_vm1, %v829_v15  ;;  %v684_v19 = vadd.f32 %v1190_v16, %v316_v12  ;;  %v844_v20 = vadd.f32 %v1238_v17, %v348_v5  ;;  %v325_v13 = vld [vmem:[%s2202_s6 + $0xa0] sm:$0xff] }
  0xeb   :  { %v678_v21 = vpop.f32.mrf.mxu0  ;;  %v838_v22 = vpop.f32.mrf.mxu1  ;;  %v357_v15 = vld [vmem:[%s2202_s6 + $0x1a0] sm:$0xff] }
  0xec   :  { %959 = vst.msk [vmem:[%s2203_s7 + $0x58] sm:$0xff] %vm947_vm1, %v684_v19  ;;  %991 = vst.msk [vmem:[%s2203_s7 + $0x158] sm:$0xff] %vm947_vm1, %v844_v20  ;;  %v679_v25 = vadd.f32 %v678_v21, %v315_v14  ;;  %v839_v26 = vadd.f32 %v838_v22, %v347_v18  ;;  %v328_v19 = vld [vmem:[%s2202_s6 + $0xb8] sm:$0xff] }
  0xed   :  { %v1193_v27 = vpop.f32.mrf.mxu0  ;;  %v1241_v28 = vpop.f32.mrf.mxu1  ;;  %v360_v20 = vld [vmem:[%s2202_s6 + $0x1b8] sm:$0xff] }
  0xee   :  { %958 = vst.msk [vmem:[%s2203_s7 + $0x50] sm:$0xff] %vm947_vm1, %v679_v25  ;;  %990 = vst.msk [vmem:[%s2203_s7 + $0x150] sm:$0xff] %vm947_vm1, %v839_v26  ;;  %v694_v31 = vadd.f32 %v1193_v27, %v318_v23  ;;  %v854_v32 = vadd.f32 %v1241_v28, %v350_v24  ;;  %v327_v25 = vld [vmem:[%s2202_s6 + $0xb0] sm:$0xff] }
  0xef   :  { %v688_v33 = vpop.f32.mrf.mxu0  ;;  %v848_v34 = vpop.f32.mrf.mxu1  ;;  %v359_v26 = vld [vmem:[%s2202_s6 + $0x1b0] sm:$0xff] }
  0xf0   :  { %961 = vst.msk [vmem:[%s2203_s7 + $0x68] sm:$0xff] %vm947_vm1, %v694_v31  ;;  %993 = vst.msk [vmem:[%s2203_s7 + $0x168] sm:$0xff] %vm947_vm1, %v854_v32  ;;  %v689_v37 = vadd.f32 %v688_v33, %v317_v29  ;;  %v849_v38 = vadd.f32 %v848_v34, %v349_v30  ;;  %v330_v31 = vld [vmem:[%s2202_s6 + $0xc8] sm:$0xff] }
  0xf1   :  { %v1196_v39 = vpop.f32.mrf.mxu0  ;;  %v1244_v40 = vpop.f32.mrf.mxu1  ;;  %v362_v32 = vld [vmem:[%s2202_s6 + $0x1c8] sm:$0xff] }
  0xf2   :  { %960 = vst.msk [vmem:[%s2203_s7 + $0x60] sm:$0xff] %vm947_vm1, %v689_v37  ;;  %992 = vst.msk [vmem:[%s2203_s7 + $0x160] sm:$0xff] %vm947_vm1, %v849_v38  ;;  %v704_v43 = vadd.f32 %v1196_v39, %v320_v35  ;;  %v864_v44 = vadd.f32 %v1244_v40, %v352_v36  ;;  %v329_v37 = vld [vmem:[%s2202_s6 + $0xc0] sm:$0xff] }
  0xf3   :  { %v698_v45 = vpop.f32.mrf.mxu0  ;;  %v858_v46 = vpop.f32.mrf.mxu1  ;;  %v361_v38 = vld [vmem:[%s2202_s6 + $0x1c0] sm:$0xff] }
  0xf4   :  { %963 = vst.msk [vmem:[%s2203_s7 + $0x78] sm:$0xff] %vm947_vm1, %v704_v43  ;;  %995 = vst.msk [vmem:[%s2203_s7 + $0x178] sm:$0xff] %vm947_vm1, %v864_v44  ;;  %v699_v49 = vadd.f32 %v698_v45, %v319_v41  ;;  %v859_v50 = vadd.f32 %v858_v46, %v351_v42  ;;  %v332_v43 = vld [vmem:[%s2202_s6 + $0xd8] sm:$0xff] }
  0xf5   :  { %v1199_v51 = vpop.f32.mrf.mxu0  ;;  %v1247_v52 = vpop.f32.mrf.mxu1  ;;  %v364_v44 = vld [vmem:[%s2202_s6 + $0x1d8] sm:$0xff] }
  0xf6   :  { %962 = vst.msk [vmem:[%s2203_s7 + $0x70] sm:$0xff] %vm947_vm1, %v699_v49  ;;  %994 = vst.msk [vmem:[%s2203_s7 + $0x170] sm:$0xff] %vm947_vm1, %v859_v50  ;;  %v714_v55 = vadd.f32 %v1199_v51, %v322_v47  ;;  %v874_v56 = vadd.f32 %v1247_v52, %v354_v48  ;;  %v331_v49 = vld [vmem:[%s2202_s6 + $0xd0] sm:$0xff] }
  0xf7   :  { %v708_v57 = vpop.f32.mrf.mxu0  ;;  %v868_v58 = vpop.f32.mrf.mxu1  ;;  %v363_v50 = vld [vmem:[%s2202_s6 + $0x1d0] sm:$0xff] }
  0xf8   :  { %965 = vst.msk [vmem:[%s2203_s7 + $0x88] sm:$0xff] %vm947_vm1, %v714_v55  ;;  %997 = vst.msk [vmem:[%s2203_s7 + $0x188] sm:$0xff] %vm947_vm1, %v874_v56  ;;  %v709_v61 = vadd.f32 %v708_v57, %v321_v53  ;;  %v869_v62 = vadd.f32 %v868_v58, %v353_v54  ;;  %v334_v55 = vld [vmem:[%s2202_s6 + $0xe8] sm:$0xff] }
  0xf9   :  { %v1202_v63 = vpop.f32.mrf.mxu0  ;;  %v1250_v0 = vpop.f32.mrf.mxu1  ;;  %v366_v56 = vld [vmem:[%s2202_s6 + $0x1e8] sm:$0xff] }
  0xfa   :  { %964 = vst.msk [vmem:[%s2203_s7 + $0x80] sm:$0xff] %vm947_vm1, %v709_v61  ;;  %996 = vst.msk [vmem:[%s2203_s7 + $0x180] sm:$0xff] %vm947_vm1, %v869_v62  ;;  %v724_v3 = vadd.f32 %v1202_v63, %v324_v59  ;;  %v884_v4 = vadd.f32 %v1250_v0, %v356_v60  ;;  %v333_v61 = vld [vmem:[%s2202_s6 + $0xe0] sm:$0xff] }
  0xfb   :  { %v718_v6 = vpop.f32.mrf.mxu0  ;;  %v878_v7 = vpop.f32.mrf.mxu1  ;;  %v365_v62 = vld [vmem:[%s2202_s6 + $0x1e0] sm:$0xff] }
  0xfc   :  { %967 = vst.msk [vmem:[%s2203_s7 + $0x98] sm:$0xff] %vm947_vm1, %v724_v3  ;;  %999 = vst.msk [vmem:[%s2203_s7 + $0x198] sm:$0xff] %vm947_vm1, %v884_v4  ;;  %v719_v10 = vadd.f32 %v718_v6, %v323_v1  ;;  %v879_v11 = vadd.f32 %v878_v7, %v355_v2  ;;  %v336_v3 = vld [vmem:[%s2202_s6 + $0xf8] sm:$0xff] }
  0xfd   :  { %v1205_v12 = vpop.f32.mrf.mxu0  ;;  %v1253_v5 = vpop.f32.mrf.mxu1  ;;  %v368_v4 = vld [vmem:[%s2202_s6 + $0x1f8] sm:$0xff] }
  0xfe   :  { %966 = vst.msk [vmem:[%s2203_s7 + $0x90] sm:$0xff] %vm947_vm1, %v719_v10  ;;  %998 = vst.msk [vmem:[%s2203_s7 + $0x190] sm:$0xff] %vm947_vm1, %v879_v11  ;;  %v734_v16 = vadd.f32 %v1205_v12, %v326_v8  ;;  %v894_v17 = vadd.f32 %v1253_v5, %v358_v9  ;;  %v335_v10 = vld [vmem:[%s2202_s6 + $0xf0] sm:$0xff] }
  0xff   :  { %v728_v14 = vpop.f32.mrf.mxu0  ;;  %v888_v18 = vpop.f32.mrf.mxu1  ;;  %v367_v11 = vld [vmem:[%s2202_s6 + $0x1f0] sm:$0xff] }
 0x100   :  { %969 = vst.msk [vmem:[%s2203_s7 + $0xa8] sm:$0xff] %vm947_vm1, %v734_v16  ;;  %1001 = vst.msk [vmem:[%s2203_s7 + $0x1a8] sm:$0xff] %vm947_vm1, %v894_v17  ;;  %v729_v21 = vadd.f32 %v728_v14, %v325_v13  ;;  %v889_v22 = vadd.f32 %v888_v18, %v357_v15 }
 0x101   :  { %v1208_v23 = vpop.f32.mrf.mxu0  ;;  %v1256_v24 = vpop.f32.mrf.mxu1 }
 0x102   :  { %968 = vst.msk [vmem:[%s2203_s7 + $0xa0] sm:$0xff] %vm947_vm1, %v729_v21  ;;  %1000 = vst.msk [vmem:[%s2203_s7 + $0x1a0] sm:$0xff] %vm947_vm1, %v889_v22  ;;  %v744_v27 = vadd.f32 %v1208_v23, %v328_v19  ;;  %v904_v28 = vadd.f32 %v1256_v24, %v360_v20 }
 0x103   :  { %v738_v29 = vpop.f32.mrf.mxu0  ;;  %v898_v30 = vpop.f32.mrf.mxu1 }
 0x104   :  { %971 = vst.msk [vmem:[%s2203_s7 + $0xb8] sm:$0xff] %vm947_vm1, %v744_v27  ;;  %1003 = vst.msk [vmem:[%s2203_s7 + $0x1b8] sm:$0xff] %vm947_vm1, %v904_v28  ;;  %v739_v33 = vadd.f32 %v738_v29, %v327_v25  ;;  %v899_v34 = vadd.f32 %v898_v30, %v359_v26 }
 0x105   :  { %v1211_v35 = vpop.f32.mrf.mxu0  ;;  %v1259_v36 = vpop.f32.mrf.mxu1 }
 0x106   :  { %970 = vst.msk [vmem:[%s2203_s7 + $0xb0] sm:$0xff] %vm947_vm1, %v739_v33  ;;  %1002 = vst.msk [vmem:[%s2203_s7 + $0x1b0] sm:$0xff] %vm947_vm1, %v899_v34  ;;  %v754_v39 = vadd.f32 %v1211_v35, %v330_v31  ;;  %v914_v40 = vadd.f32 %v1259_v36, %v362_v32 }
 0x107   :  { %v748_v41 = vpop.f32.mrf.mxu0  ;;  %v908_v42 = vpop.f32.mrf.mxu1 }
 0x108   :  { %973 = vst.msk [vmem:[%s2203_s7 + $0xc8] sm:$0xff] %vm947_vm1, %v754_v39  ;;  %1005 = vst.msk [vmem:[%s2203_s7 + $0x1c8] sm:$0xff] %vm947_vm1, %v914_v40  ;;  %v749_v45 = vadd.f32 %v748_v41, %v329_v37  ;;  %v909_v46 = vadd.f32 %v908_v42, %v361_v38 }
 0x109   :  { %v1214_v47 = vpop.f32.mrf.mxu0  ;;  %v1262_v48 = vpop.f32.mrf.mxu1 }
 0x10a   :  { %972 = vst.msk [vmem:[%s2203_s7 + $0xc0] sm:$0xff] %vm947_vm1, %v749_v45  ;;  %1004 = vst.msk [vmem:[%s2203_s7 + $0x1c0] sm:$0xff] %vm947_vm1, %v909_v46  ;;  %v764_v51 = vadd.f32 %v1214_v47, %v332_v43  ;;  %v924_v52 = vadd.f32 %v1262_v48, %v364_v44 }
 0x10b   :  { %v758_v53 = vpop.f32.mrf.mxu0  ;;  %v918_v54 = vpop.f32.mrf.mxu1 }
 0x10c   :  { %975 = vst.msk [vmem:[%s2203_s7 + $0xd8] sm:$0xff] %vm947_vm1, %v764_v51  ;;  %1007 = vst.msk [vmem:[%s2203_s7 + $0x1d8] sm:$0xff] %vm947_vm1, %v924_v52  ;;  %v759_v57 = vadd.f32 %v758_v53, %v331_v49  ;;  %v919_v58 = vadd.f32 %v918_v54, %v363_v50 }
 0x10d   :  { %v1217_v59 = vpop.f32.mrf.mxu0  ;;  %v1265_v60 = vpop.f32.mrf.mxu1 }
 0x10e   :  { %974 = vst.msk [vmem:[%s2203_s7 + $0xd0] sm:$0xff] %vm947_vm1, %v759_v57  ;;  %1006 = vst.msk [vmem:[%s2203_s7 + $0x1d0] sm:$0xff] %vm947_vm1, %v919_v58  ;;  %v774_v63 = vadd.f32 %v1217_v59, %v334_v55  ;;  %v934_v0 = vadd.f32 %v1265_v60, %v366_v56 }
 0x10f   :  { %v768_v1 = vpop.f32.mrf.mxu0  ;;  %v928_v2 = vpop.f32.mrf.mxu1 }
 0x110   :  { %977 = vst.msk [vmem:[%s2203_s7 + $0xe8] sm:$0xff] %vm947_vm1, %v774_v63  ;;  %1009 = vst.msk [vmem:[%s2203_s7 + $0x1e8] sm:$0xff] %vm947_vm1, %v934_v0  ;;  %v769_v6 = vadd.f32 %v768_v1, %v333_v61  ;;  %v929_v7 = vadd.f32 %v928_v2, %v365_v62 }
 0x111   :  { %v1220_v8 = vpop.f32.mrf.mxu0  ;;  %v1268_v9 = vpop.f32.mrf.mxu1 }
 0x112   :  { %976 = vst.msk [vmem:[%s2203_s7 + $0xe0] sm:$0xff] %vm947_vm1, %v769_v6  ;;  %1008 = vst.msk [vmem:[%s2203_s7 + $0x1e0] sm:$0xff] %vm947_vm1, %v929_v7  ;;  %v784_v12 = vadd.f32 %v1220_v8, %v336_v3  ;;  %v944_v5 = vadd.f32 %v1268_v9, %v368_v4 }
 0x113   :  { %v778_v13 = vpop.f32.mrf.mxu0  ;;  %v938_v15 = vpop.f32.mrf.mxu1 }
 0x114   :  { %979 = vst.msk [vmem:[%s2203_s7 + $0xf8] sm:$0xff] %vm947_vm1, %v784_v12  ;;  %1011 = vst.msk [vmem:[%s2203_s7 + $0x1f8] sm:$0xff] %vm947_vm1, %v944_v5  ;;  %v779_v16 = vadd.f32 %v778_v13, %v335_v10  ;;  %v939_v17 = vadd.f32 %v938_v15, %v367_v11 }
 0x116   :  { %978 = vst.msk [vmem:[%s2203_s7 + $0xf0] sm:$0xff] %vm947_vm1, %v779_v16  ;;  %1010 = vst.msk [vmem:[%s2203_s7 + $0x1f0] sm:$0xff] %vm947_vm1, %v939_v17 }

// kernel: forward.24
= control target key start
LH: loop header
LB: loop body
LE: loop exit
PB: predicated region body
PF: predicated region fallthrough
CT: control target
= control target key end

     0   :  { %vm67_vm0 = vcmask 588800   ;;  %vm261_vm1 = vcmask 130048   ;;  %s626_s1 = inlined_call_operand.vmem [shape: f32[72,16], index: 1, kind: input, shape index: {}]   ;;  %s627_s2 = inlined_call_operand.vmem [shape: f32[1,72], index: 2, kind: input, shape index: {}]   ;;  %s628_s3 = inlined_call_operand.vmem [shape: f32[1,72], index: 3, kind: input, shape index: {}]   ;;  %s629_s4 = inlined_call_operand.vmem [shape: f32[1,16], index: 4, kind: input, shape index: {}]   ;;  %s630_s5 = inlined_call_operand.vmem [shape: f32[1,16], index: 5, kind: input, shape index: {}]   ;;  %s631_s0 = inlined_call_operand.vmem [shape: f32[128,72], index: 0, kind: input, shape index: {}]   ;;  %s632_s6 = inlined_call_operand.vmem [shape: f32[128,16], index: 6, kind: input, shape index: {}]   ;;  %s633_s7 = inlined_call_operand.vmem [shape: f32[128,16], index: 7, kind: output, shape index: {}]  }
   0x1   :  { %v50_v0 = vld [vmem:[%s626_s1 + $0x40] sm:$0xff]  ;;  %v49_v1 = vld [vmem:[%s626_s1 + $0x38] sm:$0xff]  ;;  %v48_v2 = vld [vmem:[%s626_s1 + $0x30] sm:$0xff] }
   0x2   :  { %323 = vmatprep.subr.mxu0 %v50_v0  ;;  %365 = vmatprep.subr.mxu1 %v50_v0  ;;  %v47_v3 = vld [vmem:[%s626_s1 + $0x28] sm:$0xff]  ;;  %v46_v4 = vld [vmem:[%s626_s1 + $0x20] sm:$0xff]  ;;  %v45_v5 = vld [vmem:[%s626_s1 + $0x18] sm:$0xff] }
   0x3   :  { %324 = vmatpush3.msra.mxu0 %v50_v0  ;;  %374 = vmatpush3.msra.mxu1 %v50_v0  ;;  %v44_v6 = vld [vmem:[%s626_s1 + $0x10] sm:$0xff]  ;;  %v43_v7 = vld [vmem:[%s626_s1 + $0x8] sm:$0xff]  ;;  %v42_v8 = vld [vmem:[%s626_s1] sm:$0xff] }
   0x4   :  { %325 = vmatprep.subr.mxu0 %v49_v1  ;;  %366 = vmatprep.subr.mxu1 %v49_v1  ;;  %v26_v9 = vld [vmem:[%s631_s0] sm:$0xff]  ;;  %v27_v11 = vld [vmem:[%s631_s0 + $0x8] sm:$0xff]  ;;  %v28_v13 = vld [vmem:[%s631_s0 + $0x10] sm:$0xff] }
   0x5   :  { %326 = vmatpush3.msra.mxu0 %v49_v1  ;;  %375 = vmatpush3.msra.mxu1 %v49_v1  ;;  %v34_v10 = vld [vmem:[%s631_s0 + $0x40] sm:$0xff]  ;;  %v35_v12 = vld [vmem:[%s631_s0 + $0x48] sm:$0xff]  ;;  %v36_v14 = vld [vmem:[%s631_s0 + $0x50] sm:$0xff] }
   0x6   :  { %327 = vmatprep.subr.mxu0 %v48_v2  ;;  %367 = vmatprep.subr.mxu1 %v48_v2  ;;  %v29_v15 = vld [vmem:[%s631_s0 + $0x18] sm:$0xff]  ;;  %v30_v17 = vld [vmem:[%s631_s0 + $0x20] sm:$0xff]  ;;  %v31_v19 = vld [vmem:[%s631_s0 + $0x28] sm:$0xff] }
   0x7   :  { %328 = vmatpush3.msra.mxu0 %v48_v2  ;;  %376 = vmatpush3.msra.mxu1 %v48_v2  ;;  %v37_v16 = vld [vmem:[%s631_s0 + $0x58] sm:$0xff]  ;;  %v38_v18 = vld [vmem:[%s631_s0 + $0x60] sm:$0xff]  ;;  %v39_v20 = vld [vmem:[%s631_s0 + $0x68] sm:$0xff] }
   0x8   :  { %329 = vmatprep.subr.mxu0 %v47_v3  ;;  %368 = vmatprep.subr.mxu1 %v47_v3  ;;  %v32_v21 = vld [vmem:[%s631_s0 + $0x30] sm:$0xff]  ;;  %v33_v23 = vld [vmem:[%s631_s0 + $0x38] sm:$0xff]  ;;  %v52_v25 = vld [vmem:[%s632_s6 + $0x8] sm:$0xff] }
   0x9   :  { %330 = vmatpush3.msra.mxu0 %v47_v3  ;;  %377 = vmatpush3.msra.mxu1 %v47_v3  ;;  %v40_v22 = vld [vmem:[%s631_s0 + $0x70] sm:$0xff]  ;;  %v41_v24 = vld [vmem:[%s631_s0 + $0x78] sm:$0xff]  ;;  %v60_v26 = vld [vmem:[%s632_s6 + $0x48] sm:$0xff] }
   0xa   :  { %331 = vmatprep.subr.mxu0 %v46_v4  ;;  %369 = vmatprep.subr.mxu1 %v46_v4  ;;  %v51_v29 = vld [vmem:[%s632_s6] sm:$0xff]  ;;  %v54_v35 = vld [vmem:[%s632_s6 + $0x18] sm:$0xff]  ;;  %v53_v41 = vld [vmem:[%s632_s6 + $0x10] sm:$0xff] }
   0xb   :  { %332 = vmatpush3.msra.mxu0 %v46_v4  ;;  %378 = vmatpush3.msra.mxu1 %v46_v4  ;;  %v59_v30 = vld [vmem:[%s632_s6 + $0x40] sm:$0xff]  ;;  %v62_v36 = vld [vmem:[%s632_s6 + $0x58] sm:$0xff]  ;;  %v61_v42 = vld [vmem:[%s632_s6 + $0x50] sm:$0xff] }
   0xc   :  { %333 = vmatprep.subr.mxu0 %v45_v5  ;;  %370 = vmatprep.subr.mxu1 %v45_v5  ;;  %v56_v47 = vld [vmem:[%s632_s6 + $0x28] sm:$0xff]  ;;  %v55_v53 = vld [vmem:[%s632_s6 + $0x20] sm:$0xff]  ;;  %v58_v59 = vld [vmem:[%s632_s6 + $0x38] sm:$0xff] }
   0xd   :  { %334 = vmatpush3.msra.mxu0 %v45_v5  ;;  %379 = vmatpush3.msra.mxu1 %v45_v5  ;;  %v64_v48 = vld [vmem:[%s632_s6 + $0x68] sm:$0xff]  ;;  %v63_v54 = vld [vmem:[%s632_s6 + $0x60] sm:$0xff]  ;;  %v66_v60 = vld [vmem:[%s632_s6 + $0x78] sm:$0xff] }
   0xe   :  { %335 = vmatprep.subr.mxu0 %v44_v6  ;;  %371 = vmatprep.subr.mxu1 %v44_v6  ;;  %v57_v1 = vld [vmem:[%s632_s6 + $0x30] sm:$0xff] }
   0xf   :  { %336 = vmatpush3.msra.mxu0 %v44_v6  ;;  %380 = vmatpush3.msra.mxu1 %v44_v6  ;;  %v65_v2 = vld [vmem:[%s632_s6 + $0x70] sm:$0xff] }
  0x10   :  { %337 = vmatprep.subr.mxu0 %v43_v7  ;;  %372 = vmatprep.subr.mxu1 %v43_v7 }
  0x11   :  { %338 = vmatpush3.msra.mxu0 %v43_v7  ;;  %381 = vmatpush3.msra.mxu1 %v43_v7 }
  0x12   :  { %339 = vmatprep.subr.mxu0 %v42_v8  ;;  %373 = vmatprep.subr.mxu1 %v42_v8 }
  0x13   :  { %340 = vmatpush3.msra.mxu0 %v42_v8  ;;  %382 = vmatpush3.msra.mxu1 %v42_v8 }
  0x14   :  { %341 = vmatprep.mubr.msk.f32.mxu0 %vm67_vm0, %v26_v9  ;;  %353 = vmatprep.mubr.msk.f32.mxu1 %vm67_vm0, %v34_v10 }
  0x15   :  { %342 = vmatmul.mubr.msk.f32.vlgmr.msra.gmra.mxu0 %vm67_vm0, %v27_v11  ;;  %354 = vmatmul.mubr.msk.f32.vlgmr.msra.gmra.mxu1 %vm67_vm0, %v35_v12 }
  0x16   :  { %344 = vmatprep.mubr.msk.f32.mxu0 %vm67_vm0, %v28_v13  ;;  %356 = vmatprep.mubr.msk.f32.mxu1 %vm67_vm0, %v36_v14 }
  0x19   :  { %345 = vmatmul.mubr.msk.f32.gmra.mxu0 %vm67_vm0, %v29_v15  ;;  %357 = vmatmul.mubr.msk.f32.gmra.mxu1 %vm67_vm0, %v37_v16 }
  0x1a   :  { %347 = vmatprep.mubr.msk.f32.mxu0 %vm67_vm0, %v30_v17  ;;  %359 = vmatprep.mubr.msk.f32.mxu1 %vm67_vm0, %v38_v18 }
  0x1d   :  { %348 = vmatmul.mubr.msk.f32.gmra.mxu0 %vm67_vm0, %v31_v19  ;;  %360 = vmatmul.mubr.msk.f32.gmra.mxu1 %vm67_vm0, %v39_v20 }
  0x1e   :  { %350 = vmatprep.mubr.msk.f32.mxu0 %vm67_vm0, %v32_v21  ;;  %362 = vmatprep.mubr.msk.f32.mxu1 %vm67_vm0, %v40_v22 }
  0x21   :  { %351 = vmatmul.mubr.msk.f32.gmra.mxu0 %vm67_vm0, %v33_v23  ;;  %363 = vmatmul.mubr.msk.f32.gmra.mxu1 %vm67_vm0, %v41_v24 }
  0xd5   :  { %v343_v27 = vpop.f32.mrf.mxu0  ;;  %v355_v28 = vpop.f32.mrf.mxu1 }
  0xd6   :  { %v188_v31 = vadd.f32 %v343_v27, %v52_v25  ;;  %v228_v32 = vadd.f32 %v355_v28, %v60_v26 }
  0xd7   :  { %v182_v33 = vpop.f32.mrf.mxu0  ;;  %v222_v34 = vpop.f32.mrf.mxu1 }
  0xd8   :  { %263 = vst.msk [vmem:[%s633_s7 + $0x8] sm:$0xff] %vm261_vm1, %v188_v31  ;;  %271 = vst.msk [vmem:[%s633_s7 + $0x48] sm:$0xff] %vm261_vm1, %v228_v32  ;;  %v183_v37 = vadd.f32 %v182_v33, %v51_v29  ;;  %v223_v38 = vadd.f32 %v222_v34, %v59_v30 }
  0xd9   :  { %v346_v39 = vpop.f32.mrf.mxu0  ;;  %v358_v40 = vpop.f32.mrf.mxu1 }
  0xda   :  { %262 = vst.msk [vmem:[%s633_s7] sm:$0xff] %vm261_vm1, %v183_v37  ;;  %270 = vst.msk [vmem:[%s633_s7 + $0x40] sm:$0xff] %vm261_vm1, %v223_v38  ;;  %v198_v43 = vadd.f32 %v346_v39, %v54_v35  ;;  %v238_v44 = vadd.f32 %v358_v40, %v62_v36 }
  0xdb   :  { %v192_v45 = vpop.f32.mrf.mxu0  ;;  %v232_v46 = vpop.f32.mrf.mxu1 }
  0xdc   :  { %265 = vst.msk [vmem:[%s633_s7 + $0x18] sm:$0xff] %vm261_vm1, %v198_v43  ;;  %273 = vst.msk [vmem:[%s633_s7 + $0x58] sm:$0xff] %vm261_vm1, %v238_v44  ;;  %v193_v49 = vadd.f32 %v192_v45, %v53_v41  ;;  %v233_v50 = vadd.f32 %v232_v46, %v61_v42 }
  0xdd   :  { %v349_v51 = vpop.f32.mrf.mxu0  ;;  %v361_v52 = vpop.f32.mrf.mxu1 }
  0xde   :  { %264 = vst.msk [vmem:[%s633_s7 + $0x10] sm:$0xff] %vm261_vm1, %v193_v49  ;;  %272 = vst.msk [vmem:[%s633_s7 + $0x50] sm:$0xff] %vm261_vm1, %v233_v50  ;;  %v208_v55 = vadd.f32 %v349_v51, %v56_v47  ;;  %v248_v56 = vadd.f32 %v361_v52, %v64_v48 }
  0xdf   :  { %v202_v57 = vpop.f32.mrf.mxu0  ;;  %v242_v58 = vpop.f32.mrf.mxu1 }
  0xe0   :  { %267 = vst.msk [vmem:[%s633_s7 + $0x28] sm:$0xff] %vm261_vm1, %v208_v55  ;;  %275 = vst.msk [vmem:[%s633_s7 + $0x68] sm:$0xff] %vm261_vm1, %v248_v56  ;;  %v203_v61 = vadd.f32 %v202_v57, %v55_v53  ;;  %v243_v62 = vadd.f32 %v242_v58, %v63_v54 }
  0xe1   :  { %v352_v63 = vpop.f32.mrf.mxu0  ;;  %v364_v0 = vpop.f32.mrf.mxu1 }
  0xe2   :  { %266 = vst.msk [vmem:[%s633_s7 + $0x20] sm:$0xff] %vm261_vm1, %v203_v61  ;;  %274 = vst.msk [vmem:[%s633_s7 + $0x60] sm:$0xff] %vm261_vm1, %v243_v62  ;;  %v218_v3 = vadd.f32 %v352_v63, %v58_v59  ;;  %v258_v4 = vadd.f32 %v364_v0, %v66_v60 }
  0xe3   :  { %v212_v5 = vpop.f32.mrf.mxu0  ;;  %v252_v6 = vpop.f32.mrf.mxu1 }
  0xe4   :  { %269 = vst.msk [vmem:[%s633_s7 + $0x38] sm:$0xff] %vm261_vm1, %v218_v3  ;;  %277 = vst.msk [vmem:[%s633_s7 + $0x78] sm:$0xff] %vm261_vm1, %v258_v4  ;;  %v213_v7 = vadd.f32 %v212_v5, %v57_v1  ;;  %v253_v8 = vadd.f32 %v252_v6, %v65_v2 }
  0xe6   :  { %268 = vst.msk [vmem:[%s633_s7 + $0x30] sm:$0xff] %vm261_vm1, %v213_v7  ;;  %276 = vst.msk [vmem:[%s633_s7 + $0x70] sm:$0xff] %vm261_vm1, %v253_v8 }

// kernel: forward.23
= control target key start
LH: loop header
LB: loop body
LE: loop exit
PB: predicated region body
PF: predicated region fallthrough
CT: control target
= control target key end

     0   :  { %vm102_vm0 = vcmask 64512   ;;  %vm296_vm1 = vcmask 130048   ;;  %s588_s1 = inlined_call_operand.vmem [shape: f32[8,16], index: 1, kind: input, shape index: {}]   ;;  %s589_s4 = inlined_call_operand.vmem [shape: f32[1,16], index: 4, kind: input, shape index: {}]   ;;  %s590_s5 = inlined_call_operand.vmem [shape: f32[1,16], index: 5, kind: input, shape index: {}]   ;;  %s591_s0 = inlined_call_operand.vmem [shape: f32[128,8], index: 0, kind: input, shape index: {}]   ;;  %s592_s2 = inlined_call_operand.vmem [shape: f32[1,8], index: 2, kind: input, shape index: {}]   ;;  %s593_s3 = inlined_call_operand.vmem [shape: f32[1,8], index: 3, kind: input, shape index: {}]   ;;  %s594_s6 = inlined_call_operand.vmem [shape: f32[128,16], index: 6, kind: output, shape index: {}]  }
   0x1   :  { %v101_v0 = vld [vmem:[%s588_s1] sm:$0xff]  ;;  %v24_v6 = vld [vmem:[%s591_s0 + $0x8] sm:$0xff]  ;;  %v25_v10 = vld [vmem:[%s591_s0 + $0x10] sm:$0xff] }
   0x2   :  { %v23_v1 = vld [vmem:[%s591_s0] sm:$0xff]  ;;  %352 = vmatprep.subr.mxu0 %v101_v0  ;;  %378 = vmatprep.subr.mxu1 %v101_v0  ;;  %v32_v9 = vld [vmem:[%s591_s0 + $0x48] sm:$0xff]  ;;  %v33_v11 = vld [vmem:[%s591_s0 + $0x50] sm:$0xff] }
   0x3   :  { %v424_v2 = vld [vmem:[%s592_s2] ss:$0 sm:$0xff]  ;;  %353 = vmatpush3.msra.mxu0 %v101_v0  ;;  %379 = vmatpush3.msra.mxu1 %v101_v0  ;;  %v26_v16 = vld [vmem:[%s591_s0 + $0x18] sm:$0xff]  ;;  %v28_v28 = vld [vmem:[%s591_s0 + $0x28] sm:$0xff] }
   0x4   :  { %v46_v3 = vmul.f32 %v424_v2, %v23_v1  ;;  %v430_v4 = vld [vmem:[%s593_s3] ss:$0 sm:$0xff]  ;;  %v47_v8 = vmul.f32 %v424_v2, %v24_v6  ;;  %v55_v13 = vmul.f32 %v424_v2, %v32_v9  ;;  %v48_v14 = vmul.f32 %v424_v2, %v25_v10  ;;  %v34_v17 = vld [vmem:[%s591_s0 + $0x58] sm:$0xff]  ;;  %v36_v33 = vld [vmem:[%s591_s0 + $0x68] sm:$0xff] }
   0x5   :  { %v31_v5 = vld [vmem:[%s591_s0 + $0x40] sm:$0xff]  ;;  %v56_v15 = vmul.f32 %v424_v2, %v33_v11  ;;  %v49_v20 = vmul.f32 %v424_v2, %v26_v16  ;;  %v57_v21 = vmul.f32 %v424_v2, %v34_v17  ;;  %v29_v34 = vld [vmem:[%s591_s0 + $0x30] sm:$0xff]  ;;  %v30_v40 = vld [vmem:[%s591_s0 + $0x38] sm:$0xff]  ;;  %v51_v43 = vmul.f32 %v424_v2, %v28_v28 }
   0x6   :  { %v54_v7 = vmul.f32 %v424_v2, %v31_v5  ;;  %v69_v12 = vadd.f32 %v430_v4, %v46_v3  ;;  %v70_v19 = vadd.f32 %v430_v4, %v47_v8  ;;  %v27_v22 = vld [vmem:[%s591_s0 + $0x20] sm:$0xff]  ;;  %v78_v24 = vadd.f32 %v430_v4, %v55_v13  ;;  %v37_v39 = vld [vmem:[%s591_s0 + $0x70] sm:$0xff]  ;;  %v38_v44 = vld [vmem:[%s591_s0 + $0x78] sm:$0xff] }
   0x7   :  { %v71_v25 = vadd.f32 %v430_v4, %v48_v14  ;;  %v79_v26 = vadd.f32 %v430_v4, %v56_v15  ;;  %v35_v27 = vld [vmem:[%s591_s0 + $0x60] sm:$0xff]  ;;  %v72_v31 = vadd.f32 %v430_v4, %v49_v20  ;;  %v80_v32 = vadd.f32 %v430_v4, %v57_v21 }
   0x8   :  { %v77_v18 = vadd.f32 %v430_v4, %v54_v7  ;;  %v85_v23 = vmax.f32 %v69_v12, 0.0  ;;  %v86_v30 = vmax.f32 %v70_v19, 0.0  ;;  %v94_v35 = vmax.f32 %v78_v24, 0.0 }
   0x9   :  { %v87_v36 = vmax.f32 %v71_v25, 0.0  ;;  %v95_v37 = vmax.f32 %v79_v26, 0.0  ;;  %v50_v38 = vmul.f32 %v424_v2, %v27_v22  ;;  %v88_v41 = vmax.f32 %v72_v31, 0.0 }
   0xa   :  { %v93_v29 = vmax.f32 %v77_v18, 0.0  ;;  %354 = vmatprep.mubr.msk.f32.mxu0 %vm102_vm0, %v85_v23  ;;  %v58_v42 = vmul.f32 %v424_v2, %v35_v27  ;;  %v96_v45 = vmax.f32 %v80_v32, 0.0  ;;  %v59_v47 = vmul.f32 %v424_v2, %v36_v33 }
   0xb   :  { %355 = vmatmul.mubr.msk.f32.vlgmr.msra.gmra.mxu0 %vm102_vm0, %v86_v30  ;;  %v73_v46 = vadd.f32 %v430_v4, %v50_v38  ;;  %v52_v48 = vmul.f32 %v424_v2, %v29_v34  ;;  %v74_v50 = vadd.f32 %v430_v4, %v51_v43  ;;  %v60_v51 = vmul.f32 %v424_v2, %v37_v39 }
   0xc   :  { %366 = vmatprep.mubr.msk.f32.mxu1 %vm102_vm0, %v93_v29  ;;  %357 = vmatprep.mubr.msk.f32.mxu0 %vm102_vm0, %v87_v36  ;;  %v81_v49 = vadd.f32 %v430_v4, %v58_v42  ;;  %v53_v52 = vmul.f32 %v424_v2, %v30_v40  ;;  %v82_v54 = vadd.f32 %v430_v4, %v59_v47 }
   0xd   :  { %367 = vmatmul.mubr.msk.f32.vlgmr.msra.gmra.mxu1 %vm102_vm0, %v94_v35  ;;  %v89_v53 = vmax.f32 %v73_v46, 0.0  ;;  %v75_v55 = vadd.f32 %v430_v4, %v52_v48  ;;  %v61_v56 = vmul.f32 %v424_v2, %v38_v44  ;;  %v90_v58 = vmax.f32 %v74_v50, 0.0 }
   0xe   :  { %369 = vmatprep.mubr.msk.f32.mxu1 %vm102_vm0, %v95_v37  ;;  %v97_v57 = vmax.f32 %v81_v49, 0.0  ;;  %v83_v59 = vadd.f32 %v430_v4, %v60_v51  ;;  %v76_v60 = vadd.f32 %v430_v4, %v53_v52  ;;  %v98_v61 = vmax.f32 %v82_v54, 0.0 }
   0xf   :  { %358 = vmatmul.mubr.msk.f32.gmra.mxu0 %vm102_vm0, %v88_v41  ;;  %v91_v62 = vmax.f32 %v75_v55, 0.0  ;;  %v84_v63 = vadd.f32 %v430_v4, %v61_v56 }
  0x10   :  { %360 = vmatprep.mubr.msk.f32.mxu0 %vm102_vm0, %v89_v53  ;;  %v99_v0 = vmax.f32 %v83_v59, 0.0  ;;  %v92_v1 = vmax.f32 %v76_v60, 0.0 }
  0x11   :  { %370 = vmatmul.mubr.msk.f32.gmra.mxu1 %vm102_vm0, %v96_v45  ;;  %v100_v2 = vmax.f32 %v84_v63, 0.0 }
  0x12   :  { %372 = vmatprep.mubr.msk.f32.mxu1 %vm102_vm0, %v97_v57 }
  0x13   :  { %361 = vmatmul.mubr.msk.f32.gmra.mxu0 %vm102_vm0, %v90_v58 }
  0x14   :  { %363 = vmatprep.mubr.msk.f32.mxu0 %vm102_vm0, %v91_v62 }
  0x15   :  { %373 = vmatmul.mubr.msk.f32.gmra.mxu1 %vm102_vm0, %v98_v61 }
  0x16   :  { %375 = vmatprep.mubr.msk.f32.mxu1 %vm102_vm0, %v99_v0 }
  0x17   :  { %364 = vmatmul.mubr.msk.f32.gmra.mxu0 %vm102_vm0, %v92_v1 }
  0x19   :  { %376 = vmatmul.mubr.msk.f32.gmra.mxu1 %vm102_vm0, %v100_v2 }
  0xcb   :  { %v356_v3 = vpop.f32.mrf.mxu0 }
  0xcc   :  { %298 = vst.msk [vmem:[%s594_s6 + $0x8] sm:$0xff] %vm296_vm1, %v356_v3 }
  0xcd   :  { %v368_v4 = vpop.f32.mrf.mxu1  ;;  %v217_v5 = vpop.f32.mrf.mxu0 }
  0xce   :  { %306 = vst.msk [vmem:[%s594_s6 + $0x48] sm:$0xff] %vm296_vm1, %v368_v4  ;;  %297 = vst.msk [vmem:[%s594_s6] sm:$0xff] %vm296_vm1, %v217_v5 }
  0xcf   :  { %v257_v6 = vpop.f32.mrf.mxu1  ;;  %v359_v7 = vpop.f32.mrf.mxu0 }
  0xd0   :  { %305 = vst.msk [vmem:[%s594_s6 + $0x40] sm:$0xff] %vm296_vm1, %v257_v6  ;;  %300 = vst.msk [vmem:[%s594_s6 + $0x18] sm:$0xff] %vm296_vm1, %v359_v7 }
  0xd1   :  { %v371_v8 = vpop.f32.mrf.mxu1  ;;  %v227_v9 = vpop.f32.mrf.mxu0 }
  0xd2   :  { %308 = vst.msk [vmem:[%s594_s6 + $0x58] sm:$0xff] %vm296_vm1, %v371_v8  ;;  %299 = vst.msk [vmem:[%s594_s6 + $0x10] sm:$0xff] %vm296_vm1, %v227_v9 }
  0xd3   :  { %v267_v10 = vpop.f32.mrf.mxu1  ;;  %v362_v11 = vpop.f32.mrf.mxu0 }
  0xd4   :  { %307 = vst.msk [vmem:[%s594_s6 + $0x50] sm:$0xff] %vm296_vm1, %v267_v10  ;;  %302 = vst.msk [vmem:[%s594_s6 + $0x28] sm:$0xff] %vm296_vm1, %v362_v11 }
  0xd5   :  { %v374_v12 = vpop.f32.mrf.mxu1  ;;  %v237_v13 = vpop.f32.mrf.mxu0 }
  0xd6   :  { %310 = vst.msk [vmem:[%s594_s6 + $0x68] sm:$0xff] %vm296_vm1, %v374_v12  ;;  %301 = vst.msk [vmem:[%s594_s6 + $0x20] sm:$0xff] %vm296_vm1, %v237_v13 }
  0xd7   :  { %v277_v14 = vpop.f32.mrf.mxu1  ;;  %v365_v15 = vpop.f32.mrf.mxu0 }
  0xd8   :  { %309 = vst.msk [vmem:[%s594_s6 + $0x60] sm:$0xff] %vm296_vm1, %v277_v14  ;;  %304 = vst.msk [vmem:[%s594_s6 + $0x38] sm:$0xff] %vm296_vm1, %v365_v15 }
  0xd9   :  { %v377_v16 = vpop.f32.mrf.mxu1  ;;  %v247_v17 = vpop.f32.mrf.mxu0 }
  0xda   :  { %312 = vst.msk [vmem:[%s594_s6 + $0x78] sm:$0xff] %vm296_vm1, %v377_v16  ;;  %303 = vst.msk [vmem:[%s594_s6 + $0x30] sm:$0xff] %vm296_vm1, %v247_v17 }
  0xdb   :  { %v287_v18 = vpop.f32.mrf.mxu1 }
  0xdc   :  { %311 = vst.msk [vmem:[%s594_s6 + $0x70] sm:$0xff] %vm296_vm1, %v287_v18 }

// kernel: tile.58
= control target key start
LH: loop header
LB: loop body
LE: loop exit
PB: predicated region body
PF: predicated region fallthrough
CT: control target
= control target key end

     0   :  { %s28_s0 = inlined_call_operand.vmem [shape: f32[16], index: 0, kind: input, shape index: {}]   ;;  %s29_s1 = inlined_call_operand.vmem [shape: f32[9,16], index: 1, kind: output, shape index: {}]  }
   0x1   :  { %v4_v0 = vld [vmem:[%s28_s0] ss:$0 sm:$0xff] }
   0x2   :  { %5 = vst [vmem:[%s29_s1] sm:$0xff] %v4_v0  ;;  %8 = vst [vmem:[%s29_s1 + $0x8] sm:$0xff] %v4_v0 }

// kernel: tile.59
= control target key start
LH: loop header
LB: loop body
LE: loop exit
PB: predicated region body
PF: predicated region fallthrough
CT: control target
= control target key end

     0   :  { %s77_s10 = smov 112   ;;  %s78_s11 = smov 80   ;;  %vm4_vm0 = vcmask 130048   ;;  %vm10_vm1 = vcmask 1048448   ;;  %vm16_vm2 = vcmask 917248   ;;  %vm22_vm3 = vcmask 786048   ;;  %s124_s0 = inlined_call_operand.vmem [shape: f32[9,16], index: 0, kind: input, shape index: {}]   ;;  %s125_s1 = inlined_call_operand.vmem [shape: f32[1,144], index: 1, kind: output, shape index: {}]  }
   0x1   :  { %v62_v0 = vld [vmem:[%s124_s0 + $0x7] sm:$0x1]   ;;  %v64_v1 = vld [vmem:[%s124_s0 + $0x5] sm:$0x1]   ;;  %v63_v2 = vld [vmem:[%s124_s0 + $0x6] sm:$0x1]  }
   0x2   :  { %8 = vrot.lane.b32.xlu0 %v62_v0, %s77_s10  ;;  %20 = vrot.lane.b32.xlu1 %v64_v1, %s78_s11  ;;  %v65_v3 = vld [vmem:[%s124_s0 + $0x4] sm:$0x1]   ;;  %s2_s16 = smov 3  ;;  %s79_s19 = smov 96   ;;  %v66_v5 = vld [vmem:[%s124_s0 + $0x3] sm:$0x1]  }
   0x3   :  { %v3_v4 = vld [vmem:[%s124_s0] ss:$8 sm:%s2_s16]   ;;  %s80_s20 = smov 64   ;;  %v67_v6 = vld [vmem:[%s124_s0 + $0x2] sm:$0x1]   ;;  %s81_s25 = smov 48  }
   0x4   :  { %5 = vst.msk [vmem:[#allocation0] ss:$8 sm:$0x3] %vm4_vm0, %v3_v4   ;;  %s82_s26 = smov 32   ;;  %v68_v7 = vld [vmem:[%s124_s0 + $0x1] sm:$0x1]  }
   0x5   :  { %s83_s0 = smov 16   ;;  %vm28_vm4 = vcmask 654848   ;;  %vm34_vm5 = vcmask 523648   ;;  %vm40_vm6 = vcmask 392448   ;;  %vm46_vm7 = vcmask 261248  }
   0x6   :  { %14 = vrot.lane.b32.xlu0 %v63_v2, %s79_s19  ;;  %26 = vrot.lane.b32.xlu1 %v65_v3, %s80_s20 }
   0xa   :  { %32 = vrot.lane.b32.xlu0 %v66_v5, %s81_s25  ;;  %38 = vrot.lane.b32.xlu1 %v67_v6, %s82_s26 }
   0xb   :  { %v57_v8 = vld [vmem:[#allocation0 + $0x8] sm:$0x1] }
   0xc   :  { %69 = vst [vmem:[%s125_s1 + $0x1] sm:$0x1] %v57_v8 }
   0xe   :  { %44 = vrot.lane.b32.xlu0 %v68_v7, %s83_s0 }
  0x74   :  { %v9_v9 = vpop.permute.xlu0 %8   ;;  %v21_v10 = vpop.permute.xlu1 %20  }
  0x75   :  { %11 = vst.msk [vmem:[#allocation0] sm:$0x1] %vm10_vm1, %v9_v9  }
  0x78   :  { %v15_v11 = vpop.permute.xlu0 %14   ;;  %v27_v12 = vpop.permute.xlu1 %26  }
  0x79   :  { %17 = vst.msk [vmem:[#allocation0] sm:$0x1] %vm16_vm2, %v15_v11  }
  0x7a   :  { %23 = vst.msk [vmem:[#allocation0] sm:$0x1] %vm22_vm3, %v21_v10  }
  0x7b   :  { %29 = vst.msk [vmem:[#allocation0] sm:$0x1] %vm28_vm4, %v27_v12  }
  0x7c   :  { %v33_v13 = vpop.permute.xlu0 %32   ;;  %v39_v14 = vpop.permute.xlu1 %38  }
  0x7d   :  { %35 = vst.msk [vmem:[#allocation0] sm:$0x1] %vm34_vm5, %v33_v13  }
  0x7e   :  { %41 = vst.msk [vmem:[#allocation0] sm:$0x1] %vm40_vm6, %v39_v14  }
  0x80   :  { %v45_v15 = vpop.permute.xlu0 %44  }
  0x81   :  { %47 = vst.msk [vmem:[#allocation0] sm:$0x1] %vm46_vm7, %v45_v15  }
  0x88   :  { %v52_v16 = vld [vmem:[#allocation0] sm:$0x1] }
  0x89   :  { %55 = vst [vmem:[%s125_s1] sm:$0x1] %v52_v16 }

// kernel: forward.25
= control target key start
LH: loop header
LB: loop body
LE: loop exit
PB: predicated region body
PF: predicated region fallthrough
CT: control target
= control target key end

     0   :  { %s142_s0 = inlined_call_operand.vmem [shape: f32[9,2,1024], index: 0, kind: input, shape index: {}]   ;;  %s143_s1 = inlined_call_operand.vmem [shape: f32[2,1024], index: 1, kind: output, shape index: {}]  }
   0x1   :  { %v8_v0 = vld [vmem:[%s142_s0] sm:$0xff]  ;;  %v56_v1 = vld [vmem:[%s142_s0 + $0x10] sm:$0xff]  ;;  %v9_v6 = vld [vmem:[%s142_s0 + $0x8] sm:$0xff] }
   0x2   :  { %v58_v2 = vld [vmem:[%s142_s0 + $0x20] sm:$0xff]  ;;  %v13_v3 = vmax.f32 %v8_v0, %v56_v1  ;;  %v60_v4 = vld [vmem:[%s142_s0 + $0x30] sm:$0xff]  ;;  %v57_v7 = vld [vmem:[%s142_s0 + $0x18] sm:$0xff] }
   0x3   :  { %v59_v8 = vld [vmem:[%s142_s0 + $0x28] sm:$0xff]  ;;  %v62_v9 = vld [vmem:[%s142_s0 + $0x40] sm:$0xff]  ;;  %v14_v10 = vmax.f32 %v9_v6, %v57_v7  ;;  %v61_v12 = vld [vmem:[%s142_s0 + $0x38] sm:$0xff] }
   0x4   :  { %v18_v5 = vmax.f32 %v13_v3, %v58_v2  ;;  %v64_v13 = vld [vmem:[%s142_s0 + $0x50] sm:$0xff]  ;;  %v63_v16 = vld [vmem:[%s142_s0 + $0x48] sm:$0xff]  ;;  %v66_v17 = vld [vmem:[%s142_s0 + $0x60] sm:$0xff] }
   0x5   :  { %v19_v14 = vmax.f32 %v14_v10, %v59_v8  ;;  %v65_v20 = vld [vmem:[%s142_s0 + $0x58] sm:$0xff]  ;;  %v68_v21 = vld [vmem:[%s142_s0 + $0x70] sm:$0xff]  ;;  %v67_v24 = vld [vmem:[%s142_s0 + $0x68] sm:$0xff] }
   0x6   :  { %v23_v11 = vmax.f32 %v18_v5, %v60_v4  ;;  %v70_v25 = vld [vmem:[%s142_s0 + $0x80] sm:$0xff]  ;;  %v69_v28 = vld [vmem:[%s142_s0 + $0x78] sm:$0xff]  ;;  %v71_v31 = vld [vmem:[%s142_s0 + $0x88] sm:$0xff] }
   0x7   :  { %v24_v18 = vmax.f32 %v19_v14, %v61_v12 }
   0x8   :  { %v28_v15 = vmax.f32 %v23_v11, %v62_v9 }
   0x9   :  { %v29_v22 = vmax.f32 %v24_v18, %v63_v16 }
   0xa   :  { %v33_v19 = vmax.f32 %v28_v15, %v64_v13 }
   0xb   :  { %v34_v26 = vmax.f32 %v29_v22, %v65_v20 }
   0xc   :  { %v38_v23 = vmax.f32 %v33_v19, %v66_v17 }
   0xd   :  { %v39_v29 = vmax.f32 %v34_v26, %v67_v24 }
   0xe   :  { %v43_v27 = vmax.f32 %v38_v23, %v68_v21 }
   0xf   :  { %v44_v32 = vmax.f32 %v39_v29, %v69_v28 }
  0x10   :  { %v48_v30 = vmax.f32 %v43_v27, %v70_v25 }
  0x11   :  { %v49_v33 = vmax.f32 %v44_v32, %v71_v31 }
  0x12   :  { %50 = vst [vmem:[%s143_s1] sm:$0xff] %v48_v30 }
  0x13   :  { %51 = vst [vmem:[%s143_s1 + $0x8] sm:$0xff] %v49_v33 }

// kernel: forward.26
= control target key start
LH: loop header
LB: loop body
LE: loop exit
PB: predicated region body
PF: predicated region fallthrough
CT: control target
= control target key end

     0   :  { %v479_v0 = vmov 0.0   ;;  %v60_v6 = vlaneseq  ;;  %vm212_vm0 = vcmask 130048   ;;  %s912_s4 = inlined_call_operand.vmem [shape: f32[1,16], index: 4, kind: input, shape index: {}]   ;;  %s913_s5 = inlined_call_operand.vmem [shape: f32[1,16], index: 5, kind: input, shape index: {}]   ;;  %s914_s1 = inlined_call_operand.vmem [shape: f32[144,16], index: 1, kind: input, shape index: {}]   ;;  %s915_s2 = inlined_call_operand.vmem [shape: f32[1,144], index: 2, kind: input, shape index: {}]   ;;  %s916_s0 = inlined_call_operand.vmem [shape: f32[128,144], index: 0, kind: input, shape index: {}]   ;;  %s917_s3 = inlined_call_operand.vmem [shape: f32[1,144], index: 3, kind: input, shape index: {}]   ;;  %s918_s6 = inlined_call_operand.vmem [shape: f32[128,16], index: 6, kind: input, shape index: {}]   ;;  %s919_s7 = inlined_call_operand.vmem [shape: f32[128,16], index: 7, kind: output, shape index: {}]  }
   0x1   :  { %261 = vmatprep.subr.mxu0 %v479_v0  ;;  %442 = vmatprep.subr.mxu1 %v479_v0  ;;  %v193_v1 = vld [vmem:[%s914_s1 + $0x78] sm:$0xff]  ;;  %v192_v2 = vld [vmem:[%s914_s1 + $0x70] sm:$0xff]  ;;  %v191_v3 = vld [vmem:[%s914_s1 + $0x68] sm:$0xff] }
   0x2   :  { %262 = vmatpush1.msra.mxu0 %v193_v1  ;;  %460 = vmatpush1.msra.mxu1 %v193_v1  ;;  %v190_v4 = vld [vmem:[%s914_s1 + $0x60] sm:$0xff]  ;;  %v189_v5 = vld [vmem:[%s914_s1 + $0x58] sm:$0xff]  ;;  %v188_v7 = vld [vmem:[%s914_s1 + $0x50] sm:$0xff]  ;;  %v61_v9 = vshrl.u32 %v60_v6, 7 }
   0x3   :  { %263 = vmatprep.subr.mxu0 %v479_v0  ;;  %443 = vmatprep.subr.mxu1 %v479_v0  ;;  %v187_v8 = vld [vmem:[%s914_s1 + $0x48] sm:$0xff]  ;;  %v186_v10 = vld [vmem:[%s914_s1 + $0x40] sm:$0xff]  ;;  %v185_v11 = vld [vmem:[%s914_s1 + $0x38] sm:$0xff] }
   0x4   :  { %264 = vmatpush1.msra.mxu0 %v192_v2  ;;  %461 = vmatpush1.msra.mxu1 %v192_v2  ;;  %v66_v12 = vsub.s32 1, %v61_v9  ;;  %v184_v13 = vld [vmem:[%s914_s1 + $0x30] sm:$0xff]  ;;  %v58_v14 = vld [vmem:[%s915_s2] sm:$0x3]  ;;  %v62_v15 = vsub.s32 0, %v61_v9  ;;  %v183_v16 = vld [vmem:[%s914_s1 + $0x28] sm:$0xff] }
   0x5   :  { %265 = vmatprep.subr.mxu0 %v479_v0  ;;  %444 = vmatprep.subr.mxu1 %v479_v0  ;;  %v182_v17 = vld [vmem:[%s914_s1 + $0x20] sm:$0xff]  ;;  %v27_v19 = vld [vmem:[%s916_s0 + $0x8] sm:$0xff]  ;;  %v181_v24 = vld [vmem:[%s914_s1 + $0x18] sm:$0xff] }
   0x6   :  { %266 = vmatpush1.msra.mxu0 %v191_v3  ;;  %462 = vmatpush1.msra.mxu1 %v191_v3  ;;  %v579_v18 = vrot.slane %v58_v14, %v66_v12  ;;  %v586_v20 = vrot.slane %v58_v14, %v62_v15  ;;  %v102_v21 = vld [vmem:[%s917_s3] sm:$0x3]  ;;  %v43_v22 = vld [vmem:[%s916_s0 + $0x88] sm:$0xff]  ;;  %v29_v29 = vld [vmem:[%s916_s0 + $0x18] sm:$0xff] }
   0x7   :  { %267 = vmatprep.subr.mxu0 %v479_v0  ;;  %445 = vmatprep.subr.mxu1 %v479_v0  ;;  %v26_v23 = vld [vmem:[%s916_s0] sm:$0xff]  ;;  %v606_v27 = vrot.slane %v102_v21, %v66_v12  ;;  %v45_v30 = vld [vmem:[%s916_s0 + $0x98] sm:$0xff]  ;;  %v180_v31 = vld [vmem:[%s914_s1 + $0x10] sm:$0xff]  ;;  %v620_v32 = vrot.slane %v102_v21, %v62_v15 }
   0x8   :  { %268 = vmatpush1.msra.mxu0 %v190_v4  ;;  %463 = vmatpush1.msra.mxu1 %v190_v4  ;;  %v42_v25 = vld [vmem:[%s916_s0 + $0x80] sm:$0xff]  ;;  %v71_v26 = vmul.f32 %v579_v18, %v27_v19  ;;  %v87_v28 = vmul.f32 %v579_v18, %v43_v22  ;;  %v70_v33 = vmul.f32 %v586_v20, %v26_v23  ;;  %v28_v35 = vld [vmem:[%s916_s0 + $0x10] sm:$0xff]  ;;  %v179_v37 = vld [vmem:[%s914_s1 + $0x8] sm:$0xff] }
   0x9   :  { %269 = vmatprep.subr.mxu0 %v479_v0  ;;  %446 = vmatprep.subr.mxu1 %v479_v0  ;;  %v86_v34 = vmul.f32 %v586_v20, %v42_v25  ;;  %v44_v36 = vld [vmem:[%s916_s0 + $0x90] sm:$0xff]  ;;  %v73_v38 = vmul.f32 %v579_v18, %v29_v29  ;;  %v89_v39 = vmul.f32 %v579_v18, %v45_v30  ;;  %v31_v40 = vld [vmem:[%s916_s0 + $0x28] sm:$0xff]  ;;  %v178_v44 = vld [vmem:[%s914_s1] sm:$0xff] }
   0xa   :  { %270 = vmatpush1.msra.mxu0 %v189_v5  ;;  %464 = vmatpush1.msra.mxu1 %v189_v5  ;;  %v115_v41 = vadd.f32 %v606_v27, %v71_v26  ;;  %v131_v42 = vadd.f32 %v606_v27, %v87_v28  ;;  %v47_v43 = vld [vmem:[%s916_s0 + $0xa8] sm:$0xff]  ;;  %v114_v45 = vadd.f32 %v620_v32, %v70_v33  ;;  %v30_v50 = vld [vmem:[%s916_s0 + $0x20] sm:$0xff]  ;;  %v33_v56 = vld [vmem:[%s916_s0 + $0x38] sm:$0xff] }
   0xb   :  { %271 = vmatprep.subr.mxu0 %v479_v0  ;;  %447 = vmatprep.subr.mxu1 %v479_v0  ;;  %v72_v46 = vmul.f32 %v586_v20, %v28_v35  ;;  %v88_v47 = vmul.f32 %v586_v20, %v44_v36  ;;  %v130_v48 = vadd.f32 %v620_v32, %v86_v34  ;;  %v195_v51 = vld [vmem:[%s914_s1 + $0x88] sm:$0xff]  ;;  %v46_v55 = vld [vmem:[%s916_s0 + $0xa0] sm:$0xff]  ;;  %v49_v59 = vld [vmem:[%s916_s0 + $0xb8] sm:$0xff] }
   0xc   :  { %272 = vmatpush1.msra.mxu0 %v188_v7  ;;  %465 = vmatpush1.msra.mxu1 %v188_v7  ;;  %v75_v49 = vmul.f32 %v579_v18, %v31_v40  ;;  %v117_v52 = vadd.f32 %v606_v27, %v73_v38  ;;  %v133_v53 = vadd.f32 %v606_v27, %v89_v39  ;;  %v147_v57 = vmax.f32 %v115_v41, 0.0  ;;  %v194_v60 = vld [vmem:[%s914_s1 + $0x80] sm:$0xff]  ;;  %v32_v6 = vld [vmem:[%s916_s0 + $0x30] sm:$0xff]  ;;  %v35_v12 = vld [vmem:[%s916_s0 + $0x48] sm:$0xff] }
   0xd   :  { %273 = vmatprep.subr.mxu0 %v479_v0  ;;  %448 = vmatprep.subr.mxu1 %v479_v0  ;;  %v91_v54 = vmul.f32 %v579_v18, %v47_v43  ;;  %v163_v58 = vmax.f32 %v131_v42, 0.0  ;;  %v146_v61 = vmax.f32 %v114_v45, 0.0  ;;  %v116_v62 = vadd.f32 %v620_v32, %v72_v46  ;;  %v34_v23 = vld [vmem:[%s916_s0 + $0x40] sm:$0xff]  ;;  %v37_v30 = vld [vmem:[%s916_s0 + $0x58] sm:$0xff]  ;;  %v36_v41 = vld [vmem:[%s916_s0 + $0x50] sm:$0xff] }
   0xe   :  { %274 = vmatpush1.msra.mxu0 %v187_v8  ;;  %466 = vmatpush1.msra.mxu1 %v187_v8  ;;  %v132_v63 = vadd.f32 %v620_v32, %v88_v47  ;;  %v74_v1 = vmul.f32 %v586_v20, %v30_v50  ;;  %v162_v2 = vmax.f32 %v130_v48, 0.0  ;;  %v119_v3 = vadd.f32 %v606_v27, %v75_v49  ;;  %v52_v46 = vld [vmem:[%s916_s0 + $0xd0] sm:$0xff]  ;;  %v39_v47 = vld [vmem:[%s916_s0 + $0x68] sm:$0xff] }
   0xf   :  { %275 = vmatprep.subr.mxu0 %v479_v0  ;;  %449 = vmatprep.subr.mxu1 %v479_v0  ;;  %v90_v4 = vmul.f32 %v586_v20, %v46_v55  ;;  %v77_v5 = vmul.f32 %v579_v18, %v33_v56  ;;  %v149_v7 = vmax.f32 %v117_v52, 0.0  ;;  %v165_v8 = vmax.f32 %v133_v53, 0.0  ;;  %v55_v48 = vld [vmem:[%s916_s0 + $0xe8] sm:$0xff] }
  0x10   :  { %276 = vmatpush1.msra.mxu0 %v186_v10  ;;  %467 = vmatpush1.msra.mxu1 %v186_v10  ;;  %v135_v9 = vadd.f32 %v606_v27, %v91_v54  ;;  %v93_v10 = vmul.f32 %v579_v18, %v49_v59  ;;  %v164_v14 = vmax.f32 %v132_v63, 0.0  ;;  %v118_v15 = vadd.f32 %v620_v32, %v74_v1  ;;  %v41_v63 = vld [vmem:[%s916_s0 + $0x78] sm:$0xff] }
  0x11   :  { %277 = vmatprep.subr.mxu0 %v479_v0  ;;  %450 = vmatprep.subr.mxu1 %v479_v0  ;;  %v134_v19 = vadd.f32 %v620_v32, %v90_v4  ;;  %v121_v21 = vadd.f32 %v606_v27, %v77_v5  ;;  %v79_v28 = vmul.f32 %v579_v18, %v35_v12  ;;  %v57_v1 = vld [vmem:[%s916_s0 + $0xf8] sm:$0xff] }
  0x12   :  { %278 = vmatpush1.msra.mxu0 %v185_v11  ;;  %468 = vmatpush1.msra.mxu1 %v185_v11  ;;  %v48_v11 = vld [vmem:[%s916_s0 + $0xb0] sm:$0xff]  ;;  %v167_v25 = vmax.f32 %v135_v9, 0.0  ;;  %v137_v26 = vadd.f32 %v606_v27, %v93_v10  ;;  %v150_v33 = vmax.f32 %v118_v15, 0.0  ;;  %v78_v35 = vmul.f32 %v586_v20, %v34_v23 }
  0x13   :  { %279 = vmatprep.subr.mxu0 %v479_v0  ;;  %451 = vmatprep.subr.mxu1 %v479_v0  ;;  %v92_v22 = vmul.f32 %v586_v20, %v48_v11  ;;  %v153_v38 = vmax.f32 %v121_v21, 0.0  ;;  %v81_v40 = vmul.f32 %v579_v18, %v37_v30  ;;  %v123_v43 = vadd.f32 %v606_v27, %v79_v28 }
  0x14   :  { %280 = vmatpush1.msra.mxu0 %v184_v13  ;;  %469 = vmatpush1.msra.mxu1 %v184_v13  ;;  %v148_v13 = vmax.f32 %v116_v62, 0.0  ;;  %v169_v42 = vmax.f32 %v137_v26, 0.0  ;;  %v122_v50 = vadd.f32 %v620_v32, %v78_v35  ;;  %v80_v52 = vmul.f32 %v586_v20, %v36_v41  ;;  %v54_v62 = vld [vmem:[%s916_s0 + $0xe0] sm:$0xff]  ;;  %v197_v41 = vld [vmem:[%s918_s6 + $0x8] sm:$0xff] }
  0x15   :  { %281 = vmatprep.subr.mxu0 %v479_v0  ;;  %452 = vmatprep.subr.mxu1 %v479_v0  ;;  %v136_v39 = vadd.f32 %v620_v32, %v92_v22  ;;  %v125_v54 = vadd.f32 %v606_v27, %v81_v40  ;;  %v96_v55 = vmul.f32 %v586_v20, %v52_v46 }
  0x16   :  { %282 = vmatpush1.msra.mxu0 %v183_v16  ;;  %470 = vmatpush1.msra.mxu1 %v183_v16  ;;  %v76_v16 = vmul.f32 %v586_v20, %v32_v6  ;;  %v83_v56 = vmul.f32 %v579_v18, %v39_v47  ;;  %v124_v4 = vadd.f32 %v620_v32, %v80_v52 }
  0x17   :  { %283 = vmatprep.subr.mxu0 %v479_v0  ;;  %453 = vmatprep.subr.mxu1 %v479_v0  ;;  %v168_v53 = vmax.f32 %v136_v39, 0.0  ;;  %v157_v6 = vmax.f32 %v125_v54, 0.0  ;;  %v98_v9 = vmul.f32 %v586_v20, %v54_v62  ;;  %v85_v12 = vmul.f32 %v579_v18, %v41_v63 }
  0x18   :  { %284 = vmatpush1.msra.mxu0 %v182_v17  ;;  %471 = vmatpush1.msra.mxu1 %v182_v17  ;;  %v151_v17 = vmax.f32 %v119_v3, 0.0  ;;  %v120_v34 = vadd.f32 %v620_v32, %v76_v16  ;;  %v156_v15 = vmax.f32 %v124_v4, 0.0 }
  0x19   :  { %285 = vmatprep.subr.mxu0 %v479_v0  ;;  %454 = vmatprep.subr.mxu1 %v479_v0 }
  0x1a   :  { %286 = vmatpush1.msra.mxu0 %v181_v24  ;;  %472 = vmatpush1.msra.mxu1 %v181_v24  ;;  %v50_v24 = vld [vmem:[%s916_s0 + $0xc0] sm:$0xff]  ;;  %v152_v49 = vmax.f32 %v120_v34, 0.0 }
  0x1b   :  { %287 = vmatprep.subr.mxu0 %v479_v0  ;;  %455 = vmatprep.subr.mxu1 %v479_v0  ;;  %v94_v36 = vmul.f32 %v586_v20, %v50_v24  ;;  %v129_v24 = vadd.f32 %v606_v27, %v85_v12 }
  0x1c   :  { %288 = vmatpush1.msra.mxu0 %v180_v31  ;;  %473 = vmatpush1.msra.mxu1 %v180_v31  ;;  %v53_v31 = vld [vmem:[%s916_s0 + $0xd8] sm:$0xff] }
  0x1d   :  { %289 = vmatprep.subr.mxu0 %v479_v0  ;;  %456 = vmatprep.subr.mxu1 %v479_v0  ;;  %v97_v45 = vmul.f32 %v579_v18, %v53_v31 }
  0x1e   :  { %290 = vmatpush1.msra.mxu0 %v179_v37  ;;  %474 = vmatpush1.msra.mxu1 %v179_v37  ;;  %v166_v37 = vmax.f32 %v134_v19, 0.0  ;;  %v142_v19 = vadd.f32 %v620_v32, %v98_v9 }
  0x1f   :  { %291 = vmatprep.subr.mxu0 %v479_v0  ;;  %457 = vmatprep.subr.mxu1 %v479_v0 }
  0x20   :  { %292 = vmatpush1.msra.mxu0 %v178_v44  ;;  %475 = vmatpush1.msra.mxu1 %v178_v44  ;;  %v174_v28 = vmax.f32 %v142_v19, 0.0  ;;  %v210_v19 = vld [vmem:[%s918_s6 + $0x70] sm:$0xff] }
  0x21   :  { %321 = vmatprep.subr.mxu0 %v479_v0  ;;  %458 = vmatprep.subr.mxu1 %v479_v0 }
  0x22   :  { %322 = vmatpush2.msra.mxu0 %v195_v51  ;;  %476 = vmatpush2.msra.mxu1 %v195_v51  ;;  %v138_v51 = vadd.f32 %v620_v32, %v94_v36 }
  0x23   :  { %323 = vmatprep.subr.mxu0 %v479_v0  ;;  %459 = vmatprep.subr.mxu1 %v479_v0  ;;  %v51_v0 = vld [vmem:[%s916_s0 + $0xc8] sm:$0xff] }
  0x24   :  { %324 = vmatpush2.msra.mxu0 %v194_v60  ;;  %477 = vmatpush2.msra.mxu1 %v194_v60  ;;  %v95_v29 = vmul.f32 %v579_v18, %v51_v0  ;;  %v141_v60 = vadd.f32 %v606_v27, %v97_v45  ;;  %v170_v3 = vmax.f32 %v138_v51, 0.0  ;;  %v101_v0 = vmul.f32 %v579_v18, %v57_v1 }
  0x25   :  { %426 = vmatprep.mubr.msk.f32.mxu0 %vm212_vm0, %v147_v57  ;;  %434 = vmatprep.mubr.msk.f32.mxu1 %vm212_vm0, %v163_v58  ;;  %v38_v57 = vld [vmem:[%s916_s0 + $0x60] sm:$0xff]  ;;  %v155_v58 = vmax.f32 %v123_v43, 0.0 }
  0x26   :  { %326 = vmatmul.mubr.f32.vlgmr.msra.gmra.mxu0 %v146_v61  ;;  %366 = vmatmul.mubr.f32.vlgmr.msra.gmra.mxu1 %v162_v2  ;;  %v139_v44 = vadd.f32 %v606_v27, %v95_v29  ;;  %v99_v61 = vmul.f32 %v579_v18, %v55_v48  ;;  %v154_v2 = vmax.f32 %v122_v50, 0.0  ;;  %v82_v5 = vmul.f32 %v586_v20, %v38_v57  ;;  %v206_v50 = vld [vmem:[%s918_s6 + $0x50] sm:$0xff]  ;;  %v199_v57 = vld [vmem:[%s918_s6 + $0x18] sm:$0xff] }
  0x27   :  { %427 = vmatprep.mubr.msk.f32.mxu0 %vm212_vm0, %v149_v7  ;;  %435 = vmatprep.mubr.msk.f32.mxu1 %vm212_vm0, %v165_v8  ;;  %v140_v7 = vadd.f32 %v620_v32, %v96_v55  ;;  %v127_v8 = vadd.f32 %v606_v27, %v83_v56  ;;  %v173_v10 = vmax.f32 %v141_v60, 0.0 }
  0x28   :  { %v171_v59 = vmax.f32 %v139_v44, 0.0  ;;  %v143_v11 = vadd.f32 %v606_v27, %v99_v61  ;;  %v126_v16 = vadd.f32 %v620_v32, %v82_v5 }
  0x29   :  { %v159_v22 = vmax.f32 %v127_v8, 0.0 }
  0x2a   :  { %331 = vmatmul.mubr.f32.gmra.mxu0 %v148_v13  ;;  %371 = vmatmul.mubr.f32.gmra.mxu1 %v164_v14  ;;  %v40_v13 = vld [vmem:[%s916_s0 + $0x70] sm:$0xff]  ;;  %v175_v23 = vmax.f32 %v143_v11, 0.0  ;;  %v158_v26 = vmax.f32 %v126_v16, 0.0  ;;  %v209_v11 = vld [vmem:[%s918_s6 + $0x68] sm:$0xff] }
  0x2b   :  { %428 = vmatprep.mubr.msk.f32.mxu0 %vm212_vm0, %v151_v17  ;;  %436 = vmatprep.mubr.msk.f32.mxu1 %vm212_vm0, %v167_v25  ;;  %v56_v14 = vld [vmem:[%s916_s0 + $0xf0] sm:$0xff]  ;;  %v172_v17 = vmax.f32 %v140_v7, 0.0  ;;  %v84_v21 = vmul.f32 %v586_v20, %v40_v13  ;;  %v145_v25 = vadd.f32 %v606_v27, %v101_v0  ;;  %v196_v27 = vld [vmem:[%s918_s6] sm:$0xff] }
  0x2c   :  { %v100_v18 = vmul.f32 %v586_v20, %v56_v14  ;;  %v161_v20 = vmax.f32 %v129_v24, 0.0 }
  0x2d   :  { %v128_v29 = vadd.f32 %v620_v32, %v84_v21  ;;  %v177_v31 = vmax.f32 %v145_v25, 0.0 }
  0x2e   :  { %336 = vmatmul.mubr.f32.gmra.mxu0 %v150_v33  ;;  %376 = vmatmul.mubr.f32.gmra.mxu1 %v166_v37  ;;  %v144_v30 = vadd.f32 %v620_v32, %v100_v18  ;;  %v204_v32 = vld [vmem:[%s918_s6 + $0x40] sm:$0xff] }
  0x2f   :  { %429 = vmatprep.mubr.msk.f32.mxu0 %vm212_vm0, %v153_v38  ;;  %437 = vmatprep.mubr.msk.f32.mxu1 %vm212_vm0, %v169_v42  ;;  %v160_v33 = vmax.f32 %v128_v29, 0.0  ;;  %v205_v42 = vld [vmem:[%s918_s6 + $0x48] sm:$0xff] }
  0x30   :  { %v176_v34 = vmax.f32 %v144_v30, 0.0 }
  0x32   :  { %341 = vmatmul.mubr.f32.gmra.mxu0 %v152_v49  ;;  %381 = vmatmul.mubr.f32.gmra.mxu1 %v168_v53  ;;  %v198_v49 = vld [vmem:[%s918_s6 + $0x10] sm:$0xff] }
  0x33   :  { %430 = vmatprep.mubr.msk.f32.mxu0 %vm212_vm0, %v155_v58  ;;  %438 = vmatprep.mubr.msk.f32.mxu1 %vm212_vm0, %v171_v59  ;;  %v207_v58 = vld [vmem:[%s918_s6 + $0x58] sm:$0xff] }
  0x36   :  { %346 = vmatmul.mubr.f32.gmra.mxu0 %v154_v2  ;;  %386 = vmatmul.mubr.f32.gmra.mxu1 %v170_v3  ;;  %v200_v2 = vld [vmem:[%s918_s6 + $0x20] sm:$0xff] }
  0x37   :  { %431 = vmatprep.mubr.msk.f32.mxu0 %vm212_vm0, %v157_v6  ;;  %439 = vmatprep.mubr.msk.f32.mxu1 %vm212_vm0, %v173_v10  ;;  %v208_v3 = vld [vmem:[%s918_s6 + $0x60] sm:$0xff]  ;;  %v201_v10 = vld [vmem:[%s918_s6 + $0x28] sm:$0xff] }
  0x3a   :  { %351 = vmatmul.mubr.f32.gmra.mxu0 %v156_v15  ;;  %391 = vmatmul.mubr.f32.gmra.mxu1 %v172_v17  ;;  %v202_v17 = vld [vmem:[%s918_s6 + $0x30] sm:$0xff] }
  0x3b   :  { %432 = vmatprep.mubr.msk.f32.mxu0 %vm212_vm0, %v159_v22  ;;  %440 = vmatprep.mubr.msk.f32.mxu1 %vm212_vm0, %v175_v23 }
  0x3e   :  { %356 = vmatmul.mubr.f32.gmra.mxu0 %v158_v26  ;;  %396 = vmatmul.mubr.f32.gmra.mxu1 %v174_v28  ;;  %v203_v26 = vld [vmem:[%s918_s6 + $0x38] sm:$0xff] }
  0x3f   :  { %433 = vmatprep.mubr.msk.f32.mxu0 %vm212_vm0, %v161_v20  ;;  %441 = vmatprep.mubr.msk.f32.mxu1 %vm212_vm0, %v177_v31  ;;  %v211_v28 = vld [vmem:[%s918_s6 + $0x78] sm:$0xff] }
  0x42   :  { %361 = vmatmul.mubr.f32.gmra.mxu0 %v160_v33  ;;  %401 = vmatmul.mubr.f32.gmra.mxu1 %v176_v34 }
  0xe6   :  { %v327_v35 = vpop.f32.mrf.mxu0  ;;  %v367_v36 = vpop.f32.mrf.mxu1 }
  0xe7   :  { %v328_v37 = vadd.f32 %v327_v35, %v196_v27  ;;  %v368_v38 = vadd.f32 %v367_v36, %v204_v32 }
  0xe8   :  { %v329_v39 = vpop.f32.mrf.mxu0  ;;  %v369_v40 = vpop.f32.mrf.mxu1 }
  0xe9   :  { %406 = vst.msk [vmem:[%s919_s7] sm:$0xff] %vm212_vm0, %v328_v37  ;;  %414 = vst.msk [vmem:[%s919_s7 + $0x40] sm:$0xff] %vm212_vm0, %v368_v38 }
  0xea   :  { %v332_v43 = vpop.f32.mrf.mxu0  ;;  %v372_v44 = vpop.f32.mrf.mxu1 }
  0xeb   :  { %v333_v45 = vadd.f32 %v332_v43, %v197_v41  ;;  %v373_v46 = vadd.f32 %v372_v44, %v205_v42 }
  0xec   :  { %v334_v47 = vpop.f32.mrf.mxu0  ;;  %v374_v48 = vpop.f32.mrf.mxu1 }
  0xed   :  { %407 = vst.msk [vmem:[%s919_s7 + $0x8] sm:$0xff] %vm212_vm0, %v333_v45  ;;  %415 = vst.msk [vmem:[%s919_s7 + $0x48] sm:$0xff] %vm212_vm0, %v373_v46 }
  0xee   :  { %v337_v51 = vpop.f32.mrf.mxu0  ;;  %v377_v52 = vpop.f32.mrf.mxu1 }
  0xef   :  { %v338_v53 = vadd.f32 %v337_v51, %v198_v49  ;;  %v378_v54 = vadd.f32 %v377_v52, %v206_v50 }
  0xf0   :  { %v339_v55 = vpop.f32.mrf.mxu0  ;;  %v379_v56 = vpop.f32.mrf.mxu1 }
  0xf1   :  { %408 = vst.msk [vmem:[%s919_s7 + $0x10] sm:$0xff] %vm212_vm0, %v338_v53  ;;  %416 = vst.msk [vmem:[%s919_s7 + $0x50] sm:$0xff] %vm212_vm0, %v378_v54 }
  0xf2   :  { %v342_v59 = vpop.f32.mrf.mxu0  ;;  %v382_v60 = vpop.f32.mrf.mxu1 }
  0xf3   :  { %v343_v61 = vadd.f32 %v342_v59, %v199_v57  ;;  %v383_v62 = vadd.f32 %v382_v60, %v207_v58 }
  0xf4   :  { %v344_v63 = vpop.f32.mrf.mxu0  ;;  %v384_v1 = vpop.f32.mrf.mxu1 }
  0xf5   :  { %409 = vst.msk [vmem:[%s919_s7 + $0x18] sm:$0xff] %vm212_vm0, %v343_v61  ;;  %417 = vst.msk [vmem:[%s919_s7 + $0x58] sm:$0xff] %vm212_vm0, %v383_v62 }
  0xf6   :  { %v347_v4 = vpop.f32.mrf.mxu0  ;;  %v387_v5 = vpop.f32.mrf.mxu1 }
  0xf7   :  { %v348_v6 = vadd.f32 %v347_v4, %v200_v2  ;;  %v388_v7 = vadd.f32 %v387_v5, %v208_v3 }
  0xf8   :  { %v349_v8 = vpop.f32.mrf.mxu0  ;;  %v389_v9 = vpop.f32.mrf.mxu1 }
  0xf9   :  { %410 = vst.msk [vmem:[%s919_s7 + $0x20] sm:$0xff] %vm212_vm0, %v348_v6  ;;  %418 = vst.msk [vmem:[%s919_s7 + $0x60] sm:$0xff] %vm212_vm0, %v388_v7 }
  0xfa   :  { %v352_v12 = vpop.f32.mrf.mxu0  ;;  %v392_v0 = vpop.f32.mrf.mxu1 }
  0xfb   :  { %v353_v13 = vadd.f32 %v352_v12, %v201_v10  ;;  %v393_v14 = vadd.f32 %v392_v0, %v209_v11 }
  0xfc   :  { %v354_v15 = vpop.f32.mrf.mxu0  ;;  %v394_v16 = vpop.f32.mrf.mxu1 }
  0xfd   :  { %411 = vst.msk [vmem:[%s919_s7 + $0x28] sm:$0xff] %vm212_vm0, %v353_v13  ;;  %419 = vst.msk [vmem:[%s919_s7 + $0x68] sm:$0xff] %vm212_vm0, %v393_v14 }
  0xfe   :  { %v357_v21 = vpop.f32.mrf.mxu0  ;;  %v397_v18 = vpop.f32.mrf.mxu1 }
  0xff   :  { %v358_v22 = vadd.f32 %v357_v21, %v202_v17  ;;  %v398_v23 = vadd.f32 %v397_v18, %v210_v19 }
 0x100   :  { %v359_v24 = vpop.f32.mrf.mxu0  ;;  %v399_v25 = vpop.f32.mrf.mxu1 }
 0x101   :  { %412 = vst.msk [vmem:[%s919_s7 + $0x30] sm:$0xff] %vm212_vm0, %v358_v22  ;;  %420 = vst.msk [vmem:[%s919_s7 + $0x70] sm:$0xff] %vm212_vm0, %v398_v23 }
 0x102   :  { %v362_v29 = vpop.f32.mrf.mxu0  ;;  %v402_v30 = vpop.f32.mrf.mxu1 }
 0x103   :  { %v363_v20 = vadd.f32 %v362_v29, %v203_v26  ;;  %v403_v31 = vadd.f32 %v402_v30, %v211_v28 }
 0x104   :  { %v364_v33 = vpop.f32.mrf.mxu0  ;;  %v404_v34 = vpop.f32.mrf.mxu1 }
 0x105   :  { %413 = vst.msk [vmem:[%s919_s7 + $0x38] sm:$0xff] %vm212_vm0, %v363_v20  ;;  %421 = vst.msk [vmem:[%s919_s7 + $0x78] sm:$0xff] %vm212_vm0, %v403_v31 }

// kernel: forward.28
= control target key start
LH: loop header
LB: loop body
LE: loop exit
PB: predicated region body
PF: predicated region fallthrough
CT: control target
= control target key end

     0   :  { %v204_v0 = vmov 0.0   ;;  %vm56_vm0 = vcmask 130048   ;;  %vm154_vm1 = vcmask 261120   ;;  %s387_s2 = inlined_call_operand.vmem [shape: f32[1,144], index: 2, kind: input, shape index: {}]   ;;  %s388_s3 = inlined_call_operand.vmem [shape: f32[1,144], index: 3, kind: input, shape index: {}]   ;;  %s389_s4 = inlined_call_operand.vmem [shape: f32[1,32], index: 4, kind: input, shape index: {}]   ;;  %s390_s5 = inlined_call_operand.vmem [shape: f32[1,32], index: 5, kind: input, shape index: {}]   ;;  %s391_s1 = inlined_call_operand.vmem [shape: f32[144,32], index: 1, kind: input, shape index: {}]   ;;  %s392_s0 = inlined_call_operand.vmem [shape: f32[32,144], index: 0, kind: input, shape index: {}]   ;;  %s393_s6 = inlined_call_operand.vmem [shape: f32[32,32], index: 6, kind: input, shape index: {}]   ;;  %s394_s7 = inlined_call_operand.vmem [shape: f32[32,32], index: 7, kind: output, shape index: {}]  }
   0x1   :  { %69 = vmatprep.subr.mxu0 %v204_v0  ;;  %167 = vmatprep.subr.mxu1 %v204_v0  ;;  %v49_v1 = vld [vmem:[%s391_s1 + $0x78] sm:$0xff]  ;;  %v48_v2 = vld [vmem:[%s391_s1 + $0x70] sm:$0xff]  ;;  %v47_v3 = vld [vmem:[%s391_s1 + $0x68] sm:$0xff] }
   0x2   :  { %70 = vmatpush1.msra.mxu0 %v49_v1  ;;  %185 = vmatpush1.msra.mxu1 %v49_v1  ;;  %v46_v4 = vld [vmem:[%s391_s1 + $0x60] sm:$0xff]  ;;  %v45_v5 = vld [vmem:[%s391_s1 + $0x58] sm:$0xff]  ;;  %v44_v6 = vld [vmem:[%s391_s1 + $0x50] sm:$0xff] }
   0x3   :  { %71 = vmatprep.subr.mxu0 %v204_v0  ;;  %168 = vmatprep.subr.mxu1 %v204_v0  ;;  %v43_v7 = vld [vmem:[%s391_s1 + $0x48] sm:$0xff]  ;;  %v42_v8 = vld [vmem:[%s391_s1 + $0x40] sm:$0xff]  ;;  %v41_v9 = vld [vmem:[%s391_s1 + $0x38] sm:$0xff] }
   0x4   :  { %72 = vmatpush1.msra.mxu0 %v48_v2  ;;  %186 = vmatpush1.msra.mxu1 %v48_v2  ;;  %v40_v10 = vld [vmem:[%s391_s1 + $0x30] sm:$0xff]  ;;  %v39_v11 = vld [vmem:[%s391_s1 + $0x28] sm:$0xff]  ;;  %v38_v12 = vld [vmem:[%s391_s1 + $0x20] sm:$0xff] }
   0x5   :  { %73 = vmatprep.subr.mxu0 %v204_v0  ;;  %169 = vmatprep.subr.mxu1 %v204_v0  ;;  %v37_v13 = vld [vmem:[%s391_s1 + $0x18] sm:$0xff]  ;;  %v36_v14 = vld [vmem:[%s391_s1 + $0x10] sm:$0xff]  ;;  %v35_v15 = vld [vmem:[%s391_s1 + $0x8] sm:$0xff] }
   0x6   :  { %74 = vmatpush1.msra.mxu0 %v47_v3  ;;  %187 = vmatpush1.msra.mxu1 %v47_v3  ;;  %v34_v16 = vld [vmem:[%s391_s1] sm:$0xff]  ;;  %v51_v17 = vld [vmem:[%s391_s1 + $0x88] sm:$0xff]  ;;  %v29_v23 = vld [vmem:[%s392_s0 + $0x18] sm:$0xff] }
   0x7   :  { %75 = vmatprep.subr.mxu0 %v204_v0  ;;  %170 = vmatprep.subr.mxu1 %v204_v0  ;;  %v50_v18 = vld [vmem:[%s391_s1 + $0x80] sm:$0xff]  ;;  %v27_v19 = vld [vmem:[%s392_s0 + $0x8] sm:$0xff]  ;;  %v33_v24 = vld [vmem:[%s392_s0 + $0x38] sm:$0xff] }
   0x8   :  { %76 = vmatpush1.msra.mxu0 %v46_v4  ;;  %188 = vmatpush1.msra.mxu1 %v46_v4  ;;  %v31_v20 = vld [vmem:[%s392_s0 + $0x28] sm:$0xff]  ;;  %v26_v21 = vld [vmem:[%s392_s0] sm:$0xff]  ;;  %v28_v25 = vld [vmem:[%s392_s0 + $0x10] sm:$0xff] }
   0x9   :  { %77 = vmatprep.subr.mxu0 %v204_v0  ;;  %171 = vmatprep.subr.mxu1 %v204_v0  ;;  %v30_v22 = vld [vmem:[%s392_s0 + $0x20] sm:$0xff]  ;;  %v32_v26 = vld [vmem:[%s392_s0 + $0x30] sm:$0xff]  ;;  %v53_v35 = vld [vmem:[%s393_s6 + $0x8] sm:$0xff] }
   0xa   :  { %78 = vmatpush1.msra.mxu0 %v45_v5  ;;  %189 = vmatpush1.msra.mxu1 %v45_v5  ;;  %v52_v27 = vld [vmem:[%s393_s6] sm:$0xff]  ;;  %v54_v28 = vld [vmem:[%s393_s6 + $0x10] sm:$0xff]  ;;  %v55_v36 = vld [vmem:[%s393_s6 + $0x18] sm:$0xff] }
   0xb   :  { %79 = vmatprep.subr.mxu0 %v204_v0  ;;  %172 = vmatprep.subr.mxu1 %v204_v0 }
   0xc   :  { %80 = vmatpush1.msra.mxu0 %v44_v6  ;;  %190 = vmatpush1.msra.mxu1 %v44_v6 }
   0xd   :  { %81 = vmatprep.subr.mxu0 %v204_v0  ;;  %173 = vmatprep.subr.mxu1 %v204_v0 }
   0xe   :  { %82 = vmatpush1.msra.mxu0 %v43_v7  ;;  %191 = vmatpush1.msra.mxu1 %v43_v7 }
   0xf   :  { %83 = vmatprep.subr.mxu0 %v204_v0  ;;  %174 = vmatprep.subr.mxu1 %v204_v0 }
  0x10   :  { %84 = vmatpush1.msra.mxu0 %v42_v8  ;;  %192 = vmatpush1.msra.mxu1 %v42_v8 }
  0x11   :  { %85 = vmatprep.subr.mxu0 %v204_v0  ;;  %175 = vmatprep.subr.mxu1 %v204_v0 }
  0x12   :  { %86 = vmatpush1.msra.mxu0 %v41_v9  ;;  %193 = vmatpush1.msra.mxu1 %v41_v9 }
  0x13   :  { %87 = vmatprep.subr.mxu0 %v204_v0  ;;  %176 = vmatprep.subr.mxu1 %v204_v0 }
  0x14   :  { %88 = vmatpush1.msra.mxu0 %v40_v10  ;;  %194 = vmatpush1.msra.mxu1 %v40_v10 }
  0x15   :  { %89 = vmatprep.subr.mxu0 %v204_v0  ;;  %177 = vmatprep.subr.mxu1 %v204_v0 }
  0x16   :  { %90 = vmatpush1.msra.mxu0 %v39_v11  ;;  %195 = vmatpush1.msra.mxu1 %v39_v11 }
  0x17   :  { %91 = vmatprep.subr.mxu0 %v204_v0  ;;  %178 = vmatprep.subr.mxu1 %v204_v0 }
  0x18   :  { %92 = vmatpush1.msra.mxu0 %v38_v12  ;;  %196 = vmatpush1.msra.mxu1 %v38_v12 }
  0x19   :  { %93 = vmatprep.subr.mxu0 %v204_v0  ;;  %179 = vmatprep.subr.mxu1 %v204_v0 }
  0x1a   :  { %94 = vmatpush1.msra.mxu0 %v37_v13  ;;  %197 = vmatpush1.msra.mxu1 %v37_v13 }
  0x1b   :  { %95 = vmatprep.subr.mxu0 %v204_v0  ;;  %180 = vmatprep.subr.mxu1 %v204_v0 }
  0x1c   :  { %96 = vmatpush1.msra.mxu0 %v36_v14  ;;  %198 = vmatpush1.msra.mxu1 %v36_v14 }
  0x1d   :  { %97 = vmatprep.subr.mxu0 %v204_v0  ;;  %181 = vmatprep.subr.mxu1 %v204_v0 }
  0x1e   :  { %98 = vmatpush1.msra.mxu0 %v35_v15  ;;  %199 = vmatpush1.msra.mxu1 %v35_v15 }
  0x1f   :  { %99 = vmatprep.subr.mxu0 %v204_v0  ;;  %182 = vmatprep.subr.mxu1 %v204_v0 }
  0x20   :  { %100 = vmatpush1.msra.mxu0 %v34_v16  ;;  %200 = vmatpush1.msra.mxu1 %v34_v16 }
  0x21   :  { %129 = vmatprep.subr.mxu0 %v204_v0  ;;  %183 = vmatprep.subr.mxu1 %v204_v0 }
  0x22   :  { %130 = vmatpush2.msra.mxu0 %v51_v17  ;;  %201 = vmatpush2.msra.mxu1 %v51_v17 }
  0x23   :  { %131 = vmatprep.subr.mxu0 %v204_v0  ;;  %184 = vmatprep.subr.mxu1 %v204_v0 }
  0x24   :  { %132 = vmatpush2.msra.mxu0 %v50_v18  ;;  %202 = vmatpush2.msra.mxu1 %v50_v18 }
  0x25   :  { %163 = vmatprep.mubr.msk.f32.mxu0 %vm56_vm0, %v27_v19  ;;  %165 = vmatprep.mubr.msk.f32.mxu1 %vm56_vm0, %v31_v20 }
  0x26   :  { %134 = vmatmul.mubr.f32.vlgmr.msra.gmra.mxu0 %v26_v21  ;;  %144 = vmatmul.mubr.f32.vlgmr.msra.gmra.mxu1 %v30_v22 }
  0x27   :  { %164 = vmatprep.mubr.msk.f32.mxu0 %vm56_vm0, %v29_v23  ;;  %166 = vmatprep.mubr.msk.f32.mxu1 %vm56_vm0, %v33_v24 }
  0x2a   :  { %139 = vmatmul.mubr.f32.gmra.mxu0 %v28_v25  ;;  %149 = vmatmul.mubr.f32.gmra.mxu1 %v32_v26 }
  0xe6   :  { %v135_v29 = vpop.f32.mrf.mxu0  ;;  %v145_v30 = vpop.f32.mrf.mxu1 }
  0xe7   :  { %v136_v31 = vadd.f32 %v135_v29, %v52_v27  ;;  %v146_v32 = vadd.f32 %v145_v30, %v54_v28 }
  0xe8   :  { %v137_v33 = vpop.f32.mrf.mxu0  ;;  %v147_v34 = vpop.f32.mrf.mxu1 }
  0xe9   :  { %155 = vst.msk [vmem:[%s394_s7] sm:$0xff] %vm154_vm1, %v136_v31  ;;  %157 = vst.msk [vmem:[%s394_s7 + $0x10] sm:$0xff] %vm154_vm1, %v146_v32 }
  0xea   :  { %v140_v37 = vpop.f32.mrf.mxu0  ;;  %v150_v38 = vpop.f32.mrf.mxu1 }
  0xeb   :  { %v141_v39 = vadd.f32 %v140_v37, %v53_v35  ;;  %v151_v40 = vadd.f32 %v150_v38, %v55_v36 }
  0xec   :  { %v142_v41 = vpop.f32.mrf.mxu0  ;;  %v152_v42 = vpop.f32.mrf.mxu1 }
  0xed   :  { %156 = vst.msk [vmem:[%s394_s7 + $0x8] sm:$0xff] %vm154_vm1, %v141_v39  ;;  %158 = vst.msk [vmem:[%s394_s7 + $0x18] sm:$0xff] %vm154_vm1, %v151_v40 }

// kernel: forward.27
= control target key start
LH: loop header
LB: loop body
LE: loop exit
PB: predicated region body
PF: predicated region fallthrough
CT: control target
= control target key end

     0   :  { %vm55_vm0 = vcmask 130048   ;;  %vm153_vm1 = vcmask 261120   ;;  %s259_s1 = inlined_call_operand.vmem [shape: f32[16,32], index: 1, kind: input, shape index: {}]   ;;  %s260_s4 = inlined_call_operand.vmem [shape: f32[1,32], index: 4, kind: input, shape index: {}]   ;;  %s261_s5 = inlined_call_operand.vmem [shape: f32[1,32], index: 5, kind: input, shape index: {}]   ;;  %s262_s0 = inlined_call_operand.vmem [shape: f32[32,16], index: 0, kind: input, shape index: {}]   ;;  %s263_s2 = inlined_call_operand.vmem [shape: f32[1,16], index: 2, kind: input, shape index: {}]   ;;  %s264_s3 = inlined_call_operand.vmem [shape: f32[1,16], index: 3, kind: input, shape index: {}]   ;;  %s265_s6 = inlined_call_operand.vmem [shape: f32[32,32], index: 6, kind: output, shape index: {}]  }
   0x1   :  { %v54_v0 = vld [vmem:[%s259_s1 + $0x8] sm:$0xff]  ;;  %v53_v1 = vld [vmem:[%s259_s1] sm:$0xff]  ;;  %v25_v5 = vld [vmem:[%s262_s0 + $0x10] sm:$0xff] }
   0x2   :  { %v23_v2 = vld [vmem:[%s262_s0] sm:$0xff]  ;;  %174 = vmatprep.subr.mxu0 %v54_v0  ;;  %184 = vmatprep.subr.mxu1 %v54_v0  ;;  %v24_v8 = vld [vmem:[%s262_s0 + $0x8] sm:$0xff]  ;;  %v26_v9 = vld [vmem:[%s262_s0 + $0x18] sm:$0xff] }
   0x3   :  { %v162_v3 = vld [vmem:[%s263_s2] ss:$0 sm:$0xff]  ;;  %175 = vmatpush3.msra.mxu0 %v54_v0  ;;  %186 = vmatpush3.msra.mxu1 %v54_v0 }
   0x4   :  { %v163_v4 = vld [vmem:[%s264_s3] ss:$0 sm:$0xff]  ;;  %v34_v6 = vmul.f32 %v162_v3, %v23_v2  ;;  %v36_v7 = vmul.f32 %v162_v3, %v25_v5  ;;  %176 = vmatprep.subr.mxu0 %v53_v1  ;;  %185 = vmatprep.subr.mxu1 %v53_v1  ;;  %v35_v10 = vmul.f32 %v162_v3, %v24_v8 }
   0x5   :  { %v37_v11 = vmul.f32 %v162_v3, %v26_v9  ;;  %177 = vmatpush3.msra.mxu0 %v53_v1  ;;  %187 = vmatpush3.msra.mxu1 %v53_v1 }
   0x6   :  { %v45_v12 = vadd.f32 %v163_v4, %v34_v6  ;;  %v47_v13 = vadd.f32 %v163_v4, %v36_v7  ;;  %v46_v14 = vadd.f32 %v163_v4, %v35_v10 }
   0x7   :  { %v48_v15 = vadd.f32 %v163_v4, %v37_v11 }
   0x8   :  { %v49_v16 = vmax.f32 %v45_v12, 0.0  ;;  %v51_v17 = vmax.f32 %v47_v13, 0.0  ;;  %v50_v18 = vmax.f32 %v46_v14, 0.0 }
   0x9   :  { %v52_v19 = vmax.f32 %v48_v15, 0.0 }
   0xa   :  { %178 = vmatprep.mubr.msk.f32.mxu0 %vm55_vm0, %v49_v16  ;;  %181 = vmatprep.mubr.msk.f32.mxu1 %vm55_vm0, %v51_v17 }
   0xb   :  { %179 = vmatmul.mubr.msk.f32.vlgmr.msra.gmra.mxu0 %vm55_vm0, %v50_v18  ;;  %182 = vmatmul.mubr.msk.f32.vlgmr.msra.gmra.mxu1 %vm55_vm0, %v52_v19 }
  0xcb   :  { %v180_v20 = vpop.f32.mrf.mxu0  ;;  %v183_v21 = vpop.f32.mrf.mxu1 }
  0xcc   :  { %155 = vst.msk [vmem:[%s265_s6 + $0x8] sm:$0xff] %vm153_vm1, %v180_v20  ;;  %157 = vst.msk [vmem:[%s265_s6 + $0x18] sm:$0xff] %vm153_vm1, %v183_v21 }
  0xcd   :  { %v134_v22 = vpop.f32.mrf.mxu0  ;;  %v144_v23 = vpop.f32.mrf.mxu1 }
  0xce   :  { %154 = vst.msk [vmem:[%s265_s6] sm:$0xff] %vm153_vm1, %v134_v22  ;;  %156 = vst.msk [vmem:[%s265_s6 + $0x10] sm:$0xff] %vm153_vm1, %v144_v23 }

// kernel: tile.66
= control target key start
LH: loop header
LB: loop body
LE: loop exit
PB: predicated region body
PF: predicated region fallthrough
CT: control target
= control target key end

     0   :  { %s28_s0 = inlined_call_operand.vmem [shape: f32[32], index: 0, kind: input, shape index: {}]   ;;  %s29_s1 = inlined_call_operand.vmem [shape: f32[9,32], index: 1, kind: output, shape index: {}]  }
   0x1   :  { %v4_v0 = vld [vmem:[%s28_s0] ss:$0 sm:$0xff] }
   0x2   :  { %5 = vst [vmem:[%s29_s1] sm:$0xff] %v4_v0  ;;  %8 = vst [vmem:[%s29_s1 + $0x8] sm:$0xff] %v4_v0 }

// kernel: tile.67
= control target key start
LH: loop header
LB: loop body
LE: loop exit
PB: predicated region body
PF: predicated region fallthrough
CT: control target
= control target key end

     0   :  { %s6_s6 = smov 3  ;;  %s13_s11 = smov 3  ;;  %vm3_vm0 = vcmask 261120   ;;  %vm10_vm1 = vcmask 1048320   ;;  %vm17_vm2 = vcmask 785920   ;;  %vm24_vm3 = vcmask 523520   ;;  %s90_s0 = inlined_call_operand.vmem [shape: f32[9,32], index: 0, kind: input, shape index: {}]   ;;  %s91_s1 = inlined_call_operand.vmem [shape: f32[1,288], index: 1, kind: output, shape index: {}]  }
   0x1   :  { %v2_v0 = vld [vmem:[%s90_s0] ss:$4 sm:$0x7]   ;;  %v48_v1 = vld [vmem:[%s90_s0 + $0x3] ss:$4 sm:%s6_s6]   ;;  %s56_s12 = smov 96  }
   0x2   :  { %8 = vrot.lane.b32.xlu0 %v48_v1, %s56_s12  ;;  %s20_s13 = smov 3  ;;  %4 = vst.msk [vmem:[#allocation0] ss:$8 sm:$0x7] %vm3_vm0, %v2_v0   ;;  %v49_v2 = vld [vmem:[%s90_s0 + $0x2] ss:$4 sm:%s13_s11]  }
   0x3   :  { %v50_v3 = vld [vmem:[%s90_s0 + $0x1] ss:$4 sm:%s20_s13]   ;;  %s57_s0 = smov 32   ;;  %s58_s18 = smov 64  }
   0x4   :  { %22 = vrot.lane.b32.xlu1 %v50_v3, %s57_s0 }
   0x6   :  { %15 = vrot.lane.b32.xlu0 %v49_v2, %s58_s18 }
   0x9   :  { %v41_v4 = vld [vmem:[#allocation0 + $0x10] sm:$0x1] }
   0xa   :  { %52 = vst [vmem:[%s91_s1 + $0x2] sm:$0x1] %v41_v4 }
  0x74   :  { %v9_v5 = vpop.permute.xlu0 %8  }
  0x75   :  { %11 = vst.msk [vmem:[#allocation0] ss:$8 sm:$0x3] %vm10_vm1, %v9_v5  }
  0x76   :  { %v23_v6 = vpop.permute.xlu1 %22  }
  0x78   :  { %v16_v7 = vpop.permute.xlu0 %15  }
  0x79   :  { %18 = vst.msk [vmem:[#allocation0] ss:$8 sm:$0x3] %vm17_vm2, %v16_v7  }
  0x7a   :  { %25 = vst.msk [vmem:[#allocation0] ss:$8 sm:$0x3] %vm24_vm3, %v23_v6  }
  0x81   :  { %v30_v8 = vld [vmem:[#allocation0] sm:$0x1]  ;;  %v35_v9 = vld [vmem:[#allocation0 + $0x8] sm:$0x1] }
  0x82   :  { %33 = vst [vmem:[%s91_s1] sm:$0x1] %v30_v8  ;;  %51 = vst [vmem:[%s91_s1 + $0x1] sm:$0x1] %v35_v9 }

// kernel: forward.29
= control target key start
LH: loop header
LB: loop body
LE: loop exit
PB: predicated region body
PF: predicated region fallthrough
CT: control target
= control target key end

     0   :  { %s86_s0 = inlined_call_operand.vmem [shape: f32[9,2,512], index: 0, kind: input, shape index: {}]   ;;  %s87_s1 = inlined_call_operand.vmem [shape: f32[2,512], index: 1, kind: output, shape index: {}]  }
   0x1   :  { %v8_v0 = vld [vmem:[%s86_s0] sm:$0xff]  ;;  %v38_v1 = vld [vmem:[%s86_s0 + $0x8] sm:$0xff]  ;;  %v39_v2 = vld [vmem:[%s86_s0 + $0x10] sm:$0xff] }
   0x2   :  { %v11_v3 = vmax.f32 %v8_v0, %v38_v1  ;;  %v40_v4 = vld [vmem:[%s86_s0 + $0x18] sm:$0xff]  ;;  %v41_v6 = vld [vmem:[%s86_s0 + $0x20] sm:$0xff]  ;;  %v42_v8 = vld [vmem:[%s86_s0 + $0x28] sm:$0xff] }
   0x3   :  { %v43_v10 = vld [vmem:[%s86_s0 + $0x30] sm:$0xff]  ;;  %v44_v12 = vld [vmem:[%s86_s0 + $0x38] sm:$0xff]  ;;  %v45_v14 = vld [vmem:[%s86_s0 + $0x40] sm:$0xff] }
   0x4   :  { %v14_v5 = vmax.f32 %v11_v3, %v39_v2 }
   0x6   :  { %v17_v7 = vmax.f32 %v14_v5, %v40_v4 }
   0x8   :  { %v20_v9 = vmax.f32 %v17_v7, %v41_v6 }
   0xa   :  { %v23_v11 = vmax.f32 %v20_v9, %v42_v8 }
   0xc   :  { %v26_v13 = vmax.f32 %v23_v11, %v43_v10 }
   0xe   :  { %v29_v15 = vmax.f32 %v26_v13, %v44_v12 }
  0x10   :  { %v32_v16 = vmax.f32 %v29_v15, %v45_v14 }
  0x12   :  { %33 = vst [vmem:[%s87_s1] sm:$0xff] %v32_v16 }

// kernel: forward.30
= control target key start
LH: loop header
LB: loop body
LE: loop exit
PB: predicated region body
PF: predicated region fallthrough
CT: control target
= control target key end

     0   :  { %v40_v3 = vlaneseq  ;;  %vm148_vm0 = vcmask 261120   ;;  %s654_s1 = inlined_call_operand.vmem [shape: f32[288,32], index: 1, kind: input, shape index: {}]   ;;  %s655_s4 = inlined_call_operand.vmem [shape: f32[1,32], index: 4, kind: input, shape index: {}]   ;;  %s656_s5 = inlined_call_operand.vmem [shape: f32[1,32], index: 5, kind: input, shape index: {}]   ;;  %s657_s0 = inlined_call_operand.vmem [shape: f32[32,288], index: 0, kind: input, shape index: {}]   ;;  %s658_s2 = inlined_call_operand.vmem [shape: f32[1,288], index: 2, kind: input, shape index: {}]   ;;  %s659_s3 = inlined_call_operand.vmem [shape: f32[1,288], index: 3, kind: input, shape index: {}]   ;;  %s660_s6 = inlined_call_operand.vmem [shape: f32[32,32], index: 6, kind: input, shape index: {}]   ;;  %s661_s7 = inlined_call_operand.vmem [shape: f32[32,32], index: 7, kind: output, shape index: {}]  }
   0x1   :  { %v139_v0 = vld [vmem:[%s654_s1 + $0xf8] sm:$0xff]  ;;  %v138_v2 = vld [vmem:[%s654_s1 + $0xf0] sm:$0xff]  ;;  %v137_v5 = vld [vmem:[%s654_s1 + $0xe8] sm:$0xff] }
   0x2   :  { %v123_v1 = vld [vmem:[%s654_s1 + $0x78] sm:$0xff]  ;;  %343 = vmatprep.subr.mxu0 %v139_v0  ;;  %v122_v4 = vld [vmem:[%s654_s1 + $0x70] sm:$0xff]  ;;  %v121_v6 = vld [vmem:[%s654_s1 + $0x68] sm:$0xff]  ;;  %v470_v8 = vshrl.u32 %v40_v3, 7 }
   0x3   :  { %344 = vmatpush3.msra.mxu0 %v123_v1  ;;  %v136_v7 = vld [vmem:[%s654_s1 + $0xe0] sm:$0xff]  ;;  %v135_v10 = vld [vmem:[%s654_s1 + $0xd8] sm:$0xff]  ;;  %v134_v12 = vld [vmem:[%s654_s1 + $0xd0] sm:$0xff] }
   0x4   :  { %345 = vmatprep.subr.mxu0 %v138_v2  ;;  %v120_v9 = vld [vmem:[%s654_s1 + $0x60] sm:$0xff]  ;;  %v119_v11 = vld [vmem:[%s654_s1 + $0x58] sm:$0xff]  ;;  %v46_v13 = vsub.s32 1, %v470_v8  ;;  %v50_v14 = vsub.s32 2, %v470_v8  ;;  %v118_v15 = vld [vmem:[%s654_s1 + $0x50] sm:$0xff]  ;;  %v42_v29 = vsub.s32 0, %v470_v8 }
   0x5   :  { %346 = vmatpush3.msra.mxu0 %v122_v4  ;;  %v143_v16 = vld [vmem:[%s654_s1 + $0x118] sm:$0xff]  ;;  %v133_v17 = vld [vmem:[%s654_s1 + $0xc8] sm:$0xff]  ;;  %v142_v18 = vld [vmem:[%s654_s1 + $0x110] sm:$0xff] }
   0x6   :  { %347 = vmatprep.subr.mxu0 %v137_v5  ;;  %395 = vmatprep.subr.mxu1 %v143_v16  ;;  %v117_v19 = vld [vmem:[%s654_s1 + $0x48] sm:$0xff]  ;;  %v38_v21 = vld [vmem:[%s658_s2] sm:$0x7]  ;;  %v28_v31 = vld [vmem:[%s657_s0 + $0x10] sm:$0xff] }
   0x7   :  { %348 = vmatpush3.msra.mxu0 %v121_v6  ;;  %396 = vmatpush3.msra.mxu1 %v143_v16  ;;  %v27_v20 = vld [vmem:[%s657_s0 + $0x8] sm:$0xff]  ;;  %v132_v22 = vld [vmem:[%s654_s1 + $0xc0] sm:$0xff]  ;;  %v510_v23 = vrot.slane %v38_v21, %v46_v13  ;;  %v51_v26 = vrot.slane %v38_v21, %v50_v14  ;;  %v131_v33 = vld [vmem:[%s654_s1 + $0xb8] sm:$0xff]  ;;  %v547_v42 = vrot.slane %v38_v21, %v42_v29 }
   0x8   :  { %349 = vmatprep.subr.mxu0 %v136_v7  ;;  %397 = vmatprep.subr.mxu1 %v142_v18  ;;  %v67_v24 = vld [vmem:[%s659_s3] sm:$0x7]  ;;  %v141_v25 = vld [vmem:[%s654_s1 + $0x108] sm:$0xff]  ;;  %v115_v36 = vld [vmem:[%s654_s1 + $0x38] sm:$0xff] }
   0x9   :  { %350 = vmatpush3.msra.mxu0 %v120_v9  ;;  %v116_v27 = vld [vmem:[%s654_s1 + $0x40] sm:$0xff]  ;;  %v521_v28 = vrot.slane %v67_v24, %v46_v13  ;;  %398 = vmatpush3.msra.mxu1 %v142_v18  ;;  %v80_v32 = vrot.slane %v67_v24, %v50_v14  ;;  %v56_v34 = vmul.f32 %v510_v23, %v27_v20  ;;  %v31_v35 = vld [vmem:[%s657_s0 + $0x28] sm:$0xff]  ;;  %v130_v39 = vld [vmem:[%s654_s1 + $0xb0] sm:$0xff] }
   0xa   :  { %351 = vmatprep.subr.mxu0 %v135_v10  ;;  %v140_v30 = vld [vmem:[%s654_s1 + $0x100] sm:$0xff]  ;;  %399 = vmatprep.subr.mxu1 %v141_v25  ;;  %v57_v37 = vmul.f32 %v51_v26, %v28_v31  ;;  %v60_v38 = vmul.f32 %v51_v26, %v31_v35  ;;  %v114_v41 = vld [vmem:[%s654_s1 + $0x30] sm:$0xff]  ;;  %v129_v46 = vld [vmem:[%s654_s1 + $0xa8] sm:$0xff]  ;;  %v72_v58 = vrot.slane %v67_v24, %v42_v29 }
   0xb   :  { %352 = vmatpush3.msra.mxu0 %v119_v11  ;;  %400 = vmatpush3.msra.mxu1 %v141_v25  ;;  %v85_v40 = vadd.f32 %v521_v28, %v56_v34  ;;  %v34_v45 = vld [vmem:[%s657_s0 + $0x40] sm:$0xff]  ;;  %v37_v49 = vld [vmem:[%s657_s0 + $0x58] sm:$0xff]  ;;  %v113_v50 = vld [vmem:[%s654_s1 + $0x28] sm:$0xff] }
   0xc   :  { %353 = vmatprep.subr.mxu0 %v134_v12  ;;  %401 = vmatprep.subr.mxu1 %v140_v30  ;;  %v86_v43 = vadd.f32 %v80_v32, %v57_v37  ;;  %v89_v44 = vadd.f32 %v80_v32, %v60_v38  ;;  %v26_v48 = vld [vmem:[%s657_s0] sm:$0xff]  ;;  %v63_v55 = vmul.f32 %v51_v26, %v34_v45  ;;  %v127_v60 = vld [vmem:[%s654_s1 + $0x98] sm:$0xff]  ;;  %v126_v3 = vld [vmem:[%s654_s1 + $0x90] sm:$0xff] }
   0xd   :  { %354 = vmatpush3.msra.mxu0 %v118_v15  ;;  %402 = vmatpush3.msra.mxu1 %v140_v30  ;;  %v97_v47 = vmax.f32 %v85_v40, 0.0  ;;  %v30_v51 = vld [vmem:[%s657_s0 + $0x20] sm:$0xff]  ;;  %v55_v57 = vmul.f32 %v547_v42, %v26_v48  ;;  %v66_v59 = vmul.f32 %v51_v26, %v37_v49  ;;  %v29_v62 = vld [vmem:[%s657_s0 + $0x18] sm:$0xff]  ;;  %v110_v5 = vld [vmem:[%s654_s1 + $0x10] sm:$0xff] }
   0xe   :  { %355 = vmatprep.subr.mxu0 %v133_v17  ;;  %v98_v52 = vmax.f32 %v86_v43, 0.0  ;;  %v101_v53 = vmax.f32 %v89_v44, 0.0  ;;  %v128_v54 = vld [vmem:[%s654_s1 + $0xa0] sm:$0xff]  ;;  %v59_v61 = vmul.f32 %v510_v23, %v30_v51  ;;  %v92_v63 = vadd.f32 %v80_v32, %v63_v55  ;;  %v111_v0 = vld [vmem:[%s654_s1 + $0x18] sm:$0xff]  ;;  %v125_v9 = vld [vmem:[%s654_s1 + $0x88] sm:$0xff] }
   0xf   :  { %356 = vmatpush3.msra.mxu0 %v117_v19  ;;  %225 = vmatprep.mubr.f32.mxu0 %v97_v47  ;;  %v112_v56 = vld [vmem:[%s654_s1 + $0x20] sm:$0xff]  ;;  %v33_v1 = vld [vmem:[%s657_s0 + $0x38] sm:$0xff]  ;;  %v95_v2 = vadd.f32 %v80_v32, %v66_v59  ;;  %v84_v6 = vadd.f32 %v72_v58, %v55_v57  ;;  %v58_v7 = vmul.f32 %v547_v42, %v29_v62  ;;  %v32_v12 = vld [vmem:[%s657_s0 + $0x30] sm:$0xff] }
  0x10   :  { %357 = vmatprep.subr.mxu0 %v132_v22  ;;  %403 = vmatprep.mubr.msk.f32.mxu1 %vm148_vm0, %v98_v52  ;;  %v104_v4 = vmax.f32 %v92_v63, 0.0  ;;  %v88_v10 = vadd.f32 %v521_v28, %v59_v61  ;;  %v62_v11 = vmul.f32 %v510_v23, %v33_v1  ;;  %v109_v13 = vld [vmem:[%s654_s1 + $0x8] sm:$0xff]  ;;  %v36_v14 = vld [vmem:[%s657_s0 + $0x50] sm:$0xff]  ;;  %v124_v15 = vld [vmem:[%s654_s1 + $0x80] sm:$0xff]  ;;  %v61_v19 = vmul.f32 %v547_v42, %v32_v12 }
  0x11   :  { %358 = vmatpush3.msra.mxu0 %v116_v27  ;;  %404 = vmatmul.mubr.msk.f32.vlgmr.msra.gmra.mxu1 %vm148_vm0, %v101_v53  ;;  %v107_v8 = vmax.f32 %v95_v2, 0.0  ;;  %v108_v16 = vld [vmem:[%s654_s1] sm:$0xff]  ;;  %v96_v17 = vmax.f32 %v84_v6, 0.0  ;;  %v87_v18 = vadd.f32 %v72_v58, %v58_v7  ;;  %v65_v22 = vmul.f32 %v510_v23, %v36_v14  ;;  %v35_v24 = vld [vmem:[%s657_s0 + $0x48] sm:$0xff]  ;;  %v146_v49 = vld [vmem:[%s660_s6 + $0x10] sm:$0xff] }
  0x12   :  { %359 = vmatprep.subr.mxu0 %v131_v33  ;;  %406 = vmatprep.mubr.msk.f32.mxu1 %vm148_vm0, %v104_v4  ;;  %v100_v20 = vmax.f32 %v88_v10, 0.0  ;;  %v91_v21 = vadd.f32 %v521_v28, %v62_v11  ;;  %v90_v26 = vadd.f32 %v72_v58, %v61_v19  ;;  %v64_v27 = vmul.f32 %v547_v42, %v35_v24  ;;  %v144_v37 = vld [vmem:[%s660_s6] sm:$0xff]  ;;  %v147_v55 = vld [vmem:[%s660_s6 + $0x18] sm:$0xff] }
  0x13   :  { %360 = vmatpush3.msra.mxu0 %v115_v36  ;;  %v99_v25 = vmax.f32 %v87_v18, 0.0  ;;  %v94_v30 = vadd.f32 %v521_v28, %v65_v22 }
  0x14   :  { %361 = vmatprep.subr.mxu0 %v130_v39  ;;  %v103_v29 = vmax.f32 %v91_v21, 0.0  ;;  %v102_v31 = vmax.f32 %v90_v26, 0.0  ;;  %v93_v32 = vadd.f32 %v72_v58, %v64_v27 }
  0x15   :  { %362 = vmatpush3.msra.mxu0 %v114_v41  ;;  %407 = vmatmul.mubr.msk.f32.gmra.mxu1 %vm148_vm0, %v107_v8  ;;  %v106_v23 = vmax.f32 %v94_v30, 0.0  ;;  %v145_v41 = vld [vmem:[%s660_s6 + $0x8] sm:$0xff] }
  0x16   :  { %363 = vmatprep.subr.mxu0 %v129_v46  ;;  %v105_v33 = vmax.f32 %v93_v32, 0.0 }
  0x17   :  { %364 = vmatpush3.msra.mxu0 %v113_v50 }
  0x18   :  { %365 = vmatprep.subr.mxu0 %v128_v54 }
  0x19   :  { %366 = vmatpush3.msra.mxu0 %v112_v56 }
  0x1a   :  { %367 = vmatprep.subr.mxu0 %v127_v60 }
  0x1b   :  { %368 = vmatpush3.msra.mxu0 %v111_v0 }
  0x1c   :  { %369 = vmatprep.subr.mxu0 %v126_v3 }
  0x1d   :  { %370 = vmatpush3.msra.mxu0 %v110_v5 }
  0x1e   :  { %371 = vmatprep.subr.mxu0 %v125_v9 }
  0x1f   :  { %372 = vmatpush3.msra.mxu0 %v109_v13 }
  0x20   :  { %373 = vmatprep.subr.mxu0 %v124_v15 }
  0x21   :  { %374 = vmatpush3.msra.mxu0 %v108_v16 }
  0x22   :  { %226 = vmatmul.mubr.f32.vlgmr.msra.gmra.mxu0 %v96_v17 }
  0x23   :  { %230 = vmatprep.mubr.f32.mxu0 %v100_v20 }
  0x26   :  { %231 = vmatmul.mubr.f32.gmra.mxu0 %v99_v25 }
  0x27   :  { %235 = vmatprep.mubr.f32.mxu0 %v103_v29 }
  0x2a   :  { %236 = vmatmul.mubr.f32.gmra.mxu0 %v102_v31 }
  0x2b   :  { %240 = vmatprep.mubr.f32.mxu0 %v106_v23 }
  0x2e   :  { %241 = vmatmul.mubr.f32.gmra.mxu0 %v105_v33 }
  0xd1   :  { %v405_v35 = vpop.f32.mrf.mxu1 }
  0xd3   :  { %v312_v40 = vpop.f32.mrf.mxu1 }
  0xd5   :  { %v408_v46 = vpop.f32.mrf.mxu1 }
  0xd7   :  { %v322_v53 = vpop.f32.mrf.mxu1 }
  0xe2   :  { %v375_v34 = vpop.f32.mrf.mxu0 }
  0xe4   :  { %v376_v36 = vpop.f32.mrf.mxu0 }
  0xe5   :  { %v377_v38 = vadd.f32 %v376_v36, %v375_v34 }
  0xe6   :  { %v378_v39 = vpop.f32.mrf.mxu0 }
  0xe7   :  { %v228_v28 = vadd.f32 %v377_v38, %v144_v37 }
  0xe8   :  { %v379_v42 = vpop.f32.mrf.mxu0 }
  0xe9   :  { %v380_v43 = vadd.f32 %v379_v42, %v378_v39  ;;  %v313_v44 = vadd.f32 %v312_v40, %v228_v28 }
  0xea   :  { %v381_v45 = vpop.f32.mrf.mxu0 }
  0xeb   :  { %v233_v47 = vadd.f32 %v380_v43, %v145_v41  ;;  %331 = vst.msk [vmem:[%s661_s7] sm:$0xff] %vm148_vm0, %v313_v44 }
  0xec   :  { %v382_v48 = vpop.f32.mrf.mxu0 }
  0xed   :  { %v318_v50 = vadd.f32 %v405_v35, %v233_v47  ;;  %v383_v51 = vadd.f32 %v382_v48, %v381_v45 }
  0xee   :  { %v384_v52 = vpop.f32.mrf.mxu0 }
  0xef   :  { %332 = vst.msk [vmem:[%s661_s7 + $0x8] sm:$0xff] %vm148_vm0, %v318_v50  ;;  %v238_v54 = vadd.f32 %v383_v51, %v146_v49 }
  0xf0   :  { %v385_v56 = vpop.f32.mrf.mxu0 }
  0xf1   :  { %v386_v57 = vadd.f32 %v385_v56, %v384_v52  ;;  %v323_v58 = vadd.f32 %v322_v53, %v238_v54 }
  0xf3   :  { %v243_v59 = vadd.f32 %v386_v57, %v147_v55  ;;  %333 = vst.msk [vmem:[%s661_s7 + $0x10] sm:$0xff] %vm148_vm0, %v323_v58 }
  0xf5   :  { %v328_v60 = vadd.f32 %v408_v46, %v243_v59 }
  0xf7   :  { %334 = vst.msk [vmem:[%s661_s7 + $0x18] sm:$0xff] %vm148_vm0, %v328_v60 }

// kernel: forward.31
= control target key start
LH: loop header
LB: loop body
LE: loop exit
PB: predicated region body
PF: predicated region fallthrough
CT: control target
= control target key end

     0   :  { %v146_v0 = vmov 0.0   ;;  %vm147_vm0 = vmmov 0   ;;  %vm45_vm1 = vcmask 261120   ;;  %vm119_vm2 = vcmask 523264   ;;  %s207_s4 = inlined_call_operand.vmem [shape: f32[1,64], index: 4, kind: input, shape index: {}]   ;;  %s208_s5 = inlined_call_operand.vmem [shape: f32[1,64], index: 5, kind: input, shape index: {}]   ;;  %s209_s1 = inlined_call_operand.vmem [shape: f32[32,64], index: 1, kind: input, shape index: {}]   ;;  %s210_s0 = inlined_call_operand.vmem [shape: f32[8,32], index: 0, kind: input, shape index: {}]   ;;  %s211_s2 = inlined_call_operand.vmem [shape: f32[1,32], index: 2, kind: input, shape index: {}]   ;;  %s212_s3 = inlined_call_operand.vmem [shape: f32[1,32], index: 3, kind: input, shape index: {}]   ;;  %s213_s6 = inlined_call_operand.vmem [shape: f32[8,64], index: 6, kind: output, shape index: {}]  }
   0x1   :  { %133 = vmatprep.subr.mxu0 %v146_v0  ;;  %v44_v1 = vld [vmem:[%s209_s1 + $0x18] sm:$0xff]  ;;  %v43_v2 = vld [vmem:[%s209_s1 + $0x10] sm:$0xff]  ;;  %141 = vmatprep.mubr.msk.f32.mxu0 %vm147_vm0, %v146_v0  ;;  %v23_v3 = vld [vmem:[%s210_s0] sm:$0xff] }
   0x2   :  { %134 = vmatpush3.msra.mxu0 %v44_v1  ;;  %v125_v4 = vld [vmem:[%s211_s2] ss:$0 sm:$0xff]  ;;  %v42_v5 = vld [vmem:[%s209_s1 + $0x8] sm:$0xff] }
   0x3   :  { %135 = vmatprep.subr.mxu0 %v146_v0  ;;  %v31_v6 = vmul.f32 %v125_v4, %v23_v3  ;;  %v126_v7 = vld [vmem:[%s212_s3] ss:$0 sm:$0xff] }
   0x4   :  { %136 = vmatpush3.msra.mxu0 %v43_v2  ;;  %v41_v8 = vld [vmem:[%s209_s1] sm:$0xff] }
   0x5   :  { %137 = vmatprep.subr.mxu0 %v146_v0  ;;  %v39_v9 = vadd.f32 %v126_v7, %v31_v6 }
   0x6   :  { %138 = vmatpush3.msra.mxu0 %v42_v5 }
   0x7   :  { %139 = vmatprep.subr.mxu0 %v146_v0  ;;  %v40_v10 = vmax.f32 %v39_v9, 0.0 }
   0x8   :  { %140 = vmatpush3.msra.mxu0 %v41_v8 }
   0x9   :  { %142 = vmatmul.mubr.msk.f32.vlgmr.msra.gmra.mxu0 %vm45_vm1, %v40_v10 }
  0xc9   :  { %v115_v11 = vpop.f32.mrf.mxu0 }
  0xca   :  { %120 = vst.msk [vmem:[%s213_s6] sm:$0xff] %vm119_vm2, %v115_v11 }
  0xcb   :  { %v143_v12 = vpop.f32.mrf.mxu0 }

// kernel: forward.32
= control target key start
LH: loop header
LB: loop body
LE: loop exit
PB: predicated region body
PF: predicated region fallthrough
CT: control target
= control target key end

     0   :  { %v270_v3 = vmov 0.0   ;;  %vm271_vm0 = vmmov 0   ;;  %vm66_vm1 = vcmask 261120   ;;  %vm210_vm2 = vcmask 523264   ;;  %s435_s1 = inlined_call_operand.vmem [shape: f32[288,64], index: 1, kind: input, shape index: {}]   ;;  %s436_s2 = inlined_call_operand.vmem [shape: f32[1,288], index: 2, kind: input, shape index: {}]   ;;  %s437_s3 = inlined_call_operand.vmem [shape: f32[1,288], index: 3, kind: input, shape index: {}]   ;;  %s438_s4 = inlined_call_operand.vmem [shape: f32[1,64], index: 4, kind: input, shape index: {}]   ;;  %s439_s5 = inlined_call_operand.vmem [shape: f32[1,64], index: 5, kind: input, shape index: {}]   ;;  %s440_s0 = inlined_call_operand.vmem [shape: f32[8,288], index: 0, kind: input, shape index: {}]   ;;  %s441_s6 = inlined_call_operand.vmem [shape: f32[8,64], index: 6, kind: input, shape index: {}]   ;;  %s442_s7 = inlined_call_operand.vmem [shape: f32[8,64], index: 7, kind: output, shape index: {}]  }
   0x1   :  { %v60_v0 = vld [vmem:[%s435_s1 + $0xf8] sm:$0xff]  ;;  %v59_v2 = vld [vmem:[%s435_s1 + $0xf0] sm:$0xff]  ;;  %257 = vmatprep.subr.mxu1 %v270_v3  ;;  %265 = vmatprep.mubr.msk.f32.mxu1 %vm271_vm0, %v270_v3  ;;  %v58_v5 = vld [vmem:[%s435_s1 + $0xe8] sm:$0xff] }
   0x2   :  { %v44_v1 = vld [vmem:[%s435_s1 + $0x78] sm:$0xff]  ;;  %217 = vmatprep.subr.mxu0 %v60_v0  ;;  %v43_v4 = vld [vmem:[%s435_s1 + $0x70] sm:$0xff]  ;;  %v42_v6 = vld [vmem:[%s435_s1 + $0x68] sm:$0xff] }
   0x3   :  { %218 = vmatpush3.msra.mxu0 %v44_v1  ;;  %v57_v7 = vld [vmem:[%s435_s1 + $0xe0] sm:$0xff]  ;;  %v56_v9 = vld [vmem:[%s435_s1 + $0xd8] sm:$0xff]  ;;  %v55_v11 = vld [vmem:[%s435_s1 + $0xd0] sm:$0xff] }
   0x4   :  { %219 = vmatprep.subr.mxu0 %v59_v2  ;;  %v41_v8 = vld [vmem:[%s435_s1 + $0x60] sm:$0xff]  ;;  %v40_v10 = vld [vmem:[%s435_s1 + $0x58] sm:$0xff]  ;;  %v39_v12 = vld [vmem:[%s435_s1 + $0x50] sm:$0xff] }
   0x5   :  { %220 = vmatpush3.msra.mxu0 %v43_v4  ;;  %v54_v13 = vld [vmem:[%s435_s1 + $0xc8] sm:$0xff]  ;;  %v64_v14 = vld [vmem:[%s435_s1 + $0x118] sm:$0xff]  ;;  %v63_v17 = vld [vmem:[%s435_s1 + $0x110] sm:$0xff] }
   0x6   :  { %221 = vmatprep.subr.mxu0 %v58_v5  ;;  %v38_v15 = vld [vmem:[%s435_s1 + $0x48] sm:$0xff]  ;;  %258 = vmatpush3.msra.mxu1 %v64_v14  ;;  %v53_v18 = vld [vmem:[%s435_s1 + $0xc0] sm:$0xff]  ;;  %v52_v21 = vld [vmem:[%s435_s1 + $0xb8] sm:$0xff] }
   0x7   :  { %222 = vmatpush3.msra.mxu0 %v42_v6  ;;  %v27_v16 = vld [vmem:[%s440_s0 + $0x8] sm:$0xff]  ;;  %259 = vmatprep.subr.mxu1 %v270_v3  ;;  %v37_v19 = vld [vmem:[%s435_s1 + $0x40] sm:$0xff]  ;;  %v36_v22 = vld [vmem:[%s435_s1 + $0x38] sm:$0xff] }
   0x8   :  { %223 = vmatprep.subr.mxu0 %v57_v7  ;;  %134 = vmatprep.mubr.f32.mxu0 %v27_v16  ;;  %v62_v20 = vld [vmem:[%s435_s1 + $0x108] sm:$0xff]  ;;  %v61_v23 = vld [vmem:[%s435_s1 + $0x100] sm:$0xff]  ;;  %v51_v24 = vld [vmem:[%s435_s1 + $0xb0] sm:$0xff] }
   0x9   :  { %224 = vmatpush3.msra.mxu0 %v41_v8  ;;  %260 = vmatpush3.msra.mxu1 %v63_v17  ;;  %v28_v25 = vld [vmem:[%s440_s0 + $0x10] sm:$0xff]  ;;  %v50_v27 = vld [vmem:[%s435_s1 + $0xa8] sm:$0xff]  ;;  %v49_v29 = vld [vmem:[%s435_s1 + $0xa0] sm:$0xff] }
   0xa   :  { %225 = vmatprep.subr.mxu0 %v56_v9  ;;  %261 = vmatprep.subr.mxu1 %v270_v3  ;;  %v35_v26 = vld [vmem:[%s435_s1 + $0x30] sm:$0xff]  ;;  %v34_v28 = vld [vmem:[%s435_s1 + $0x28] sm:$0xff]  ;;  %v33_v30 = vld [vmem:[%s435_s1 + $0x20] sm:$0xff] }
   0xb   :  { %226 = vmatpush3.msra.mxu0 %v40_v10  ;;  %262 = vmatpush3.msra.mxu1 %v62_v20  ;;  %v48_v31 = vld [vmem:[%s435_s1 + $0x98] sm:$0xff]  ;;  %v47_v33 = vld [vmem:[%s435_s1 + $0x90] sm:$0xff]  ;;  %v46_v35 = vld [vmem:[%s435_s1 + $0x88] sm:$0xff] }
   0xc   :  { %227 = vmatprep.subr.mxu0 %v55_v11  ;;  %263 = vmatprep.subr.mxu1 %v270_v3  ;;  %v32_v32 = vld [vmem:[%s435_s1 + $0x18] sm:$0xff]  ;;  %v31_v34 = vld [vmem:[%s435_s1 + $0x10] sm:$0xff]  ;;  %v30_v36 = vld [vmem:[%s435_s1 + $0x8] sm:$0xff] }
   0xd   :  { %228 = vmatpush3.msra.mxu0 %v39_v12  ;;  %264 = vmatpush3.msra.mxu1 %v61_v23  ;;  %v45_v37 = vld [vmem:[%s435_s1 + $0x80] sm:$0xff] }
   0xe   :  { %229 = vmatprep.subr.mxu0 %v54_v13  ;;  %266 = vmatmul.mubr.msk.f32.vlgmr.msra.gmra.mxu1 %vm66_vm1, %v28_v25  ;;  %v29_v38 = vld [vmem:[%s435_s1] sm:$0xff] }
   0xf   :  { %230 = vmatpush3.msra.mxu0 %v38_v15  ;;  %v26_v39 = vld [vmem:[%s440_s0] sm:$0xff] }
  0x10   :  { %231 = vmatprep.subr.mxu0 %v53_v18  ;;  %v65_v44 = vld [vmem:[%s441_s6] sm:$0xff] }
  0x11   :  { %232 = vmatpush3.msra.mxu0 %v37_v19 }
  0x12   :  { %233 = vmatprep.subr.mxu0 %v52_v21 }
  0x13   :  { %234 = vmatpush3.msra.mxu0 %v36_v22 }
  0x14   :  { %235 = vmatprep.subr.mxu0 %v51_v24 }
  0x15   :  { %236 = vmatpush3.msra.mxu0 %v35_v26 }
  0x16   :  { %237 = vmatprep.subr.mxu0 %v50_v27 }
  0x17   :  { %238 = vmatpush3.msra.mxu0 %v34_v28 }
  0x18   :  { %239 = vmatprep.subr.mxu0 %v49_v29 }
  0x19   :  { %240 = vmatpush3.msra.mxu0 %v33_v30 }
  0x1a   :  { %241 = vmatprep.subr.mxu0 %v48_v31 }
  0x1b   :  { %242 = vmatpush3.msra.mxu0 %v32_v32 }
  0x1c   :  { %243 = vmatprep.subr.mxu0 %v47_v33 }
  0x1d   :  { %244 = vmatpush3.msra.mxu0 %v31_v34 }
  0x1e   :  { %245 = vmatprep.subr.mxu0 %v46_v35 }
  0x1f   :  { %246 = vmatpush3.msra.mxu0 %v30_v36 }
  0x20   :  { %247 = vmatprep.subr.mxu0 %v45_v37 }
  0x21   :  { %248 = vmatpush3.msra.mxu0 %v29_v38 }
  0x22   :  { %135 = vmatmul.mubr.f32.vlgmr.msra.gmra.mxu0 %v26_v39 }
  0xce   :  { %v206_v40 = vpop.f32.mrf.mxu1 }
  0xd0   :  { %v267_v41 = vpop.f32.mrf.mxu1 }
  0xe2   :  { %v249_v42 = vpop.f32.mrf.mxu0 }
  0xe4   :  { %v250_v43 = vpop.f32.mrf.mxu0 }
  0xe5   :  { %v251_v45 = vadd.f32 %v250_v43, %v249_v42 }
  0xe7   :  { %v137_v46 = vadd.f32 %v251_v45, %v65_v44 }
  0xe9   :  { %v207_v47 = vadd.f32 %v206_v40, %v137_v46 }
  0xeb   :  { %211 = vst.msk [vmem:[%s442_s7] sm:$0xff] %vm210_vm2, %v207_v47 }

// kernel: tile.74
= control target key start
LH: loop header
LB: loop body
LE: loop exit
PB: predicated region body
PF: predicated region fallthrough
CT: control target
= control target key end

     0   :  { %s28_s0 = inlined_call_operand.vmem [shape: f32[64], index: 0, kind: input, shape index: {}]   ;;  %s29_s1 = inlined_call_operand.vmem [shape: f32[9,64], index: 1, kind: output, shape index: {}]  }
   0x1   :  { %v4_v0 = vld [vmem:[%s28_s0] ss:$0 sm:$0xff] }
   0x2   :  { %5 = vst [vmem:[%s29_s1] sm:$0xff] %v4_v0  ;;  %8 = vst [vmem:[%s29_s1 + $0x8] sm:$0xff] %v4_v0 }

// kernel: tile.75
= control target key start
LH: loop header
LB: loop body
LE: loop exit
PB: predicated region body
PF: predicated region fallthrough
CT: control target
= control target key end

     0   :  { %vm3_vm0 = vcmask 523264   ;;  %s57_s8 = smov 64   ;;  %vm11_vm1 = vcmask 1048064   ;;  %s89_s0 = inlined_call_operand.vmem [shape: f32[9,64], index: 0, kind: input, shape index: {}]   ;;  %s90_s1 = inlined_call_operand.vmem [shape: f32[1,576], index: 1, kind: output, shape index: {}]  }
   0x1   :  { %v51_v0 = vld [vmem:[%s89_s0 + $0x1] ss:$2 sm:$0xf]   ;;  %v2_v1 = vld [vmem:[%s89_s0] ss:$2 sm:$0x1f]  }
   0x2   :  { %9 = vrot.lane.b32.xlu0 %v51_v0, %s57_s8  ;;  %4 = vst.msk [vmem:[#allocation0] ss:$8 sm:$0xf] %vm3_vm0, %v2_v1   ;;  %6 = vst.msk [vmem:[#allocation0 + $0x1c] sm:$0x10] %vm3_vm0, %v2_v1  }
   0x9   :  { %v42_v2 = vld [vmem:[#allocation0 + $0x20] sm:$0x1] }
   0xa   :  { %55 = vst [vmem:[%s90_s1 + $0x4] sm:$0x1] %v42_v2 }
  0x74   :  { %v10_v3 = vpop.permute.xlu0 %9  }
  0x75   :  { %12 = vst.msk [vmem:[#allocation0] ss:$8 sm:$0xf] %vm11_vm1, %v10_v3  }
  0x7c   :  { %v17_v4 = vld [vmem:[#allocation0] sm:$0x1]  ;;  %v22_v5 = vld [vmem:[#allocation0 + $0x8] sm:$0x1]  ;;  %v28_v6 = vld [vmem:[#allocation0 + $0x10] sm:$0x1] }
  0x7d   :  { %20 = vst [vmem:[%s90_s1] sm:$0x1] %v17_v4  ;;  %52 = vst [vmem:[%s90_s1 + $0x1] sm:$0x1] %v22_v5  ;;  %v35_v7 = vld [vmem:[#allocation0 + $0x18] sm:$0x1] }
  0x7e   :  { %53 = vst [vmem:[%s90_s1 + $0x2] sm:$0x1] %v28_v6  ;;  %54 = vst [vmem:[%s90_s1 + $0x3] sm:$0x1] %v35_v7 }

// kernel: forward.33
= control target key start
LH: loop header
LB: loop body
LE: loop exit
PB: predicated region body
PF: predicated region fallthrough
CT: control target
= control target key end

     0   :  { %s86_s0 = inlined_call_operand.vmem [shape: f32[9,2,256], index: 0, kind: input, shape index: {}]   ;;  %s87_s1 = inlined_call_operand.vmem [shape: f32[2,256], index: 1, kind: output, shape index: {}]  }
   0x1   :  { %v8_v0 = vld [vmem:[%s86_s0] sm:$0xf]  ;;  %v38_v1 = vld [vmem:[%s86_s0 + $0x4] sm:$0xf]  ;;  %v39_v2 = vld [vmem:[%s86_s0 + $0x8] sm:$0xf] }
   0x2   :  { %v11_v3 = vmax.f32 %v8_v0, %v38_v1  ;;  %v40_v4 = vld [vmem:[%s86_s0 + $0xc] sm:$0xf]  ;;  %v41_v6 = vld [vmem:[%s86_s0 + $0x10] sm:$0xf]  ;;  %v42_v8 = vld [vmem:[%s86_s0 + $0x14] sm:$0xf] }
   0x3   :  { %v43_v10 = vld [vmem:[%s86_s0 + $0x18] sm:$0xf]  ;;  %v44_v12 = vld [vmem:[%s86_s0 + $0x1c] sm:$0xf]  ;;  %v45_v14 = vld [vmem:[%s86_s0 + $0x20] sm:$0xf] }
   0x4   :  { %v14_v5 = vmax.f32 %v11_v3, %v39_v2 }
   0x6   :  { %v17_v7 = vmax.f32 %v14_v5, %v40_v4 }
   0x8   :  { %v20_v9 = vmax.f32 %v17_v7, %v41_v6 }
   0xa   :  { %v23_v11 = vmax.f32 %v20_v9, %v42_v8 }
   0xc   :  { %v26_v13 = vmax.f32 %v23_v11, %v43_v10 }
   0xe   :  { %v29_v15 = vmax.f32 %v26_v13, %v44_v12 }
  0x10   :  { %v32_v16 = vmax.f32 %v29_v15, %v45_v14 }
  0x12   :  { %33 = vst [vmem:[%s87_s1] sm:$0xf] %v32_v16 }

// kernel: forward.35
= control target key start
LH: loop header
LB: loop body
LE: loop exit
PB: predicated region body
PF: predicated region fallthrough
CT: control target
= control target key end

     0   :  { %vm17_vm0 = vcmask 519168   ;;  %v198_v1 = vmov 0.0   ;;  %vm199_vm1 = vmmov 0   ;;  %s257_s0 = inlined_call_operand.vmem [shape: f32[2,4,64], index: 0, kind: input, shape index: {}]   ;;  %s258_s1 = inlined_call_operand.vmem [shape: f32[64,10], index: 1, kind: input, shape index: {}]   ;;  %s259_s2 = inlined_call_operand.vmem [shape: f32[1,10], index: 2, kind: input, shape index: {}]   ;;  %s260_s3 = inlined_call_operand.hbm [shape: f32[2,10], index: 3, kind: output, shape index: {}]  }
   0x1   :  { %v42_v0 = vld [vmem:[%s258_s1 + $0x38] sm:$0xff]  ;;  %154 = vmatprep.subr.mxu0 %v198_v1  ;;  %v41_v2 = vld [vmem:[%s258_s1 + $0x30] sm:$0xff]  ;;  %170 = vmatprep.mubr.msk.f32.mxu0 %vm199_vm1, %v198_v1  ;;  %v15_v3 = vld [vmem:[%s257_s0] sm:$0xf] }
   0x2   :  { %155 = vmatpush3.msra.mxu0 %v42_v0  ;;  %v40_v4 = vld [vmem:[%s258_s1 + $0x28] sm:$0xff]  ;;  %v16_v5 = vld [vmem:[%s257_s0 + $0x4] sm:$0xf]  ;;  %v18_v6 = vsel %vm17_vm0, %v15_v3, 0.0 }
   0x3   :  { %156 = vmatprep.subr.mxu0 %v198_v1  ;;  %v19_v7 = vrot.slane %v18_v6, 4  ;;  %v25_v8 = vsel %vm17_vm0, %v16_v5, 0.0 }
   0x4   :  { %157 = vmatpush3.msra.mxu0 %v41_v2 }
   0x5   :  { %8 = vsyncpa [#allocation3], 0  ;;  %158 = vmatprep.subr.mxu0 %v198_v1  ;;  %v39_v9 = vld [vmem:[%s258_s1 + $0x20] sm:$0xff]  ;;  %v26_v10 = vrot.slane %v25_v8, 4  ;;  %v20_v11 = vadd.f32 %v19_v7, %v18_v6  ;;  %v38_v12 = vld [vmem:[%s258_s1 + $0x18] sm:$0xff]  ;;  %vm52_vm2 = vcmask 1041409  }
   0x6   :  { %159 = vmatpush3.msra.mxu0 %v40_v4  ;;  %v37_v15 = vld [vmem:[%s258_s1 + $0x10] sm:$0xff]  ;;  %v36_v18 = vld [vmem:[%s258_s1 + $0x8] sm:$0xff]  ;;  %v35_v21 = vld [vmem:[%s258_s1] sm:$0xff]  ;;  %vm54_vm3 = vcmask 523264   ;;  %s200_s6 = smov [#allocation2]   ;;  %vm127_vm4 = vcmask 74752  }
   0x7   :  { %160 = vmatprep.subr.mxu0 %v198_v1  ;;  %v27_v13 = vadd.f32 %v26_v10, %v25_v8  ;;  %v21_v14 = vrot.slane %v20_v11, 2  ;;  %v143_v28 = vld [vmem:[%s259_s2] ss:$0 sm:$0xff]  ;;  %s135_s7 = sshll.u32 %s200_s6, 4  ;;  %s136_s7 = int_to_ptr.vmem [resolvable:$true] %s135_s7 }
   0x8   :  { %161 = vmatpush3.msra.mxu0 %v39_v9  ;;  %s176_s1 = scalar_lea.vmem %s136_s7, 32  ;;  %p181_p1 = scmp.lt.s32.totalorder %s136_s7, %s136_s7 }
   0x9   :  { %162 = vmatprep.subr.mxu0 %v198_v1  ;;  %v28_v16 = vrot.slane %v27_v13, 2  ;;  %v22_v17 = vadd.f32 %v21_v14, %v20_v11  ;;  %p177_p0 = scmp.ne.s32.totalorder %s136_s7, %s176_s1  ;;  %p182_p2 = scmp.lt.s32.totalorder %s176_s1, %s176_s1 }
   0xa   :  { %163 = vmatpush3.msra.mxu0 %v38_v12 }
   0xb   :  { %164 = vmatprep.subr.mxu0 %v198_v1  ;;  %v29_v19 = vadd.f32 %v28_v16, %v27_v13  ;;  %v23_v20 = vrot.slane %v22_v17, 1  ;;  %p183_p3 = por %p182_p2, %p181_p1 }
   0xc   :  { %165 = vmatpush3.msra.mxu0 %v37_v15 }
   0xd   :  { %166 = vmatprep.subr.mxu0 %v198_v1  ;;  %v30_v22 = vrot.slane %v29_v19, 1  ;;  %v24_v23 = vadd.f32 %v23_v20, %v22_v17  ;;  %p184_p4 = pnand %p183_p3, %p177_p0 }
   0xe   :  { %167 = vmatpush3.msra.mxu0 %v36_v18 }
   0xf   :  { %168 = vmatprep.subr.mxu0 %v198_v1  ;;  %v31_v24 = vadd.f32 %v30_v22, %v29_v19  ;;  %v33_v25 = vmul.f32 0.25, %v24_v23 }
  0x10   :  { %169 = vmatpush3.msra.mxu0 %v35_v21 }
  0x11   :  { %v34_v26 = vmul.f32 0.25, %v31_v24 }
  0x13   :  { %v53_v27 = vsel %vm52_vm2, %v34_v26, %v33_v25 }
  0x14   :  { %171 = vmatmul.mubr.msk.f32.vlgmr.msra.gmra.mxu0 %vm54_vm3, %v53_v27 }
  0xd4   :  { %v123_v29 = vpop.f32.mrf.mxu0 }
  0xd5   :  { %v124_v30 = vadd.f32 %v143_v28, %v123_v29 }
  0xd6   :  { %v172_v31 = vpop.f32.mrf.mxu0 }
  0xd7   :  { %128 = vst.msk [vmem:[#allocation2] sm:$0x3] %vm127_vm4, %v124_v30 }
  0xd8   :  { %187 = shalt.err (!%p184_p4)
}
  0xd9   :  { %138 = dma.vmem_to_hbm [thread:$0]  %s136_s7, 32, %s260_s3, [#allocation3]  }
  0xda   :  { %196 = dma.done.wait [#allocation3], 32  }
  0xdb   :  { %197 = vsyncadd [#allocation3], 4294967264 }
  0xdc   :  { %142 = vsyncpa [#allocation3], 1 }

// kernel: forward.34
= control target key start
LH: loop header
LB: loop body
LE: loop exit
PB: predicated region body
PF: predicated region fallthrough
CT: control target
= control target key end

     0   :  { %v33_v23 = vlaneseq  ;;  %vm494_vm0 = vmmov 0   ;;  %vm173_vm1 = vcmask 523264   ;;  %s801_s1 = inlined_call_operand.vmem [shape: f32[576,64], index: 1, kind: input, shape index: {}]   ;;  %s802_s4 = inlined_call_operand.vmem [shape: f32[1,64], index: 4, kind: input, shape index: {}]   ;;  %s803_s5 = inlined_call_operand.vmem [shape: f32[1,64], index: 5, kind: input, shape index: {}]   ;;  %s804_s0 = inlined_call_operand.vmem [shape: f32[8,576], index: 0, kind: input, shape index: {}]   ;;  %s805_s2 = inlined_call_operand.vmem [shape: f32[1,576], index: 2, kind: input, shape index: {}]   ;;  %s806_s3 = inlined_call_operand.vmem [shape: f32[1,576], index: 3, kind: input, shape index: {}]   ;;  %s807_s6 = inlined_call_operand.vmem [shape: f32[8,64], index: 6, kind: input, shape index: {}]   ;;  %s808_s7 = inlined_call_operand.vmem [shape: f32[8,64], index: 7, kind: output, shape index: {}]  }
   0x1   :  { %v131_v0 = vld [vmem:[%s801_s1 + $0xf8] sm:$0xff]  ;;  %v130_v2 = vld [vmem:[%s801_s1 + $0xf0] sm:$0xff]  ;;  %v129_v6 = vld [vmem:[%s801_s1 + $0xe8] sm:$0xff] }
   0x2   :  { %v115_v1 = vld [vmem:[%s801_s1 + $0x78] sm:$0xff]  ;;  %393 = vmatprep.subr.mxu0 %v131_v0  ;;  %v114_v4 = vld [vmem:[%s801_s1 + $0x70] sm:$0xff]  ;;  %v113_v8 = vld [vmem:[%s801_s1 + $0x68] sm:$0xff]  ;;  %v628_v32 = vshrl.u32 %v33_v23, 7 }
   0x3   :  { %v163_v3 = vld [vmem:[%s801_s1 + $0x1f8] sm:$0xff]  ;;  %394 = vmatpush3.msra.mxu0 %v115_v1  ;;  %v162_v7 = vld [vmem:[%s801_s1 + $0x1f0] sm:$0xff]  ;;  %v161_v10 = vld [vmem:[%s801_s1 + $0x1e8] sm:$0xff] }
   0x4   :  { %v147_v5 = vld [vmem:[%s801_s1 + $0x178] sm:$0xff]  ;;  %428 = vmatprep.subr.mxu1 %v163_v3  ;;  %395 = vmatprep.subr.mxu0 %v130_v2  ;;  %v146_v9 = vld [vmem:[%s801_s1 + $0x170] sm:$0xff]  ;;  %v128_v11 = vld [vmem:[%s801_s1 + $0xe0] sm:$0xff]  ;;  %v39_v41 = vsub.s32 1, %v628_v32  ;;  %v35_v42 = vsub.s32 0, %v628_v32  ;;  %v47_v43 = vsub.s32 3, %v628_v32 }
   0x5   :  { %429 = vmatpush3.msra.mxu1 %v147_v5  ;;  %396 = vmatpush3.msra.mxu0 %v114_v4  ;;  %v145_v12 = vld [vmem:[%s801_s1 + $0x168] sm:$0xff]  ;;  %v112_v13 = vld [vmem:[%s801_s1 + $0x60] sm:$0xff]  ;;  %v127_v15 = vld [vmem:[%s801_s1 + $0xd8] sm:$0xff]  ;;  %v43_v53 = vsub.s32 2, %v628_v32 }
   0x6   :  { %430 = vmatprep.subr.mxu1 %v162_v7  ;;  %397 = vmatprep.subr.mxu0 %v129_v6  ;;  %v160_v14 = vld [vmem:[%s801_s1 + $0x1e0] sm:$0xff]  ;;  %v111_v17 = vld [vmem:[%s801_s1 + $0x58] sm:$0xff]  ;;  %v126_v19 = vld [vmem:[%s801_s1 + $0xd0] sm:$0xff] }
   0x7   :  { %431 = vmatpush3.msra.mxu1 %v146_v9  ;;  %398 = vmatpush3.msra.mxu0 %v113_v8  ;;  %v144_v16 = vld [vmem:[%s801_s1 + $0x160] sm:$0xff]  ;;  %v159_v18 = vld [vmem:[%s801_s1 + $0x1d8] sm:$0xff]  ;;  %v110_v21 = vld [vmem:[%s801_s1 + $0x50] sm:$0xff] }
   0x8   :  { %432 = vmatprep.subr.mxu1 %v161_v10  ;;  %399 = vmatprep.subr.mxu0 %v128_v11  ;;  %v143_v20 = vld [vmem:[%s801_s1 + $0x158] sm:$0xff]  ;;  %v158_v22 = vld [vmem:[%s801_s1 + $0x1d0] sm:$0xff]  ;;  %v125_v24 = vld [vmem:[%s801_s1 + $0xc8] sm:$0xff] }
   0x9   :  { %433 = vmatpush3.msra.mxu1 %v145_v12  ;;  %400 = vmatpush3.msra.mxu0 %v112_v13  ;;  %v142_v25 = vld [vmem:[%s801_s1 + $0x150] sm:$0xff]  ;;  %v109_v26 = vld [vmem:[%s801_s1 + $0x48] sm:$0xff]  ;;  %v124_v28 = vld [vmem:[%s801_s1 + $0xc0] sm:$0xff] }
   0xa   :  { %434 = vmatprep.subr.mxu1 %v160_v14  ;;  %401 = vmatprep.subr.mxu0 %v127_v15  ;;  %v157_v27 = vld [vmem:[%s801_s1 + $0x1c8] sm:$0xff]  ;;  %v108_v30 = vld [vmem:[%s801_s1 + $0x40] sm:$0xff]  ;;  %v123_v33 = vld [vmem:[%s801_s1 + $0xb8] sm:$0xff] }
   0xb   :  { %435 = vmatpush3.msra.mxu1 %v144_v16  ;;  %402 = vmatpush3.msra.mxu0 %v111_v17  ;;  %v141_v29 = vld [vmem:[%s801_s1 + $0x148] sm:$0xff]  ;;  %v156_v31 = vld [vmem:[%s801_s1 + $0x1c0] sm:$0xff]  ;;  %v107_v35 = vld [vmem:[%s801_s1 + $0x38] sm:$0xff] }
   0xc   :  { %436 = vmatprep.subr.mxu1 %v159_v18  ;;  %403 = vmatprep.subr.mxu0 %v126_v19  ;;  %v140_v34 = vld [vmem:[%s801_s1 + $0x140] sm:$0xff]  ;;  %v155_v36 = vld [vmem:[%s801_s1 + $0x1b8] sm:$0xff]  ;;  %v122_v37 = vld [vmem:[%s801_s1 + $0xb0] sm:$0xff] }
   0xd   :  { %437 = vmatpush3.msra.mxu1 %v143_v20  ;;  %404 = vmatpush3.msra.mxu0 %v110_v21  ;;  %v139_v38 = vld [vmem:[%s801_s1 + $0x138] sm:$0xff]  ;;  %v106_v39 = vld [vmem:[%s801_s1 + $0x30] sm:$0xff]  ;;  %v121_v44 = vld [vmem:[%s801_s1 + $0xa8] sm:$0xff] }
   0xe   :  { %438 = vmatprep.subr.mxu1 %v158_v22  ;;  %405 = vmatprep.subr.mxu0 %v125_v24  ;;  %v154_v40 = vld [vmem:[%s801_s1 + $0x1b0] sm:$0xff]  ;;  %v105_v45 = vld [vmem:[%s801_s1 + $0x28] sm:$0xff]  ;;  %v120_v47 = vld [vmem:[%s801_s1 + $0xa0] sm:$0xff] }
   0xf   :  { %439 = vmatpush3.msra.mxu1 %v142_v25  ;;  %406 = vmatpush3.msra.mxu0 %v109_v26  ;;  %v138_v46 = vld [vmem:[%s801_s1 + $0x130] sm:$0xff]  ;;  %v153_v48 = vld [vmem:[%s801_s1 + $0x1a8] sm:$0xff]  ;;  %v104_v49 = vld [vmem:[%s801_s1 + $0x20] sm:$0xff] }
  0x10   :  { %440 = vmatprep.subr.mxu1 %v157_v27  ;;  %407 = vmatprep.subr.mxu0 %v124_v28  ;;  %v137_v50 = vld [vmem:[%s801_s1 + $0x128] sm:$0xff]  ;;  %v684_v52 = vld [vmem:[%s805_s2] sm:$0x1f]  ;;  %v119_v60 = vld [vmem:[%s801_s1 + $0x98] sm:$0xff] }
  0x11   :  { %441 = vmatpush3.msra.mxu1 %v141_v29  ;;  %408 = vmatpush3.msra.mxu0 %v108_v30  ;;  %v27_v51 = vld [vmem:[%s804_s0 + $0x8] sm:$0xff]  ;;  %v152_v54 = vld [vmem:[%s801_s1 + $0x1a0] sm:$0xff]  ;;  %v40_v55 = vrot.slane %v684_v52, %v39_v41  ;;  %v36_v58 = vrot.slane %v684_v52, %v35_v42  ;;  %v48_v59 = vrot.slane %v684_v52, %v47_v43  ;;  %v29_v0 = vld [vmem:[%s804_s0 + $0x18] sm:$0xff]  ;;  %v51_v29 = vsub.s32 4, %v628_v32 }
  0x12   :  { %442 = vmatprep.subr.mxu1 %v156_v31  ;;  %409 = vmatprep.subr.mxu0 %v123_v33  ;;  %v694_v56 = vld [vmem:[%s806_s3] sm:$0x1f]  ;;  %v103_v2 = vld [vmem:[%s801_s1 + $0x18] sm:$0xff]  ;;  %v28_v7 = vld [vmem:[%s804_s0 + $0x10] sm:$0xff]  ;;  %v44_v10 = vrot.slane %v684_v52, %v43_v53 }
  0x13   :  { %443 = vmatpush3.msra.mxu1 %v140_v34  ;;  %410 = vmatpush3.msra.mxu0 %v107_v35  ;;  %v26_v57 = vld [vmem:[%s804_s0] sm:$0xff]  ;;  %v72_v62 = vrot.slane %v694_v56, %v39_v41  ;;  %v68_v63 = vrot.slane %v694_v56, %v35_v42  ;;  %v80_v1 = vrot.slane %v694_v56, %v47_v43  ;;  %v151_v3 = vld [vmem:[%s801_s1 + $0x198] sm:$0xff]  ;;  %v118_v8 = vld [vmem:[%s801_s1 + $0x90] sm:$0xff]  ;;  %v493_v35 = vmov 0.0  }
  0x14   :  { %444 = vmatprep.subr.mxu1 %v155_v36  ;;  %411 = vmatprep.subr.mxu0 %v122_v37  ;;  %v136_v61 = vld [vmem:[%s801_s1 + $0x120] sm:$0xff]  ;;  %v59_v4 = vmul.f32 %v40_v55, %v27_v51  ;;  %v58_v5 = vmul.f32 %v36_v58, %v26_v57  ;;  %v61_v6 = vmul.f32 %v48_v59, %v29_v0  ;;  %v135_v9 = vld [vmem:[%s801_s1 + $0x118] sm:$0xff]  ;;  %v102_v12 = vld [vmem:[%s801_s1 + $0x10] sm:$0xff] }
  0x15   :  { %445 = vmatpush3.msra.mxu1 %v139_v38  ;;  %412 = vmatpush3.msra.mxu0 %v106_v39  ;;  %v76_v11 = vrot.slane %v694_v56, %v43_v53  ;;  %v150_v13 = vld [vmem:[%s801_s1 + $0x190] sm:$0xff]  ;;  %v117_v16 = vld [vmem:[%s801_s1 + $0x88] sm:$0xff]  ;;  %v60_v18 = vmul.f32 %v44_v10, %v28_v7  ;;  %v116_v23 = vld [vmem:[%s801_s1 + $0x80] sm:$0xff]  ;;  %v52_v36 = vrot.slane %v684_v52, %v51_v29 }
  0x16   :  { %446 = vmatprep.subr.mxu1 %v154_v40  ;;  %413 = vmatprep.subr.mxu0 %v121_v44  ;;  %v91_v14 = vadd.f32 %v72_v62, %v59_v4  ;;  %v90_v15 = vadd.f32 %v68_v63, %v58_v5  ;;  %v134_v17 = vld [vmem:[%s801_s1 + $0x110] sm:$0xff]  ;;  %v101_v19 = vld [vmem:[%s801_s1 + $0x8] sm:$0xff]  ;;  %v93_v22 = vadd.f32 %v80_v1, %v61_v6  ;;  %v100_v25 = vld [vmem:[%s801_s1] sm:$0xff] }
  0x17   :  { %447 = vmatpush3.msra.mxu1 %v138_v46  ;;  %414 = vmatpush3.msra.mxu0 %v105_v45  ;;  %v149_v20 = vld [vmem:[%s801_s1 + $0x188] sm:$0xff]  ;;  %v92_v24 = vadd.f32 %v76_v11, %v60_v18  ;;  %v148_v28 = vld [vmem:[%s801_s1 + $0x180] sm:$0xff]  ;;  %v171_v33 = vld [vmem:[%s801_s1 + $0x238] sm:$0xff]  ;;  %v84_v41 = vrot.slane %v694_v56, %v51_v29 }
  0x18   :  { %448 = vmatprep.subr.mxu1 %v153_v48  ;;  %415 = vmatprep.subr.mxu0 %v120_v47  ;;  %v96_v21 = vmax.f32 %v91_v14, 0.0  ;;  %v133_v26 = vld [vmem:[%s801_s1 + $0x108] sm:$0xff]  ;;  %v95_v27 = vmax.f32 %v90_v15, 0.0  ;;  %v132_v30 = vld [vmem:[%s801_s1 + $0x100] sm:$0xff]  ;;  %v98_v31 = vmax.f32 %v93_v22, 0.0  ;;  %v170_v32 = vld [vmem:[%s801_s1 + $0x230] sm:$0xff] }
  0x19   :  { %449 = vmatpush3.msra.mxu1 %v137_v50  ;;  %416 = vmatpush3.msra.mxu0 %v104_v49  ;;  %v97_v34 = vmax.f32 %v92_v24, 0.0  ;;  %v30_v37 = vld [vmem:[%s804_s0 + $0x20] sm:$0xff]  ;;  %v169_v38 = vld [vmem:[%s801_s1 + $0x228] sm:$0xff]  ;;  %v167_v42 = vld [vmem:[%s801_s1 + $0x218] sm:$0xff] }
  0x1a   :  { %450 = vmatprep.subr.mxu1 %v152_v54  ;;  %417 = vmatprep.subr.mxu0 %v119_v60  ;;  %v168_v39 = vld [vmem:[%s801_s1 + $0x220] sm:$0xff]  ;;  %v62_v40 = vmul.f32 %v52_v36, %v30_v37  ;;  %v166_v43 = vld [vmem:[%s801_s1 + $0x210] sm:$0xff]  ;;  %v165_v45 = vld [vmem:[%s801_s1 + $0x208] sm:$0xff] }
  0x1b   :  { %451 = vmatpush3.msra.mxu1 %v136_v61  ;;  %418 = vmatpush3.msra.mxu0 %v103_v2  ;;  %v164_v46 = vld [vmem:[%s801_s1 + $0x200] sm:$0xff] }
  0x1c   :  { %452 = vmatprep.subr.mxu1 %v151_v3  ;;  %419 = vmatprep.subr.mxu0 %v118_v8  ;;  %v94_v44 = vadd.f32 %v84_v41, %v62_v40  ;;  %v172_v52 = vld [vmem:[%s807_s6] sm:$0xff] }
  0x1d   :  { %453 = vmatpush3.msra.mxu1 %v135_v9  ;;  %420 = vmatpush3.msra.mxu0 %v102_v12 }
  0x1e   :  { %454 = vmatprep.subr.mxu1 %v150_v13  ;;  %421 = vmatprep.subr.mxu0 %v117_v16  ;;  %v99_v47 = vmax.f32 %v94_v44, 0.0 }
  0x1f   :  { %455 = vmatpush3.msra.mxu1 %v134_v17  ;;  %422 = vmatpush3.msra.mxu0 %v101_v19 }
  0x20   :  { %456 = vmatprep.subr.mxu1 %v149_v20  ;;  %423 = vmatprep.subr.mxu0 %v116_v23 }
  0x21   :  { %241 = vmatprep.mubr.f32.mxu0 %v96_v21  ;;  %424 = vmatpush3.msra.mxu0 %v100_v25 }
  0x22   :  { %457 = vmatpush3.msra.mxu1 %v133_v26  ;;  %242 = vmatmul.mubr.f32.vlgmr.msra.gmra.mxu0 %v95_v27 }
  0x23   :  { %458 = vmatprep.subr.mxu1 %v148_v28  ;;  %472 = vmatprep.subr.mxu0 %v493_v35 }
  0x24   :  { %459 = vmatpush3.msra.mxu1 %v132_v30  ;;  %311 = vmatprep.mubr.f32.mxu1 %v98_v31 }
  0x25   :  { %473 = vmatpush3.msra.mxu0 %v171_v33  ;;  %312 = vmatmul.mubr.f32.vlgmr.msra.gmra.mxu1 %v97_v34 }
  0x26   :  { %474 = vmatprep.subr.mxu0 %v493_v35  ;;  %488 = vmatprep.mubr.msk.f32.mxu0 %vm494_vm0, %v493_v35 }
  0x27   :  { %475 = vmatpush3.msra.mxu0 %v170_v32 }
  0x28   :  { %476 = vmatprep.subr.mxu0 %v493_v35 }
  0x29   :  { %477 = vmatpush3.msra.mxu0 %v169_v38 }
  0x2a   :  { %478 = vmatprep.subr.mxu0 %v493_v35 }
  0x2b   :  { %479 = vmatpush3.msra.mxu0 %v168_v39 }
  0x2c   :  { %480 = vmatprep.subr.mxu0 %v493_v35 }
  0x2d   :  { %481 = vmatpush3.msra.mxu0 %v167_v42 }
  0x2e   :  { %482 = vmatprep.subr.mxu0 %v493_v35 }
  0x2f   :  { %483 = vmatpush3.msra.mxu0 %v166_v43 }
  0x30   :  { %484 = vmatprep.subr.mxu0 %v493_v35 }
  0x31   :  { %485 = vmatpush3.msra.mxu0 %v165_v45 }
  0x32   :  { %486 = vmatprep.subr.mxu0 %v493_v35 }
  0x33   :  { %487 = vmatpush3.msra.mxu0 %v164_v46 }
  0x34   :  { %489 = vmatmul.mubr.msk.f32.vlgmr.msra.gmra.mxu0 %vm173_vm1, %v99_v47 }
  0xe2   :  { %v425_v48 = vpop.f32.mrf.mxu0 }
  0xe4   :  { %v426_v49 = vpop.f32.mrf.mxu0 }
  0xe5   :  { %v460_v50 = vpop.f32.mrf.mxu1  ;;  %v427_v51 = vadd.f32 %v426_v49, %v425_v48 }
  0xe7   :  { %v461_v53 = vpop.f32.mrf.mxu1  ;;  %v244_v54 = vadd.f32 %v427_v51, %v172_v52 }
  0xe8   :  { %v462_v55 = vadd.f32 %v461_v53, %v460_v50 }
  0xea   :  { %v314_v56 = vadd.f32 %v462_v55, %v244_v54 }
  0xf4   :  { %v383_v57 = vpop.f32.mrf.mxu0 }
  0xf5   :  { %v384_v58 = vadd.f32 %v383_v57, %v314_v56 }
  0xf6   :  { %v490_v59 = vpop.f32.mrf.mxu0 }
  0xf7   :  { %387 = vst.msk [vmem:[%s808_s7] sm:$0xff] %vm173_vm1, %v384_v58 }

</bundles_post_ra>
